<compile_context>
chip_gen: v7x
topology: tpu7x:2x2x1
jax: 0.10.0
libtpu: 0.0.40
codegen_flags: <defaults>
</compile_context>

<pallas_src>
import jax
import jax.numpy as jnp
from jax.experimental import pallas as pl
from jax.experimental.pallas import tpu as pltpu

K_SIZE = 4
BN_EPS = 1e-5
TM_MAX = 512                      # row-tile cap (VMEM-budgeted for bf16 inputs)
VMEM_LIMIT = 32 * 1024 * 1024     # explicit scoped-VMEM limit (raises v5e default)


# --------------------------------------------------------------------- utils
def _round_up(x, m):
    return (x + m - 1) // m * m


def _pick_tile(m):
    m8 = _round_up(max(m, 1), 8)
    return m8 if m8 <= TM_MAX else TM_MAX


# ------------------------------------------------------------------- kernels
def _gemm_stats_kernel(x_ref, w_ref, o_ref, stats_ref):
    """bf16 GEMM (f32 MXU accumulate) + fused per-tile channel sum / sumsq."""
    acc = jnp.dot(x_ref[0], w_ref[0], preferred_element_type=jnp.float32)
    o_ref[0] = acc.astype(o_ref.dtype)
    s = jnp.sum(acc, axis=0, keepdims=True)
    sq = jnp.sum(acc * acc, axis=0, keepdims=True)
    stats_ref[...] = jnp.concatenate([s, sq], axis=0).reshape(stats_ref.shape)


def _gemm_bias_tanh_kernel(x_ref, w_ref, b_ref, o_ref):
    """bf16 GEMM (f32 accumulate) with bias + tanh fused epilogue (final layer)."""
    acc = jnp.dot(x_ref[0], w_ref[0], preferred_element_type=jnp.float32)
    o_ref[0] = jnp.tanh(acc + b_ref[0])


def _scale_shift_relu_kernel(x_ref, scale_ref, shift_ref, o_ref):
    """Lane-dense BatchNorm apply + ReLU (f32 math, bf16 in/out)."""
    y = x_ref[...].astype(jnp.float32) * scale_ref[...] + shift_ref[...]
    o_ref[...] = jnp.maximum(y, 0.0).astype(o_ref.dtype)


# ------------------------------------------------------------- pallas wrappers
def phase_gemm_stats(patches, w):
    """(P, M, K)bf16 @ (P, K, Nout)bf16 -> ((P, Mp, Nout)bf16, (P, nt, 2, Nout)f32)."""
    P, M, K = patches.shape
    Nout = w.shape[2]
    tm = _pick_tile(M)
    Mp = _round_up(M, tm)
    if Mp != M:
        patches = jnp.pad(patches, ((0, 0), (0, Mp - M), (0, 0)))
    nt = Mp // tm
    out, stats = pl.pallas_call(
        _gemm_stats_kernel,
        out_shape=(jax.ShapeDtypeStruct((P, Mp, Nout), jnp.bfloat16),
                   jax.ShapeDtypeStruct((P, nt, 2, Nout), jnp.float32)),
        grid=(P, nt),
        in_specs=[pl.BlockSpec((1, tm, K), lambda p, i: (p, i, 0)),
                  pl.BlockSpec((1, K, Nout), lambda p, i: (p, 0, 0))],
        out_specs=(pl.BlockSpec((1, tm, Nout), lambda p, i: (p, i, 0)),
                   pl.BlockSpec((1, 1, 2, Nout), lambda p, i: (p, i, 0, 0))),
        compiler_params=pltpu.CompilerParams(
            dimension_semantics=("parallel", "parallel"),
            vmem_limit_bytes=VMEM_LIMIT),
    )(patches, w)
    return out, stats


def phase_gemm_bias_tanh(patches, w, bias):
    """Final layer: GEMM + bias + tanh fused, f32 output."""
    P, M, K = patches.shape
    Nout = w.shape[2]
    tm = _pick_tile(M)
    Mp = _round_up(M, tm)
    if Mp != M:
        patches = jnp.pad(patches, ((0, 0), (0, Mp - M), (0, 0)))
    nt = Mp // tm
    return pl.pallas_call(
        _gemm_bias_tanh_kernel,
        out_shape=jax.ShapeDtypeStruct((P, Mp, Nout), jnp.float32),
        grid=(P, nt),
        in_specs=[pl.BlockSpec((1, tm, K), lambda p, i: (p, i, 0)),
                  pl.BlockSpec((1, K, Nout), lambda p, i: (p, 0, 0)),
                  pl.BlockSpec((1, 1, Nout), lambda p, i: (0, 0, 0))],
        out_specs=pl.BlockSpec((1, tm, Nout), lambda p, i: (p, i, 0)),
        compiler_params=pltpu.CompilerParams(
            dimension_semantics=("parallel", "parallel"),
            vmem_limit_bytes=VMEM_LIMIT),
    )(patches, w, bias.reshape(1, 1, Nout).astype(jnp.float32))


def bn_relu_apply(act_nhwc, scale, shift):
    """relu(x*scale + shift) on a lane-dense (N*H, W*C) view (>=128 lanes)."""
    N, H, W, C = act_nhwc.shape
    R, L = N * H, W * C
    x2 = act_nhwc.reshape(R, L)
    scale_l = jnp.tile(scale, W).reshape(1, L).astype(jnp.float32)
    shift_l = jnp.tile(shift, W).reshape(1, L).astype(jnp.float32)
    tr = _pick_tile(R)
    Rp = _round_up(R, tr)
    if Rp != R:
        x2 = jnp.pad(x2, ((0, Rp - R), (0, 0)))
    y = pl.pallas_call(
        _scale_shift_relu_kernel,
        out_shape=jax.ShapeDtypeStruct((Rp, L), jnp.bfloat16),
        grid=(Rp // tr,),
        in_specs=[pl.BlockSpec((tr, L), lambda i: (i, 0)),
                  pl.BlockSpec((1, L), lambda i: (0, 0)),
                  pl.BlockSpec((1, L), lambda i: (0, 0))],
        out_specs=pl.BlockSpec((tr, L), lambda i: (i, 0)),
        compiler_params=pltpu.CompilerParams(
            dimension_semantics=("parallel",),
            vmem_limit_bytes=VMEM_LIMIT),
    )(x2, scale_l, shift_l)
    return y[:R].reshape(N, H, W, C)


# ------------------------------------------------------------------ XLA glue
def phase_patches(x):
    """NHWC -> (4, N*H*W, 4*Cin) sub-pixel 2x2 patches for k=4, s=2, p=1."""
    N, H, W, C = x.shape
    xp = jnp.pad(x, ((0, 0), (1, 1), (1, 1), (0, 0)))
    phases = []
    for py in range(2):
        for px in range(2):
            taps = [xp[:, py + dh:py + dh + H, px + dw:px + dw + W, :]
                    for dh in range(2) for dw in range(2)]
            phases.append(jnp.concatenate(taps, axis=-1).reshape(N * H * W, 4 * C))
    return jnp.stack(phases, axis=0)


def pixel_shuffle(out, N, H, W, C):
    """(4, Mp, C) phase-major GEMM output -> (N, 2H, 2W, C)."""
    o = out[:, :N * H * W, :].reshape(2, 2, N, H, W, C)
    o = jnp.transpose(o, (2, 3, 0, 4, 1, 5))       # (N, H, py, W, px, C)
    return o.reshape(N, 2 * H, 2 * W, C)


def bn_scale_shift(stats, groups, cout, count, gamma, beta):
    """Finalize fused partial stats (P, nt, 2, groups*cout) -> (scale, shift)."""
    s = jnp.sum(stats, axis=(0, 1)).reshape(2, groups, cout).sum(axis=1)
    mean = s[0] / count
    var = s[1] / count - mean * mean               # biased (train-mode) variance
    scale = gamma * jax.lax.rsqrt(var + BN_EPS)
    shift = beta - mean * scale
    return scale, shift


# ------------------------------------------------- weight packing (init-time)
def phase_weight(w_ct):
    """ConvTranspose2d weight (Cin, Cout, 4, 4) -> (4, 4*Cin, Cout) bf16 phase GEMM weights."""
    ws = []
    for py in range(2):
        for px in range(2):
            taps = [w_ct[:, :, 3 - py - 2 * dh, 3 - px - 2 * dw]
                    for dh in range(2) for dw in range(2)]     # each (Cin, Cout)
            ws.append(jnp.concatenate(taps, axis=0))            # (4*Cin, Cout)
    return jnp.stack(ws, axis=0).astype(jnp.bfloat16)


def head_weight(w_ct):
    """Layer-1 (1x1 input, s=1, p=0): (Cin, Cout, 4, 4) -> (1, Cin, 16*Cout) bf16."""
    cin, cout = w_ct.shape[0], w_ct.shape[1]
    return jnp.transpose(w_ct, (0, 2, 3, 1)).reshape(1, cin, 16 * cout).astype(jnp.bfloat16)


def init_params(key, z_dim, channels_img, features_g):
    dims = [
        (z_dim, features_g * 16),
        (features_g * 16, features_g * 8),
        (features_g * 8, features_g * 4),
        (features_g * 4, features_g * 2),
        (features_g * 2, channels_img),
    ]
    keys = jax.random.split(key, len(dims) + 1)
    params = {}
    for i, (cin, cout) in enumerate(dims, start=1):
        w_ct = 0.02 * jax.random.normal(keys[i - 1], (cin, cout, K_SIZE, K_SIZE),
                                        jnp.float32)
        params[f"w{i}"] = head_weight(w_ct) if i == 1 else phase_weight(w_ct)
        if i < 5:
            params[f"gamma{i}"] = jnp.ones((cout,), jnp.float32)
            params[f"beta{i}"] = jnp.zeros((cout,), jnp.float32)
    params["bias5"] = 0.01 * jax.random.normal(keys[-1], (channels_img,), jnp.float32)
    return params


# ------------------------------------------------------------------- forward
@jax.jit
def generator_forward(z_nchw, params):
    N = z_nchw.shape[0]

    # layer 1: ConvT(z -> 16fg, k4, s1, p0) on 1x1 input == single GEMM, lane-dense N=16*Cout
    z = z_nchw.reshape(N, -1).astype(jnp.bfloat16)[None]        # (1, N, z_dim)
    c1 = params["w1"].shape[2] // 16
    out, stats = phase_gemm_stats(z, params["w1"])               # (1, Np, 16*c1)
    act = out[0, :N].reshape(N, 4, 4, c1)
    scale, shift = bn_scale_shift(stats, 16, c1, N * 16,
                                  params["gamma1"], params["beta1"])
    x = bn_relu_apply(act, scale, shift)                         # (N, 4, 4, 16fg)

    # layers 2-4: ConvT(k4, s2, p1, bias=False) via phase decomposition + BN + ReLU
    for i in (2, 3, 4):
        w = params[f"w{i}"]
        cout = w.shape[2]
        n, h, wdt, _ = x.shape
        out, stats = phase_gemm_stats(phase_patches(x), w)       # (4, Mp, cout)
        act = pixel_shuffle(out, n, h, wdt, cout)                # (n, 2h, 2w, cout)
        scale, shift = bn_scale_shift(stats, 1, cout, 4 * n * h * wdt,
                                      params[f"gamma{i}"], params[f"beta{i}"])
        x = bn_relu_apply(act, scale, shift)

    # layer 5: ConvT(2fg -> channels_img, k4, s2, p1) with bias + tanh fused in the GEMM
    w = params["w5"]
    cout = w.shape[2]
    n, h, wdt, _ = x.shape
    out = phase_gemm_bias_tanh(phase_patches(x), w, params["bias5"])
    y = pixel_shuffle(out, n, h, wdt, cout)                      # (n, 64, 64, C) f32
    return jnp.transpose(y, (0, 3, 1, 2))                        # back to NCHW


# ------------------------------------------------------------------------ main
if __name__ == "__main__":
    Z_DIM, CH_IMG, FEAT_G, BATCH = 32, 3, 4, 2

    key = jax.random.PRNGKey(0)
    k_param, k_z = jax.random.split(key)
    params = init_params(k_param, Z_DIM, CH_IMG, FEAT_G)
    z = jax.random.normal(k_z, (BATCH, Z_DIM, 1, 1), jnp.float32)

    out = generator_forward(z, params)
    out = jax.block_until_ready(out)

    assert out.shape == (BATCH, CH_IMG, 64, 64), out.shape
    assert bool(jnp.all(jnp.isfinite(out)))
    assert bool(jnp.all(jnp.abs(out) <= 1.0))  # tanh range
    print("KERNEL_OK")
</pallas_src>

<mosaic_0001>
module attributes {stable_mosaic.version = 11 : i64} {
  func.func @_gemm_stats_kernel(%arg0: i32, %arg1: i32, %arg2: memref<1x8x32xbf16, #tpu.memory_space<vmem>>, %arg3: memref<1x32x1024xbf16, #tpu.memory_space<vmem>>, %arg4: memref<1x8x1024xbf16, #tpu.memory_space<vmem>>, %arg5: memref<1x1x2x1024xf32, #tpu.memory_space<vmem>>) attributes {dimension_semantics = [#tpu.dimension_semantics<parallel>, #tpu.dimension_semantics<parallel>], iteration_bounds = array<i64: 1, 1>, scalar_prefetch = 0 : i64, scratch_operands = 0 : i64, tpu.core_type = #tpu.core_type<tc>, window_params = [{transform_indices = @transform_0, window_bounds = array<i64: 1, 8, 32>}, {transform_indices = @transform_1, window_bounds = array<i64: 1, 32, 1024>}, {transform_indices = @transform_2, window_bounds = array<i64: 1, 8, 1024>}, {transform_indices = @transform_3, window_bounds = array<i64: 1, 1, 2, 1024>}]} {
    %c0 = arith.constant 0 : index
    %c0_0 = arith.constant 0 : index
    %c0_1 = arith.constant 0 : index
    %0 = vector.load %arg2[%c0, %c0_0, %c0_1] : memref<1x8x32xbf16, #tpu.memory_space<vmem>>, vector<1x8x32xbf16>
    %1 = vector.shape_cast %0 : vector<1x8x32xbf16> to vector<8x32xbf16>
    %c0_2 = arith.constant 0 : index
    %c0_3 = arith.constant 0 : index
    %c0_4 = arith.constant 0 : index
    %2 = vector.load %arg3[%c0_2, %c0_3, %c0_4] : memref<1x32x1024xbf16, #tpu.memory_space<vmem>>, vector<1x32x1024xbf16>
    %3 = vector.shape_cast %2 : vector<1x32x1024xbf16> to vector<32x1024xbf16>
    %cst = arith.constant dense<0.000000e+00> : vector<8x1024xf32>
    %4 = tpu.matmul %1, %3, %cst {dimension_numbers = #tpu.dot_dimension_numbers<[1], [0], [0], [1], [0, 0, 1, 1], [], []>} : vector<8x32xbf16>, vector<32x1024xbf16>, vector<8x1024xf32> -> vector<8x1024xf32>
    %5 = arith.truncf %4 : vector<8x1024xf32> to vector<8x1024xbf16>
    %c0_5 = arith.constant 0 : index
    %c0_6 = arith.constant 0 : index
    %c0_7 = arith.constant 0 : index
    %6 = vector.load %arg4[%c0_5, %c0_6, %c0_7] : memref<1x8x1024xbf16, #tpu.memory_space<vmem>>, vector<1x8x1024xbf16>
    %7 = vector.shape_cast %6 : vector<1x8x1024xbf16> to vector<8x1024xbf16>
    %8 = vector.shape_cast %5 : vector<8x1024xbf16> to vector<1x8x1024xbf16>
    tpu.vector_store %arg4[%c0_5, %c0_6, %c0_7], %8 {strides = array<i32>} : memref<1x8x1024xbf16, #tpu.memory_space<vmem>>, vector<1x8x1024xbf16>,
    %cst_8 = arith.constant dense<0.000000e+00> : vector<1024xf32>
    %9 = vector.multi_reduction <add>, %4, %cst_8 [0] : vector<8x1024xf32> to vector<1024xf32>
    %10 = vector.shape_cast %9 : vector<1024xf32> to vector<1x1024xf32>
    %11 = arith.mulf %4, %4 : vector<8x1024xf32>
    %cst_9 = arith.constant dense<0.000000e+00> : vector<1024xf32>
    %12 = vector.multi_reduction <add>, %11, %cst_9 [0] : vector<8x1024xf32> to vector<1024xf32>
    %13 = vector.shape_cast %12 : vector<1024xf32> to vector<1x1024xf32>
    %14 = tpu.concatenate %10, %13 in 0 : vector<1x1024xf32>, vector<1x1024xf32> -> vector<2x1024xf32>
    %15 = vector.shape_cast %14 : vector<2x1024xf32> to vector<1x1x2x1024xf32>
    %c0_10 = arith.constant 0 : index
    %c0_11 = arith.constant 0 : index
    %c0_12 = arith.constant 0 : index
    %c0_13 = arith.constant 0 : index
    %16 = vector.load %arg5[%c0_10, %c0_11, %c0_12, %c0_13] : memref<1x1x2x1024xf32, #tpu.memory_space<vmem>>, vector<1x1x2x1024xf32>
    tpu.vector_store %arg5[%c0_10, %c0_11, %c0_12, %c0_13], %15 {strides = array<i32>} : memref<1x1x2x1024xf32, #tpu.memory_space<vmem>>, vector<1x1x2x1024xf32>,
    return
  }
  func.func @transform_0(%arg0: i32, %arg1: i32) -> (i32, i32, i32) {
    %c0_i32 = arith.constant 0 : i32
    %c0_i32_0 = arith.constant 0 : i32
    return %arg0, %arg1, %c0_i32 : i32, i32, i32
  }
  func.func @transform_1(%arg0: i32, %arg1: i32) -> (i32, i32, i32) {
    %c0_i32 = arith.constant 0 : i32
    %c0_i32_0 = arith.constant 0 : i32
    %c0_i32_1 = arith.constant 0 : i32
    return %arg0, %c0_i32, %c0_i32_0 : i32, i32, i32
  }
  func.func @transform_2(%arg0: i32, %arg1: i32) -> (i32, i32, i32) {
    %c0_i32 = arith.constant 0 : i32
    %c0_i32_0 = arith.constant 0 : i32
    return %arg0, %arg1, %c0_i32 : i32, i32, i32
  }
  func.func @transform_3(%arg0: i32, %arg1: i32) -> (i32, i32, i32, i32) {
    %c0_i32 = arith.constant 0 : i32
    %c0_i32_0 = arith.constant 0 : i32
    %c0_i32_1 = arith.constant 0 : i32
    return %arg0, %arg1, %c0_i32, %c0_i32_0 : i32, i32, i32, i32
  }
}

module attributes {stable_mosaic.version = 11 : i64} {
  func.func @_scale_shift_relu_kernel(%arg0: i32, %arg1: memref<8x256xbf16, #tpu.memory_space<vmem>>, %arg2: memref<1x256xf32, #tpu.memory_space<vmem>>, %arg3: memref<1x256xf32, #tpu.memory_space<vmem>>, %arg4: memref<8x256xbf16, #tpu.memory_space<vmem>>) attributes {dimension_semantics = [#tpu.dimension_semantics<parallel>], iteration_bounds = array<i64: 1>, scalar_prefetch = 0 : i64, scratch_operands = 0 : i64, tpu.core_type = #tpu.core_type<tc>, window_params = [{transform_indices = @transform_0, window_bounds = array<i64: 8, 256>}, {pipeline_mode = #tpu.pipeline_mode<synchronous>, transform_indices = @transform_1, window_bounds = array<i64: 1, 256>}, {pipeline_mode = #tpu.pipeline_mode<synchronous>, transform_indices = @transform_2, window_bounds = array<i64: 1, 256>}, {transform_indices = @transform_3, window_bounds = array<i64: 8, 256>}]} {
    %c0 = arith.constant 0 : index
    %c0_0 = arith.constant 0 : index
    %0 = vector.load %arg1[%c0, %c0_0] : memref<8x256xbf16, #tpu.memory_space<vmem>>, vector<8x256xbf16>
    %1 = arith.extf %0 : vector<8x256xbf16> to vector<8x256xf32>
    %c0_1 = arith.constant 0 : index
    %c0_2 = arith.constant 0 : index
    %2 = vector.load %arg2[%c0_1, %c0_2] : memref<1x256xf32, #tpu.memory_space<vmem>>, vector<1x256xf32>
    %3 = vector.broadcast %2 : vector<1x256xf32> to vector<8x256xf32>
    %4 = arith.mulf %1, %3 : vector<8x256xf32>
    %c0_3 = arith.constant 0 : index
    %c0_4 = arith.constant 0 : index
    %5 = vector.load %arg3[%c0_3, %c0_4] : memref<1x256xf32, #tpu.memory_space<vmem>>, vector<1x256xf32>
    %6 = vector.broadcast %5 : vector<1x256xf32> to vector<8x256xf32>
    %7 = arith.addf %4, %6 : vector<8x256xf32>
    %cst = arith.constant 0.000000e+00 : f32
    %8 = vector.broadcast %cst : f32 to vector<8x256xf32>
    %9 = arith.maximumf %7, %8 : vector<8x256xf32>
    %10 = arith.truncf %9 : vector<8x256xf32> to vector<8x256xbf16>
    %c0_5 = arith.constant 0 : index
    %c0_6 = arith.constant 0 : index
    %11 = vector.load %arg4[%c0_5, %c0_6] : memref<8x256xbf16, #tpu.memory_space<vmem>>, vector<8x256xbf16>
    tpu.vector_store %arg4[%c0_5, %c0_6], %10 {strides = array<i32>} : memref<8x256xbf16, #tpu.memory_space<vmem>>, vector<8x256xbf16>,
    return
  }
  func.func @transform_0(%arg0: i32) -> (i32, i32) {
    %c0_i32 = arith.constant 0 : i32
    %c0_i32_0 = arith.constant 0 : i32
    return %arg0, %c0_i32 : i32, i32
  }
  func.func @transform_1(%arg0: i32) -> (i32, i32) {
    %c0_i32 = arith.constant 0 : i32
    %c0_i32_0 = arith.constant 0 : i32
    %c0_i32_1 = arith.constant 0 : i32
    return %c0_i32, %c0_i32_0 : i32, i32
  }
  func.func @transform_2(%arg0: i32) -> (i32, i32) {
    %c0_i32 = arith.constant 0 : i32
    %c0_i32_0 = arith.constant 0 : i32
    %c0_i32_1 = arith.constant 0 : i32
    return %c0_i32, %c0_i32_0 : i32, i32
  }
  func.func @transform_3(%arg0: i32) -> (i32, i32) {
    %c0_i32 = arith.constant 0 : i32
    %c0_i32_0 = arith.constant 0 : i32
    return %arg0, %c0_i32 : i32, i32
  }
}

module attributes {stable_mosaic.version = 11 : i64} {
  func.func @_gemm_stats_kernel(%arg0: i32, %arg1: i32, %arg2: memref<1x32x256xbf16, #tpu.memory_space<vmem>>, %arg3: memref<1x256x32xbf16, #tpu.memory_space<vmem>>, %arg4: memref<1x32x32xbf16, #tpu.memory_space<vmem>>, %arg5: memref<1x1x2x32xf32, #tpu.memory_space<vmem>>) attributes {dimension_semantics = [#tpu.dimension_semantics<parallel>, #tpu.dimension_semantics<parallel>], iteration_bounds = array<i64: 4, 1>, scalar_prefetch = 0 : i64, scratch_operands = 0 : i64, tpu.core_type = #tpu.core_type<tc>, window_params = [{transform_indices = @transform_0, window_bounds = array<i64: 1, 32, 256>}, {transform_indices = @transform_1, window_bounds = array<i64: 1, 256, 32>}, {transform_indices = @transform_2, window_bounds = array<i64: 1, 32, 32>}, {transform_indices = @transform_3, window_bounds = array<i64: 1, 1, 2, 32>}]} {
    %c0 = arith.constant 0 : index
    %c0_0 = arith.constant 0 : index
    %c0_1 = arith.constant 0 : index
    %0 = vector.load %arg2[%c0, %c0_0, %c0_1] : memref<1x32x256xbf16, #tpu.memory_space<vmem>>, vector<1x32x256xbf16>
    %1 = vector.shape_cast %0 : vector<1x32x256xbf16> to vector<32x256xbf16>
    %c0_2 = arith.constant 0 : index
    %c0_3 = arith.constant 0 : index
    %c0_4 = arith.constant 0 : index
    %2 = vector.load %arg3[%c0_2, %c0_3, %c0_4] : memref<1x256x32xbf16, #tpu.memory_space<vmem>>, vector<1x256x32xbf16>
    %3 = vector.shape_cast %2 : vector<1x256x32xbf16> to vector<256x32xbf16>
    %cst = arith.constant dense<0.000000e+00> : vector<32x32xf32>
    %4 = tpu.matmul %1, %3, %cst {dimension_numbers = #tpu.dot_dimension_numbers<[1], [0], [0], [1], [0, 0, 1, 1], [], []>} : vector<32x256xbf16>, vector<256x32xbf16>, vector<32x32xf32> -> vector<32x32xf32>
    %5 = arith.truncf %4 : vector<32x32xf32> to vector<32x32xbf16>
    %c0_5 = arith.constant 0 : index
    %c0_6 = arith.constant 0 : index
    %c0_7 = arith.constant 0 : index
    %6 = vector.load %arg4[%c0_5, %c0_6, %c0_7] : memref<1x32x32xbf16, #tpu.memory_space<vmem>>, vector<1x32x32xbf16>
    %7 = vector.shape_cast %6 : vector<1x32x32xbf16> to vector<32x32xbf16>
    %8 = vector.shape_cast %5 : vector<32x32xbf16> to vector<1x32x32xbf16>
    tpu.vector_store %arg4[%c0_5, %c0_6, %c0_7], %8 {strides = array<i32>} : memref<1x32x32xbf16, #tpu.memory_space<vmem>>, vector<1x32x32xbf16>,
    %cst_8 = arith.constant dense<0.000000e+00> : vector<32xf32>
    %9 = vector.multi_reduction <add>, %4, %cst_8 [0] : vector<32x32xf32> to vector<32xf32>
    %10 = vector.shape_cast %9 : vector<32xf32> to vector<1x32xf32>
    %11 = arith.mulf %4, %4 : vector<32x32xf32>
    %cst_9 = arith.constant dense<0.000000e+00> : vector<32xf32>
    %12 = vector.multi_reduction <add>, %11, %cst_9 [0] : vector<32x32xf32> to vector<32xf32>
    %13 = vector.shape_cast %12 : vector<32xf32> to vector<1x32xf32>
    %14 = tpu.concatenate %10, %13 in 0 : vector<1x32xf32>, vector<1x32xf32> -> vector<2x32xf32>
    %15 = vector.shape_cast %14 : vector<2x32xf32> to vector<1x1x2x32xf32>
    %c0_10 = arith.constant 0 : index
    %c0_11 = arith.constant 0 : index
    %c0_12 = arith.constant 0 : index
    %c0_13 = arith.constant 0 : index
    %16 = vector.load %arg5[%c0_10, %c0_11, %c0_12, %c0_13] : memref<1x1x2x32xf32, #tpu.memory_space<vmem>>, vector<1x1x2x32xf32>
    tpu.vector_store %arg5[%c0_10, %c0_11, %c0_12, %c0_13], %15 {strides = array<i32>} : memref<1x1x2x32xf32, #tpu.memory_space<vmem>>, vector<1x1x2x32xf32>,
    return
  }
  func.func @transform_0(%arg0: i32, %arg1: i32) -> (i32, i32, i32) {
    %c0_i32 = arith.constant 0 : i32
    %c0_i32_0 = arith.constant 0 : i32
    return %arg0, %arg1, %c0_i32 : i32, i32, i32
  }
  func.func @transform_1(%arg0: i32, %arg1: i32) -> (i32, i32, i32) {
    %c0_i32 = arith.constant 0 : i32
    %c0_i32_0 = arith.constant 0 : i32
    %c0_i32_1 = arith.constant 0 : i32
    return %arg0, %c0_i32, %c0_i32_0 : i32, i32, i32
  }
  func.func @transform_2(%arg0: i32, %arg1: i32) -> (i32, i32, i32) {
    %c0_i32 = arith.constant 0 : i32
    %c0_i32_0 = arith.constant 0 : i32
    return %arg0, %arg1, %c0_i32 : i32, i32, i32
  }
  func.func @transform_3(%arg0: i32, %arg1: i32) -> (i32, i32, i32, i32) {
    %c0_i32 = arith.constant 0 : i32
    %c0_i32_0 = arith.constant 0 : i32
    %c0_i32_1 = arith.constant 0 : i32
    return %arg0, %arg1, %c0_i32, %c0_i32_0 : i32, i32, i32, i32
  }
}

module attributes {stable_mosaic.version = 11 : i64} {
  func.func @_scale_shift_relu_kernel(%arg0: i32, %arg1: memref<16x256xbf16, #tpu.memory_space<vmem>>, %arg2: memref<1x256xf32, #tpu.memory_space<vmem>>, %arg3: memref<1x256xf32, #tpu.memory_space<vmem>>, %arg4: memref<16x256xbf16, #tpu.memory_space<vmem>>) attributes {dimension_semantics = [#tpu.dimension_semantics<parallel>], iteration_bounds = array<i64: 1>, scalar_prefetch = 0 : i64, scratch_operands = 0 : i64, tpu.core_type = #tpu.core_type<tc>, window_params = [{transform_indices = @transform_0, window_bounds = array<i64: 16, 256>}, {pipeline_mode = #tpu.pipeline_mode<synchronous>, transform_indices = @transform_1, window_bounds = array<i64: 1, 256>}, {pipeline_mode = #tpu.pipeline_mode<synchronous>, transform_indices = @transform_2, window_bounds = array<i64: 1, 256>}, {transform_indices = @transform_3, window_bounds = array<i64: 16, 256>}]} {
    %c0 = arith.constant 0 : index
    %c0_0 = arith.constant 0 : index
    %0 = vector.load %arg1[%c0, %c0_0] : memref<16x256xbf16, #tpu.memory_space<vmem>>, vector<16x256xbf16>
    %1 = arith.extf %0 : vector<16x256xbf16> to vector<16x256xf32>
    %c0_1 = arith.constant 0 : index
    %c0_2 = arith.constant 0 : index
    %2 = vector.load %arg2[%c0_1, %c0_2] : memref<1x256xf32, #tpu.memory_space<vmem>>, vector<1x256xf32>
    %3 = vector.broadcast %2 : vector<1x256xf32> to vector<16x256xf32>
    %4 = arith.mulf %1, %3 : vector<16x256xf32>
    %c0_3 = arith.constant 0 : index
    %c0_4 = arith.constant 0 : index
    %5 = vector.load %arg3[%c0_3, %c0_4] : memref<1x256xf32, #tpu.memory_space<vmem>>, vector<1x256xf32>
    %6 = vector.broadcast %5 : vector<1x256xf32> to vector<16x256xf32>
    %7 = arith.addf %4, %6 : vector<16x256xf32>
    %cst = arith.constant 0.000000e+00 : f32
    %8 = vector.broadcast %cst : f32 to vector<16x256xf32>
    %9 = arith.maximumf %7, %8 : vector<16x256xf32>
    %10 = arith.truncf %9 : vector<16x256xf32> to vector<16x256xbf16>
    %c0_5 = arith.constant 0 : index
    %c0_6 = arith.constant 0 : index
    %11 = vector.load %arg4[%c0_5, %c0_6] : memref<16x256xbf16, #tpu.memory_space<vmem>>, vector<16x256xbf16>
    tpu.vector_store %arg4[%c0_5, %c0_6], %10 {strides = array<i32>} : memref<16x256xbf16, #tpu.memory_space<vmem>>, vector<16x256xbf16>,
    return
  }
  func.func @transform_0(%arg0: i32) -> (i32, i32) {
    %c0_i32 = arith.constant 0 : i32
    %c0_i32_0 = arith.constant 0 : i32
    return %arg0, %c0_i32 : i32, i32
  }
  func.func @transform_1(%arg0: i32) -> (i32, i32) {
    %c0_i32 = arith.constant 0 : i32
    %c0_i32_0 = arith.constant 0 : i32
    %c0_i32_1 = arith.constant 0 : i32
    return %c0_i32, %c0_i32_0 : i32, i32
  }
  func.func @transform_2(%arg0: i32) -> (i32, i32) {
    %c0_i32 = arith.constant 0 : i32
    %c0_i32_0 = arith.constant 0 : i32
    %c0_i32_1 = arith.constant 0 : i32
    return %c0_i32, %c0_i32_0 : i32, i32
  }
  func.func @transform_3(%arg0: i32) -> (i32, i32) {
    %c0_i32 = arith.constant 0 : i32
    %c0_i32_0 = arith.constant 0 : i32
    return %arg0, %c0_i32 : i32, i32
  }
}

module attributes {stable_mosaic.version = 11 : i64} {
  func.func @_gemm_stats_kernel(%arg0: i32, %arg1: i32, %arg2: memref<1x128x128xbf16, #tpu.memory_space<vmem>>, %arg3: memref<1x128x16xbf16, #tpu.memory_space<vmem>>, %arg4: memref<1x128x16xbf16, #tpu.memory_space<vmem>>, %arg5: memref<1x1x2x16xf32, #tpu.memory_space<vmem>>) attributes {dimension_semantics = [#tpu.dimension_semantics<parallel>, #tpu.dimension_semantics<parallel>], iteration_bounds = array<i64: 4, 1>, scalar_prefetch = 0 : i64, scratch_operands = 0 : i64, tpu.core_type = #tpu.core_type<tc>, window_params = [{transform_indices = @transform_0, window_bounds = array<i64: 1, 128, 128>}, {transform_indices = @transform_1, window_bounds = array<i64: 1, 128, 16>}, {transform_indices = @transform_2, window_bounds = array<i64: 1, 128, 16>}, {transform_indices = @transform_3, window_bounds = array<i64: 1, 1, 2, 16>}]} {
    %c0 = arith.constant 0 : index
    %c0_0 = arith.constant 0 : index
    %c0_1 = arith.constant 0 : index
    %0 = vector.load %arg2[%c0, %c0_0, %c0_1] : memref<1x128x128xbf16, #tpu.memory_space<vmem>>, vector<1x128x128xbf16>
    %1 = vector.shape_cast %0 : vector<1x128x128xbf16> to vector<128x128xbf16>
    %c0_2 = arith.constant 0 : index
    %c0_3 = arith.constant 0 : index
    %c0_4 = arith.constant 0 : index
    %2 = vector.load %arg3[%c0_2, %c0_3, %c0_4] : memref<1x128x16xbf16, #tpu.memory_space<vmem>>, vector<1x128x16xbf16>
    %3 = vector.shape_cast %2 : vector<1x128x16xbf16> to vector<128x16xbf16>
    %cst = arith.constant dense<0.000000e+00> : vector<128x16xf32>
    %4 = tpu.matmul %1, %3, %cst {dimension_numbers = #tpu.dot_dimension_numbers<[1], [0], [0], [1], [0, 0, 1, 1], [], []>} : vector<128x128xbf16>, vector<128x16xbf16>, vector<128x16xf32> -> vector<128x16xf32>
    %5 = arith.truncf %4 : vector<128x16xf32> to vector<128x16xbf16>
    %c0_5 = arith.constant 0 : index
    %c0_6 = arith.constant 0 : index
    %c0_7 = arith.constant 0 : index
    %6 = vector.load %arg4[%c0_5, %c0_6, %c0_7] : memref<1x128x16xbf16, #tpu.memory_space<vmem>>, vector<1x128x16xbf16>
    %7 = vector.shape_cast %6 : vector<1x128x16xbf16> to vector<128x16xbf16>
    %8 = vector.shape_cast %5 : vector<128x16xbf16> to vector<1x128x16xbf16>
    tpu.vector_store %arg4[%c0_5, %c0_6, %c0_7], %8 {strides = array<i32>} : memref<1x128x16xbf16, #tpu.memory_space<vmem>>, vector<1x128x16xbf16>,
    %cst_8 = arith.constant dense<0.000000e+00> : vector<16xf32>
    %9 = vector.multi_reduction <add>, %4, %cst_8 [0] : vector<128x16xf32> to vector<16xf32>
    %10 = vector.shape_cast %9 : vector<16xf32> to vector<1x16xf32>
    %11 = arith.mulf %4, %4 : vector<128x16xf32>
    %cst_9 = arith.constant dense<0.000000e+00> : vector<16xf32>
    %12 = vector.multi_reduction <add>, %11, %cst_9 [0] : vector<128x16xf32> to vector<16xf32>
    %13 = vector.shape_cast %12 : vector<16xf32> to vector<1x16xf32>
    %14 = tpu.concatenate %10, %13 in 0 : vector<1x16xf32>, vector<1x16xf32> -> vector<2x16xf32>
    %15 = vector.shape_cast %14 : vector<2x16xf32> to vector<1x1x2x16xf32>
    %c0_10 = arith.constant 0 : index
    %c0_11 = arith.constant 0 : index
    %c0_12 = arith.constant 0 : index
    %c0_13 = arith.constant 0 : index
    %16 = vector.load %arg5[%c0_10, %c0_11, %c0_12, %c0_13] : memref<1x1x2x16xf32, #tpu.memory_space<vmem>>, vector<1x1x2x16xf32>
    tpu.vector_store %arg5[%c0_10, %c0_11, %c0_12, %c0_13], %15 {strides = array<i32>} : memref<1x1x2x16xf32, #tpu.memory_space<vmem>>, vector<1x1x2x16xf32>,
    return
  }
  func.func @transform_0(%arg0: i32, %arg1: i32) -> (i32, i32, i32) {
    %c0_i32 = arith.constant 0 : i32
    %c0_i32_0 = arith.constant 0 : i32
    return %arg0, %arg1, %c0_i32 : i32, i32, i32
  }
  func.func @transform_1(%arg0: i32, %arg1: i32) -> (i32, i32, i32) {
    %c0_i32 = arith.constant 0 : i32
    %c0_i32_0 = arith.constant 0 : i32
    %c0_i32_1 = arith.constant 0 : i32
    return %arg0, %c0_i32, %c0_i32_0 : i32, i32, i32
  }
  func.func @transform_2(%arg0: i32, %arg1: i32) -> (i32, i32, i32) {
    %c0_i32 = arith.constant 0 : i32
    %c0_i32_0 = arith.constant 0 : i32
    return %arg0, %arg1, %c0_i32 : i32, i32, i32
  }
  func.func @transform_3(%arg0: i32, %arg1: i32) -> (i32, i32, i32, i32) {
    %c0_i32 = arith.constant 0 : i32
    %c0_i32_0 = arith.constant 0 : i32
    %c0_i32_1 = arith.constant 0 : i32
    return %arg0, %arg1, %c0_i32, %c0_i32_0 : i32, i32, i32, i32
  }
}

module attributes {stable_mosaic.version = 11 : i64} {
  func.func @_scale_shift_relu_kernel(%arg0: i32, %arg1: memref<32x256xbf16, #tpu.memory_space<vmem>>, %arg2: memref<1x256xf32, #tpu.memory_space<vmem>>, %arg3: memref<1x256xf32, #tpu.memory_space<vmem>>, %arg4: memref<32x256xbf16, #tpu.memory_space<vmem>>) attributes {dimension_semantics = [#tpu.dimension_semantics<parallel>], iteration_bounds = array<i64: 1>, scalar_prefetch = 0 : i64, scratch_operands = 0 : i64, tpu.core_type = #tpu.core_type<tc>, window_params = [{transform_indices = @transform_0, window_bounds = array<i64: 32, 256>}, {pipeline_mode = #tpu.pipeline_mode<synchronous>, transform_indices = @transform_1, window_bounds = array<i64: 1, 256>}, {pipeline_mode = #tpu.pipeline_mode<synchronous>, transform_indices = @transform_2, window_bounds = array<i64: 1, 256>}, {transform_indices = @transform_3, window_bounds = array<i64: 32, 256>}]} {
    %c0 = arith.constant 0 : index
    %c0_0 = arith.constant 0 : index
    %0 = vector.load %arg1[%c0, %c0_0] : memref<32x256xbf16, #tpu.memory_space<vmem>>, vector<32x256xbf16>
    %1 = arith.extf %0 : vector<32x256xbf16> to vector<32x256xf32>
    %c0_1 = arith.constant 0 : index
    %c0_2 = arith.constant 0 : index
    %2 = vector.load %arg2[%c0_1, %c0_2] : memref<1x256xf32, #tpu.memory_space<vmem>>, vector<1x256xf32>
    %3 = vector.broadcast %2 : vector<1x256xf32> to vector<32x256xf32>
    %4 = arith.mulf %1, %3 : vector<32x256xf32>
    %c0_3 = arith.constant 0 : index
    %c0_4 = arith.constant 0 : index
    %5 = vector.load %arg3[%c0_3, %c0_4] : memref<1x256xf32, #tpu.memory_space<vmem>>, vector<1x256xf32>
    %6 = vector.broadcast %5 : vector<1x256xf32> to vector<32x256xf32>
    %7 = arith.addf %4, %6 : vector<32x256xf32>
    %cst = arith.constant 0.000000e+00 : f32
    %8 = vector.broadcast %cst : f32 to vector<32x256xf32>
    %9 = arith.maximumf %7, %8 : vector<32x256xf32>
    %10 = arith.truncf %9 : vector<32x256xf32> to vector<32x256xbf16>
    %c0_5 = arith.constant 0 : index
    %c0_6 = arith.constant 0 : index
    %11 = vector.load %arg4[%c0_5, %c0_6] : memref<32x256xbf16, #tpu.memory_space<vmem>>, vector<32x256xbf16>
    tpu.vector_store %arg4[%c0_5, %c0_6], %10 {strides = array<i32>} : memref<32x256xbf16, #tpu.memory_space<vmem>>, vector<32x256xbf16>,
    return
  }
  func.func @transform_0(%arg0: i32) -> (i32, i32) {
    %c0_i32 = arith.constant 0 : i32
    %c0_i32_0 = arith.constant 0 : i32
    return %arg0, %c0_i32 : i32, i32
  }
  func.func @transform_1(%arg0: i32) -> (i32, i32) {
    %c0_i32 = arith.constant 0 : i32
    %c0_i32_0 = arith.constant 0 : i32
    %c0_i32_1 = arith.constant 0 : i32
    return %c0_i32, %c0_i32_0 : i32, i32
  }
  func.func @transform_2(%arg0: i32) -> (i32, i32) {
    %c0_i32 = arith.constant 0 : i32
    %c0_i32_0 = arith.constant 0 : i32
    %c0_i32_1 = arith.constant 0 : i32
    return %c0_i32, %c0_i32_0 : i32, i32
  }
  func.func @transform_3(%arg0: i32) -> (i32, i32) {
    %c0_i32 = arith.constant 0 : i32
    %c0_i32_0 = arith.constant 0 : i32
    return %arg0, %c0_i32 : i32, i32
  }
}

module attributes {stable_mosaic.version = 11 : i64} {
  func.func @_gemm_stats_kernel(%arg0: i32, %arg1: i32, %arg2: memref<1x512x64xbf16, #tpu.memory_space<vmem>>, %arg3: memref<1x64x8xbf16, #tpu.memory_space<vmem>>, %arg4: memref<1x512x8xbf16, #tpu.memory_space<vmem>>, %arg5: memref<1x1x2x8xf32, #tpu.memory_space<vmem>>) attributes {dimension_semantics = [#tpu.dimension_semantics<parallel>, #tpu.dimension_semantics<parallel>], iteration_bounds = array<i64: 4, 1>, scalar_prefetch = 0 : i64, scratch_operands = 0 : i64, tpu.core_type = #tpu.core_type<tc>, window_params = [{transform_indices = @transform_0, window_bounds = array<i64: 1, 512, 64>}, {transform_indices = @transform_1, window_bounds = array<i64: 1, 64, 8>}, {transform_indices = @transform_2, window_bounds = array<i64: 1, 512, 8>}, {transform_indices = @transform_3, window_bounds = array<i64: 1, 1, 2, 8>}]} {
    %c0 = arith.constant 0 : index
    %c0_0 = arith.constant 0 : index
    %c0_1 = arith.constant 0 : index
    %0 = vector.load %arg2[%c0, %c0_0, %c0_1] : memref<1x512x64xbf16, #tpu.memory_space<vmem>>, vector<1x512x64xbf16>
    %1 = vector.shape_cast %0 : vector<1x512x64xbf16> to vector<512x64xbf16>
    %c0_2 = arith.constant 0 : index
    %c0_3 = arith.constant 0 : index
    %c0_4 = arith.constant 0 : index
    %2 = vector.load %arg3[%c0_2, %c0_3, %c0_4] : memref<1x64x8xbf16, #tpu.memory_space<vmem>>, vector<1x64x8xbf16>
    %3 = vector.shape_cast %2 : vector<1x64x8xbf16> to vector<64x8xbf16>
    %cst = arith.constant dense<0.000000e+00> : vector<512x8xf32>
    %4 = tpu.matmul %1, %3, %cst {dimension_numbers = #tpu.dot_dimension_numbers<[1], [0], [0], [1], [0, 0, 1, 1], [], []>} : vector<512x64xbf16>, vector<64x8xbf16>, vector<512x8xf32> -> vector<512x8xf32>
    %5 = arith.truncf %4 : vector<512x8xf32> to vector<512x8xbf16>
    %c0_5 = arith.constant 0 : index
    %c0_6 = arith.constant 0 : index
    %c0_7 = arith.constant 0 : index
    %6 = vector.load %arg4[%c0_5, %c0_6, %c0_7] : memref<1x512x8xbf16, #tpu.memory_space<vmem>>, vector<1x512x8xbf16>
    %7 = vector.shape_cast %6 : vector<1x512x8xbf16> to vector<512x8xbf16>
    %8 = vector.shape_cast %5 : vector<512x8xbf16> to vector<1x512x8xbf16>
    tpu.vector_store %arg4[%c0_5, %c0_6, %c0_7], %8 {strides = array<i32>} : memref<1x512x8xbf16, #tpu.memory_space<vmem>>, vector<1x512x8xbf16>,
    %cst_8 = arith.constant dense<0.000000e+00> : vector<8xf32>
    %9 = vector.multi_reduction <add>, %4, %cst_8 [0] : vector<512x8xf32> to vector<8xf32>
    %10 = vector.shape_cast %9 : vector<8xf32> to vector<1x8xf32>
    %11 = arith.mulf %4, %4 : vector<512x8xf32>
    %cst_9 = arith.constant dense<0.000000e+00> : vector<8xf32>
    %12 = vector.multi_reduction <add>, %11, %cst_9 [0] : vector<512x8xf32> to vector<8xf32>
    %13 = vector.shape_cast %12 : vector<8xf32> to vector<1x8xf32>
    %14 = tpu.concatenate %10, %13 in 0 : vector<1x8xf32>, vector<1x8xf32> -> vector<2x8xf32>
    %15 = vector.shape_cast %14 : vector<2x8xf32> to vector<1x1x2x8xf32>
    %c0_10 = arith.constant 0 : index
    %c0_11 = arith.constant 0 : index
    %c0_12 = arith.constant 0 : index
    %c0_13 = arith.constant 0 : index
    %16 = vector.load %arg5[%c0_10, %c0_11, %c0_12, %c0_13] : memref<1x1x2x8xf32, #tpu.memory_space<vmem>>, vector<1x1x2x8xf32>
    tpu.vector_store %arg5[%c0_10, %c0_11, %c0_12, %c0_13], %15 {strides = array<i32>} : memref<1x1x2x8xf32, #tpu.memory_space<vmem>>, vector<1x1x2x8xf32>,
    return
  }
  func.func @transform_0(%arg0: i32, %arg1: i32) -> (i32, i32, i32) {
    %c0_i32 = arith.constant 0 : i32
    %c0_i32_0 = arith.constant 0 : i32
    return %arg0, %arg1, %c0_i32 : i32, i32, i32
  }
  func.func @transform_1(%arg0: i32, %arg1: i32) -> (i32, i32, i32) {
    %c0_i32 = arith.constant 0 : i32
    %c0_i32_0 = arith.constant 0 : i32
    %c0_i32_1 = arith.constant 0 : i32
    return %arg0, %c0_i32, %c0_i32_0 : i32, i32, i32
  }
  func.func @transform_2(%arg0: i32, %arg1: i32) -> (i32, i32, i32) {
    %c0_i32 = arith.constant 0 : i32
    %c0_i32_0 = arith.constant 0 : i32
    return %arg0, %arg1, %c0_i32 : i32, i32, i32
  }
  func.func @transform_3(%arg0: i32, %arg1: i32) -> (i32, i32, i32, i32) {
    %c0_i32 = arith.constant 0 : i32
    %c0_i32_0 = arith.constant 0 : i32
    %c0_i32_1 = arith.constant 0 : i32
    return %arg0, %arg1, %c0_i32, %c0_i32_0 : i32, i32, i32, i32
  }
}

module attributes {stable_mosaic.version = 11 : i64} {
  func.func @_scale_shift_relu_kernel(%arg0: i32, %arg1: memref<64x256xbf16, #tpu.memory_space<vmem>>, %arg2: memref<1x256xf32, #tpu.memory_space<vmem>>, %arg3: memref<1x256xf32, #tpu.memory_space<vmem>>, %arg4: memref<64x256xbf16, #tpu.memory_space<vmem>>) attributes {dimension_semantics = [#tpu.dimension_semantics<parallel>], iteration_bounds = array<i64: 1>, scalar_prefetch = 0 : i64, scratch_operands = 0 : i64, tpu.core_type = #tpu.core_type<tc>, window_params = [{transform_indices = @transform_0, window_bounds = array<i64: 64, 256>}, {pipeline_mode = #tpu.pipeline_mode<synchronous>, transform_indices = @transform_1, window_bounds = array<i64: 1, 256>}, {pipeline_mode = #tpu.pipeline_mode<synchronous>, transform_indices = @transform_2, window_bounds = array<i64: 1, 256>}, {transform_indices = @transform_3, window_bounds = array<i64: 64, 256>}]} {
    %c0 = arith.constant 0 : index
    %c0_0 = arith.constant 0 : index
    %0 = vector.load %arg1[%c0, %c0_0] : memref<64x256xbf16, #tpu.memory_space<vmem>>, vector<64x256xbf16>
    %1 = arith.extf %0 : vector<64x256xbf16> to vector<64x256xf32>
    %c0_1 = arith.constant 0 : index
    %c0_2 = arith.constant 0 : index
    %2 = vector.load %arg2[%c0_1, %c0_2] : memref<1x256xf32, #tpu.memory_space<vmem>>, vector<1x256xf32>
    %3 = vector.broadcast %2 : vector<1x256xf32> to vector<64x256xf32>
    %4 = arith.mulf %1, %3 : vector<64x256xf32>
    %c0_3 = arith.constant 0 : index
    %c0_4 = arith.constant 0 : index
    %5 = vector.load %arg3[%c0_3, %c0_4] : memref<1x256xf32, #tpu.memory_space<vmem>>, vector<1x256xf32>
    %6 = vector.broadcast %5 : vector<1x256xf32> to vector<64x256xf32>
    %7 = arith.addf %4, %6 : vector<64x256xf32>
    %cst = arith.constant 0.000000e+00 : f32
    %8 = vector.broadcast %cst : f32 to vector<64x256xf32>
    %9 = arith.maximumf %7, %8 : vector<64x256xf32>
    %10 = arith.truncf %9 : vector<64x256xf32> to vector<64x256xbf16>
    %c0_5 = arith.constant 0 : index
    %c0_6 = arith.constant 0 : index
    %11 = vector.load %arg4[%c0_5, %c0_6] : memref<64x256xbf16, #tpu.memory_space<vmem>>, vector<64x256xbf16>
    tpu.vector_store %arg4[%c0_5, %c0_6], %10 {strides = array<i32>} : memref<64x256xbf16, #tpu.memory_space<vmem>>, vector<64x256xbf16>,
    return
  }
  func.func @transform_0(%arg0: i32) -> (i32, i32) {
    %c0_i32 = arith.constant 0 : i32
    %c0_i32_0 = arith.constant 0 : i32
    return %arg0, %c0_i32 : i32, i32
  }
  func.func @transform_1(%arg0: i32) -> (i32, i32) {
    %c0_i32 = arith.constant 0 : i32
    %c0_i32_0 = arith.constant 0 : i32
    %c0_i32_1 = arith.constant 0 : i32
    return %c0_i32, %c0_i32_0 : i32, i32
  }
  func.func @transform_2(%arg0: i32) -> (i32, i32) {
    %c0_i32 = arith.constant 0 : i32
    %c0_i32_0 = arith.constant 0 : i32
    %c0_i32_1 = arith.constant 0 : i32
    return %c0_i32, %c0_i32_0 : i32, i32
  }
  func.func @transform_3(%arg0: i32) -> (i32, i32) {
    %c0_i32 = arith.constant 0 : i32
    %c0_i32_0 = arith.constant 0 : i32
    return %arg0, %c0_i32 : i32, i32
  }
}

module attributes {stable_mosaic.version = 11 : i64} {
  func.func @_gemm_bias_tanh_kernel(%arg0: i32, %arg1: i32, %arg2: memref<1x512x32xbf16, #tpu.memory_space<vmem>>, %arg3: memref<1x32x3xbf16, #tpu.memory_space<vmem>>, %arg4: memref<1x1x3xf32, #tpu.memory_space<vmem>>, %arg5: memref<1x512x3xf32, #tpu.memory_space<vmem>>) attributes {dimension_semantics = [#tpu.dimension_semantics<parallel>, #tpu.dimension_semantics<parallel>], iteration_bounds = array<i64: 4, 4>, scalar_prefetch = 0 : i64, scratch_operands = 0 : i64, tpu.core_type = #tpu.core_type<tc>, window_params = [{transform_indices = @transform_0, window_bounds = array<i64: 1, 512, 32>}, {transform_indices = @transform_1, window_bounds = array<i64: 1, 32, 3>}, {pipeline_mode = #tpu.pipeline_mode<synchronous>, transform_indices = @transform_2, window_bounds = array<i64: 1, 1, 3>}, {transform_indices = @transform_3, window_bounds = array<i64: 1, 512, 3>}]} {
    %c0 = arith.constant 0 : index
    %c0_0 = arith.constant 0 : index
    %c0_1 = arith.constant 0 : index
    %0 = vector.load %arg2[%c0, %c0_0, %c0_1] : memref<1x512x32xbf16, #tpu.memory_space<vmem>>, vector<1x512x32xbf16>
    %1 = vector.shape_cast %0 : vector<1x512x32xbf16> to vector<512x32xbf16>
    %c0_2 = arith.constant 0 : index
    %c0_3 = arith.constant 0 : index
    %c0_4 = arith.constant 0 : index
    %2 = vector.load %arg3[%c0_2, %c0_3, %c0_4] : memref<1x32x3xbf16, #tpu.memory_space<vmem>>, vector<1x32x3xbf16>
    %3 = vector.shape_cast %2 : vector<1x32x3xbf16> to vector<32x3xbf16>
    %cst = arith.constant dense<0.000000e+00> : vector<512x3xf32>
    %4 = tpu.matmul %1, %3, %cst {dimension_numbers = #tpu.dot_dimension_numbers<[1], [0], [0], [1], [0, 0, 1, 1], [], []>} : vector<512x32xbf16>, vector<32x3xbf16>, vector<512x3xf32> -> vector<512x3xf32>
    %c0_5 = arith.constant 0 : index
    %c0_6 = arith.constant 0 : index
    %c0_7 = arith.constant 0 : index
    %5 = vector.load %arg4[%c0_5, %c0_6, %c0_7] : memref<1x1x3xf32, #tpu.memory_space<vmem>>, vector<1x1x3xf32>
    %6 = vector.shape_cast %5 : vector<1x1x3xf32> to vector<1x3xf32>
    %7 = vector.broadcast %6 : vector<1x3xf32> to vector<512x3xf32>
    %8 = arith.addf %4, %7 : vector<512x3xf32>
    %9 = math.tanh %8 : vector<512x3xf32>
    %c0_8 = arith.constant 0 : index
    %c0_9 = arith.constant 0 : index
    %c0_10 = arith.constant 0 : index
    %10 = vector.load %arg5[%c0_8, %c0_9, %c0_10] : memref<1x512x3xf32, #tpu.memory_space<vmem>>, vector<1x512x3xf32>
    %11 = vector.shape_cast %10 : vector<1x512x3xf32> to vector<512x3xf32>
    %12 = vector.shape_cast %9 : vector<512x3xf32> to vector<1x512x3xf32>
    tpu.vector_store %arg5[%c0_8, %c0_9, %c0_10], %12 {strides = array<i32>} : memref<1x512x3xf32, #tpu.memory_space<vmem>>, vector<1x512x3xf32>,
    return
  }
  func.func @transform_0(%arg0: i32, %arg1: i32) -> (i32, i32, i32) {
    %c0_i32 = arith.constant 0 : i32
    %c0_i32_0 = arith.constant 0 : i32
    return %arg0, %arg1, %c0_i32 : i32, i32, i32
  }
  func.func @transform_1(%arg0: i32, %arg1: i32) -> (i32, i32, i32) {
    %c0_i32 = arith.constant 0 : i32
    %c0_i32_0 = arith.constant 0 : i32
    %c0_i32_1 = arith.constant 0 : i32
    return %arg0, %c0_i32, %c0_i32_0 : i32, i32, i32
  }
  func.func @transform_2(%arg0: i32, %arg1: i32) -> (i32, i32, i32) {
    %c0_i32 = arith.constant 0 : i32
    %c0_i32_0 = arith.constant 0 : i32
    %c0_i32_1 = arith.constant 0 : i32
    %c0_i32_2 = arith.constant 0 : i32
    return %c0_i32, %c0_i32_0, %c0_i32_1 : i32, i32, i32
  }
  func.func @transform_3(%arg0: i32, %arg1: i32) -> (i32, i32, i32) {
    %c0_i32 = arith.constant 0 : i32
    %c0_i32_0 = arith.constant 0 : i32
    return %arg0, %arg1, %c0_i32 : i32, i32, i32
  }
}

</mosaic_0001>

<bundles_post_ra>
// kernel: squeeze.11
= control target key start
LH: loop header
LB: loop body
LE: loop exit
PB: predicated region body
PF: predicated region fallthrough
CT: control target
= control target key end

     0   :  { %s229_s0 = inlined_call_operand.vmem [shape: bf16[1,2,1024], index: 0, kind: input, shape index: {}]   ;;  %s230_s1 = inlined_call_operand.vmem [shape: bf16[8,256], index: 1, kind: output, shape index: {}]  }
   0x1   :  { %v179_v0 = vld [vmem:[%s229_s0 + $0x7] sm:$0x1]  ;;  %v180_v1 = vld [vmem:[%s229_s0 + $0x6] sm:$0x1]  ;;  %v181_v2 = vld [vmem:[%s229_s0 + $0x5] sm:$0x1] }
   0x2   :  { %v17_v3 = vunpack.c.l.bf16 %v179_v0  ;;  %v33_v4 = vunpack.c.l.bf16 %v180_v1  ;;  %v49_v5 = vunpack.c.l.bf16 %v181_v2  ;;  %v182_v6 = vld [vmem:[%s229_s0 + $0x4] sm:$0x1]  ;;  %v183_v7 = vld [vmem:[%s229_s0 + $0x3] sm:$0x1]  ;;  %v184_v8 = vld [vmem:[%s229_s0 + $0x2] sm:$0x1] }
   0x3   :  { %v65_v9 = vunpack.c.l.bf16 %v182_v6  ;;  %v81_v10 = vunpack.c.l.bf16 %v183_v7  ;;  %v97_v11 = vunpack.c.l.bf16 %v184_v8  ;;  %v185_v12 = vld [vmem:[%s229_s0 + $0x1] sm:$0x1]  ;;  %v125_v13 = vld [vmem:[%s229_s0] sm:$0x1] }
   0x4   :  { %20 = vst [vmem:[#allocation1 + $0x38] sm:$0x3] %v17_v3  ;;  %36 = vst [vmem:[#allocation1 + $0x30] sm:$0x3] %v33_v4  ;;  %v112_v14 = vunpack.c.l.bf16 %v185_v12  ;;  %v126_v15 = vunpack.c.l.bf16 %v125_v13 }
   0x5   :  { %52 = vst [vmem:[#allocation1 + $0x28] sm:$0x3] %v49_v5  ;;  %68 = vst [vmem:[#allocation1 + $0x20] sm:$0x3] %v65_v9 }
   0x6   :  { %84 = vst [vmem:[#allocation1 + $0x18] sm:$0x3] %v81_v10  ;;  %100 = vst [vmem:[#allocation1 + $0x10] sm:$0x3] %v97_v11 }
   0x7   :  { %115 = vst [vmem:[#allocation1 + $0x8] sm:$0x3] %v112_v14  ;;  %128 = vst [vmem:[#allocation1] sm:$0x3] %v126_v15 }
   0xb   :  { %v152_v17 = vld [vmem:[#allocation1 + $0x30] sm:$0x3]   ;;  %v156_v18 = vld [vmem:[#allocation1 + $0x38] sm:$0x3]  }
   0xc   :  { %v148_v16 = vld [vmem:[#allocation1 + $0x28] sm:$0x3]   ;;  %v144_v21 = vld [vmem:[#allocation1 + $0x20] sm:$0x3]  }
   0xd   :  { %v136_v19 = vld [vmem:[#allocation1 + $0x10] sm:$0x3]   ;;  %v140_v20 = vld [vmem:[#allocation1 + $0x18] sm:$0x3]  }
   0xe   :  { %150 = vst [vmem:[#allocation0 + $0xa] ss:$4 sm:$0x3] %v148_v16   ;;  %154 = vst [vmem:[#allocation0 + $0x3] ss:$4 sm:$0x3] %v152_v17  }
   0xf   :  { %158 = vst [vmem:[#allocation0 + $0xb] ss:$4 sm:$0x3] %v156_v18   ;;  %v129_v22 = vld [vmem:[#allocation1] sm:$0x3]  }
  0x10   :  { %v132_v23 = vld [vmem:[#allocation1 + $0x8] sm:$0x3]   ;;  %138 = vst [vmem:[#allocation0 + $0x1] ss:$4 sm:$0x3] %v136_v19  }
  0x11   :  { %142 = vst [vmem:[#allocation0 + $0x9] ss:$4 sm:$0x3] %v140_v20   ;;  %146 = vst [vmem:[#allocation0 + $0x2] ss:$4 sm:$0x3] %v144_v21  }
  0x12   :  { %130 = vst [vmem:[#allocation0] ss:$4 sm:$0x3] %v129_v22   ;;  %134 = vst [vmem:[#allocation0 + $0x8] ss:$4 sm:$0x3] %v132_v23  }
  0x19   :  { %v163_v24 = vld [vmem:[#allocation0] sm:$0xff]  ;;  %v168_v25 = vld [vmem:[#allocation0 + $0x8] sm:$0xff] }
  0x1a   :  { %v190_v26 = vpack.c.bf16 %v168_v25, %v163_v24 }
  0x1c   :  { %191 = vst [vmem:[%s230_s1] sm:$0xff] %v190_v26  }

// kernel: tile.48
= control target key start
LH: loop header
LB: loop body
LE: loop exit
PB: predicated region body
PF: predicated region fallthrough
CT: control target
= control target key end

     0   :  { %s22_s0 = inlined_call_operand.vmem [shape: f32[64], index: 0, kind: input, shape index: {}]   ;;  %s23_s1 = inlined_call_operand.vmem [shape: f32[4,64], index: 1, kind: output, shape index: {}]  }
   0x1   :  { %v4_v0 = vld [vmem:[%s22_s0] ss:$0 sm:$0xff] }
   0x2   :  { %5 = vst [vmem:[%s23_s1] sm:$0xf] %v4_v0 }

// kernel: tile.49
= control target key start
LH: loop header
LB: loop body
LE: loop exit
PB: predicated region body
PF: predicated region fallthrough
CT: control target
= control target key end

     0   :  { %s6_s8 = smov 3  ;;  %vm8_vm0 = vcmask 523264   ;;  %s30_s9 = smov 64   ;;  %vm15_vm1 = vcmask 1048064   ;;  %s50_s0 = inlined_call_operand.vmem [shape: f32[4,64], index: 0, kind: input, shape index: {}]   ;;  %s51_s1 = inlined_call_operand.vmem [shape: f32[1,256], index: 1, kind: output, shape index: {}]  }
   0x1   :  { %v4_v0 = vld [vmem:[%s50_s0] sm:$0xf]  ;;  %s11_s0 = smov 3 }
   0x2   :  { %5 = vst [vmem:[#allocation1] sm:$0xf] %v4_v0 }
   0x9   :  { %v12_v1 = vld [vmem:[#allocation1 + $0x1] ss:$2 sm:%s11_s0]   ;;  %v7_v2 = vld [vmem:[#allocation1] ss:$2 sm:%s6_s8]  }
   0xa   :  { %13 = vrot.lane.b32.xlu0 %v12_v1, %s30_s9  ;;  %9 = vst.msk [vmem:[#allocation0] ss:$8 sm:$0x3] %vm8_vm0, %v7_v2  }
  0x7c   :  { %v14_v3 = vpop.permute.xlu0 %13  }
  0x7d   :  { %16 = vst.msk [vmem:[#allocation0] ss:$8 sm:$0x3] %vm15_vm1, %v14_v3  }
  0x84   :  { %v20_v4 = vld [vmem:[#allocation0] sm:$0x1]  ;;  %v24_v5 = vld [vmem:[#allocation0 + $0x8] sm:$0x1] }
  0x85   :  { %22 = vst [vmem:[%s51_s1] sm:$0x1] %v20_v4  ;;  %28 = vst [vmem:[%s51_s1 + $0x1] sm:$0x1] %v24_v5 }

// kernel: generator_forward.10
= control target key start
LH: loop header
LB: loop body
LE: loop exit
PB: predicated region body
PF: predicated region fallthrough
CT: control target
= control target key end

     0   :  { %v19_v0 = vlaneseq  ;;  %s94_s0 = inlined_call_operand.vmem [shape: bf16[8,256], index: 0, kind: input, shape index: {}]   ;;  %s95_s1 = inlined_call_operand.vmem [shape: f32[1,256], index: 1, kind: input, shape index: {}]   ;;  %s96_s2 = inlined_call_operand.vmem [shape: f32[1,256], index: 2, kind: input, shape index: {}]   ;;  %s97_s3 = inlined_call_operand.vmem [shape: bf16[8,256], index: 3, kind: output, shape index: {}]  }
   0x1   :  { %v14_v1 = vld [vmem:[%s94_s0] sm:$0xff] }
   0x2   :  { %v20_v2 = vshrl.u32 %v19_v0, 7  ;;  %v17_v3 = vld [vmem:[%s95_s1] sm:$0x3]  ;;  %v15_v5 = vunpack.c.l.bf16 %v14_v1  ;;  %v16_v6 = vunpack.c.h.bf16 %v14_v1 }
   0x3   :  { %v31_v4 = vld [vmem:[%s96_s2] sm:$0x3] }
   0x4   :  { %v21_v7 = vsub.s32 0, %v20_v2  ;;  %v25_v8 = vsub.s32 1, %v20_v2 }
   0x6   :  { %v22_v9 = vrot.slane %v17_v3, %v21_v7  ;;  %v26_v10 = vrot.slane %v17_v3, %v25_v8  ;;  %v36_v11 = vrot.slane %v31_v4, %v21_v7  ;;  %v40_v12 = vrot.slane %v31_v4, %v25_v8 }
   0x8   :  { %v29_v13 = vmul.f32 %v22_v9, %v15_v5  ;;  %v30_v14 = vmul.f32 %v26_v10, %v16_v6 }
   0xa   :  { %v43_v15 = vadd.f32 %v36_v11, %v29_v13  ;;  %v44_v16 = vadd.f32 %v40_v12, %v30_v14 }
   0xc   :  { %v45_v17 = vmax.f32 %v43_v15, 0.0  ;;  %v46_v18 = vmax.f32 %v44_v16, 0.0 }
   0xe   :  { %v61_v19 = vpack.c.bf16 %v46_v18, %v45_v17 }
  0x10   :  { %55 = vst [vmem:[%s97_s3] sm:$0xff] %v61_v19 }

// kernel: generator_forward.9
= control target key start
LH: loop header
LB: loop body
LE: loop exit
PB: predicated region body
PF: predicated region fallthrough
CT: control target
= control target key end

     0   :  { %9 = vsyncpa [#allocation3], 0  ;;  %s554_s12 = smov [#allocation2]   ;;  %s644_s0 = inlined_call_operand.vmem [shape: bf16[1,8,32], index: 0, kind: input, shape index: {}]   ;;  %s645_s1 = inlined_call_operand.hbm [shape: bf16[1,32,1024], index: 1, kind: input, shape index: {}]   ;;  %s646_s2 = inlined_call_operand.vmem [shape: bf16[1,8,1024], index: 2, kind: output, shape index: {0}]   ;;  %s647_s3 = inlined_call_operand.vmem [shape: f32[1,1,2,1024], index: 3, kind: output, shape index: {1}]  }
   0x1   :  { %s17_s13 = sshll.u32 %s554_s12, 4  ;;  %s530_s16 = scalar_lea.hbm %s645_s1, 2048  ;;  %s18_s13 = int_to_ptr.vmem [resolvable:$true] %s17_s13 }
   0x2   :  { %p531_p0 = scmp.ne.s32.totalorder %s645_s1, %s530_s16  ;;  %p534_p1 = scmp.lt.u32.totalorder %s530_s16, %s645_s1 }
   0x4   :  { %p536_p2 = pnand %p534_p1, %p531_p0 }
   0x6   :  { %539 = shalt.err (!%p536_p2)
}
   0x7   :  { %s540_s21 = scalar_lea.vmem %s18_s13, 2048  ;;  %p545_p4 = scmp.lt.s32.totalorder %s18_s13, %s18_s13 }
   0x8   :  { %p541_p3 = scmp.ne.s32.totalorder %s18_s13, %s540_s21  ;;  %p546_p5 = scmp.lt.s32.totalorder %s540_s21, %s540_s21 }
   0xa   :  { %p547_p6 = por %p546_p5, %p545_p4 }
   0xc   :  { %p548_p7 = pnand %p547_p6, %p541_p3 }
   0xe   :  { %551 = shalt.err (!%p548_p7)
}
   0xf   :  { %s555_s22 = smov 512   ;;  %s556_s23 = smov 32  }
  0x10   :  { %23 = dma.hbm_to_vmem [thread:$0]  %s645_s1, 2048, %s18_s13, [#allocation3], %s555_s22, %s555_s22, %s556_s23  }
  0x11   :  { %552 = dma.done.wait [#allocation3], 2048  }
  0x12   :  { %553 = vsyncadd [#allocation3], 4294965248  ;;  %v557_v0 = vmov 0   ;;  %v29_v1 = vld [vmem:[#allocation2] sm:$0xff]  ;;  %v30_v3 = vld [vmem:[#allocation2 + $0x8] sm:$0xff]  ;;  %vm125_vm0 = vcmask 261120   ;;  %v455_v36 = vlaneseq }
  0x13   :  { %161 = vmatprep.mubr.bf16.mxu0 %v557_v0  ;;  %202 = vmatprep.mubr.bf16.mxu1 %v557_v0  ;;  %v33_v2 = vld [vmem:[#allocation2 + $0x20] sm:$0xff]  ;;  %v34_v5 = vld [vmem:[#allocation2 + $0x28] sm:$0xff]  ;;  %v31_v15 = vld [vmem:[#allocation2 + $0x10] sm:$0xff]  ;;  %v558_v34 = vmov 1983009808   ;;  %vm433_vm1 = vcmask 1040384  }
  0x14   :  { %v498_v4 = vcombine.high %v29_v1, %v33_v2  ;;  %v497_v6 = vcombine.low %v29_v1, %v33_v2  ;;  %v37_v7 = vld [vmem:[#allocation2 + $0x40] sm:$0xff]  ;;  %v500_v9 = vcombine.high %v30_v3, %v34_v5  ;;  %v499_v10 = vcombine.low %v30_v3, %v34_v5  ;;  %v38_v12 = vld [vmem:[#allocation2 + $0x48] sm:$0xff]  ;;  %v35_v16 = vld [vmem:[#allocation2 + $0x30] sm:$0xff] }
  0x15   :  { %v41_v8 = vld [vmem:[#allocation2 + $0x60] sm:$0xff]  ;;  %v42_v13 = vld [vmem:[#allocation2 + $0x68] sm:$0xff]  ;;  %v32_v17 = vld [vmem:[#allocation2 + $0x18] sm:$0xff]  ;;  %v502_v21 = vcombine.high %v31_v15, %v35_v16  ;;  %v501_v28 = vcombine.low %v31_v15, %v35_v16  ;;  %v453_v35 = vunpack.c.l.s4 %v558_v34  ;;  %v456_v43 = vshrl.u32 %v455_v36, 7 }
  0x16   :  { %v506_v11 = vcombine.high %v37_v7, %v41_v8  ;;  %129 = vmatprep.subr.bf16.mxu0 %v498_v4  ;;  %v508_v14 = vcombine.high %v38_v12, %v42_v13  ;;  %170 = vmatprep.subr.bf16.mxu1 %v500_v9  ;;  %v505_v18 = vcombine.low %v37_v7, %v41_v8  ;;  %v36_v19 = vld [vmem:[#allocation2 + $0x38] sm:$0xff]  ;;  %v39_v23 = vld [vmem:[#allocation2 + $0x50] sm:$0xff]  ;;  %v28_v27 = vld [vmem:[%s644_s0] sm:$0xf] }
  0x17   :  { %130 = vmatpush1.bf16.msra.mxu0 %v497_v6  ;;  %171 = vmatpush1.bf16.msra.mxu1 %v499_v10  ;;  %v507_v20 = vcombine.low %v38_v12, %v42_v13  ;;  %v504_v22 = vcombine.high %v32_v17, %v36_v19  ;;  %v43_v24 = vld [vmem:[#allocation2 + $0x70] sm:$0xff]  ;;  %v40_v25 = vld [vmem:[#allocation2 + $0x58] sm:$0xff]  ;;  %v503_v29 = vcombine.low %v32_v17, %v36_v19  ;;  %v454_v42 = vunpack.c.0.s8 %v453_v35 }
  0x18   :  { %131 = vmatprep.subr.bf16.mxu0 %v506_v11  ;;  %172 = vmatprep.subr.bf16.mxu1 %v508_v14  ;;  %v44_v26 = vld [vmem:[#allocation2 + $0x78] sm:$0xff]  ;;  %v510_v30 = vcombine.high %v39_v23, %v43_v24  ;;  %v509_v32 = vcombine.low %v39_v23, %v43_v24 }
  0x19   :  { %v512_v31 = vcombine.high %v40_v25, %v44_v26  ;;  %v511_v33 = vcombine.low %v40_v25, %v44_v26 }
  0x1b   :  { %132 = vmatpush1.bf16.msra.mxu0 %v505_v18  ;;  %173 = vmatpush1.bf16.msra.mxu1 %v507_v20 }
  0x1c   :  { %211 = vmatprep.subr.bf16.mxu0 %v502_v21  ;;  %252 = vmatprep.subr.bf16.mxu1 %v504_v22 }
  0x1e   :  { %513 = vmatmul.mubr.msk.bf16.vlgmr.msra.gmra.mrb[0].mxu0 %vm125_vm0, %v28_v27  ;;  %514 = vmatmul.mubr.msk.bf16.vlgmr.msra.gmra.mrb[0].mxu1 %vm125_vm0, %v28_v27 }
  0x1f   :  { %212 = vmatpush1.bf16.msra.mxu0 %v501_v28  ;;  %253 = vmatpush1.bf16.msra.mxu1 %v503_v29  ;;  %v608_v28 = vsub.s32 %v454_v42, %v456_v43 }
  0x20   :  { %213 = vmatprep.subr.bf16.mxu0 %v510_v30  ;;  %254 = vmatprep.subr.bf16.mxu1 %v512_v31 }
  0x21   :  { %243 = vmatprep.mubr.bf16.mxu0 %v557_v0  ;;  %284 = vmatprep.mubr.bf16.mxu1 %v557_v0 }
  0x23   :  { %214 = vmatpush1.bf16.msra.mxu0 %v509_v32  ;;  %255 = vmatpush1.bf16.msra.mxu1 %v511_v33 }
  0x26   :  { %515 = vmatmul.mubr.msk.bf16.vlgmr.msra.gmra.mrb[4].mxu0 %vm125_vm0, %v28_v27  ;;  %516 = vmatmul.mubr.msk.bf16.vlgmr.msra.gmra.mrb[4].mxu1 %vm125_vm0, %v28_v27 }
  0xf1   :  { %v163_v37 = vpop.f32.mrb[0].mxu0  ;;  %v204_v40 = vpop.f32.mrb[0].mxu1 }
  0xf2   :  { %v329_v38 = vrot.slane %v163_v37, 4  ;;  %v377_v39 = vmul.f32 %v163_v37, %v163_v37  ;;  %v165_v41 = vpop.f32.mrb[1].mxu0  ;;  %v341_v44 = vrot.slane %v204_v40, 4  ;;  %v379_v45 = vmul.f32 %v204_v40, %v204_v40  ;;  %v206_v48 = vpop.f32.mrb[1].mxu1 }
  0xf3   :  { %v521_v46 = vpack.c.bf16 %v165_v41, %v163_v37  ;;  %v335_v47 = vrot.slane %v165_v41, 4  ;;  %v167_v49 = vpop.f32.mrb[2].mxu0  ;;  %v378_v52 = vmul.f32 %v165_v41, %v165_v41  ;;  %v522_v53 = vpack.c.bf16 %v206_v48, %v204_v40  ;;  %v208_v54 = vpop.f32.mrb[2].mxu1 }
  0xf4   :  { %v330_v50 = vadd.f32 %v329_v38, %v163_v37  ;;  %v385_v51 = vrot.slane %v377_v39, 4  ;;  %v168_v55 = vpop.f32.mrb[3].mxu0  ;;  %v342_v56 = vadd.f32 %v341_v44, %v204_v40  ;;  %v397_v57 = vrot.slane %v379_v45, 4  ;;  %v209_v60 = vpop.f32.mrb[3].mxu1 }
  0xf5   :  { %325 = vst [vmem:[%s646_s2] sm:$0xff] %v521_v46  ;;  %v336_v58 = vadd.f32 %v335_v47, %v165_v41  ;;  %v347_v59 = vrot.slane %v206_v48, 4  ;;  %v391_v63 = vrot.slane %v378_v52, 4  ;;  %326 = vst [vmem:[%s646_s2 + $0x8] sm:$0xff] %v522_v53  ;;  %v380_v0 = vmul.f32 %v206_v48, %v206_v48 }
  0xf6   :  { %v331_v61 = vrot.slane %v330_v50, 2  ;;  %v386_v62 = vadd.f32 %v385_v51, %v377_v39  ;;  %v343_v1 = vrot.slane %v342_v56, 2  ;;  %v398_v2 = vadd.f32 %v397_v57, %v379_v45 }
  0xf7   :  { %v337_v3 = vrot.slane %v336_v58, 2  ;;  %v348_v4 = vadd.f32 %v347_v59, %v206_v48  ;;  %v392_v7 = vadd.f32 %v391_v63, %v378_v52  ;;  %v403_v8 = vrot.slane %v380_v0, 4 }
  0xf8   :  { %v332_v5 = vadd.f32 %v331_v61, %v330_v50  ;;  %v387_v6 = vrot.slane %v386_v62, 2  ;;  %v344_v9 = vadd.f32 %v343_v1, %v342_v56  ;;  %v399_v10 = vrot.slane %v398_v2, 2 }
  0xf9   :  { %v338_v11 = vadd.f32 %v337_v3, %v336_v58  ;;  %v349_v12 = vrot.slane %v348_v4, 2  ;;  %v245_v13 = vpop.f32.mrb[4].mxu0  ;;  %v393_v16 = vrot.slane %v392_v7, 2  ;;  %v404_v17 = vadd.f32 %v403_v8, %v380_v0  ;;  %v604_v18 = vpop.f32.mrb[4].mxu1 }
  0xfa   :  { %v333_v14 = vrot.slane %v332_v5, 1  ;;  %v388_v15 = vadd.f32 %v387_v6, %v386_v62  ;;  %v247_v19 = vpop.f32.mrb[5].mxu0  ;;  %v345_v20 = vrot.slane %v344_v9, 1  ;;  %v400_v21 = vadd.f32 %v399_v10, %v398_v2  ;;  %v606_v24 = vpop.f32.mrb[5].mxu1 }
  0xfb   :  { %v339_v22 = vrot.slane %v338_v11, 1  ;;  %v350_v23 = vadd.f32 %v349_v12, %v348_v4  ;;  %v249_v25 = vpop.f32.mrb[6].mxu0  ;;  %v394_v27 = vadd.f32 %v393_v16, %v392_v7  ;;  %v405_v29 = vrot.slane %v404_v17, 2  ;;  %v290_v30 = vpop.f32.mrb[6].mxu1 }
  0xfc   :  { %v389_v26 = vrot.slane %v388_v15, 1  ;;  %v250_v31 = vpop.f32.mrb[7].mxu0  ;;  %v334_v32 = vadd.f32 %v333_v14, %v332_v5  ;;  %v346_v33 = vadd.f32 %v345_v20, %v344_v9  ;;  %v401_v34 = vrot.slane %v400_v21, 1  ;;  %v291_v36 = vpop.f32.mrb[7].mxu1 }
  0xfd   :  { %v351_v35 = vrot.slane %v350_v23, 1  ;;  %v395_v38 = vrot.slane %v394_v27, 1  ;;  %v406_v39 = vadd.f32 %v405_v29, %v404_v17  ;;  %v353_v40 = vrot.slane %v245_v13, 4 }
  0xfe   :  { %v390_v37 = vadd.f32 %v389_v26, %v388_v15  ;;  %v402_v41 = vadd.f32 %v401_v34, %v400_v21  ;;  %v340_v44 = vadd.f32 %v339_v22, %v338_v11  ;;  %v381_v45 = vmul.f32 %v245_v13, %v245_v13 }
  0xff   :  { %v365_v46 = vrot.slane %v604_v18, 4  ;;  %v396_v43 = vadd.f32 %v395_v38, %v394_v27  ;;  %v407_v47 = vrot.slane %v406_v39, 1  ;;  %v354_v48 = vadd.f32 %v353_v40, %v245_v13 }
 0x100   :  { %v434_v42 = vsel %vm433_vm1, %v334_v32, %v390_v37  ;;  %v436_v49 = vsel %vm433_vm1, %v346_v33, %v402_v41  ;;  %v352_v50 = vadd.f32 %v351_v35, %v350_v23  ;;  %v409_v51 = vrot.slane %v381_v45, 4 }
 0x101   :  { %v383_v52 = vmul.f32 %v604_v18, %v604_v18  ;;  %v435_v53 = vsel %vm433_vm1, %v340_v44, %v396_v43  ;;  %v408_v54 = vadd.f32 %v407_v47, %v406_v39  ;;  %v355_v55 = vrot.slane %v354_v48, 2 }
 0x102   :  { %v523_v56 = vpack.c.bf16 %v247_v19, %v245_v13  ;;  %v450_v57 = vcombine.low %v434_v42, %v435_v53  ;;  %v410_v58 = vadd.f32 %v409_v51, %v381_v45  ;;  %v366_v59 = vadd.f32 %v365_v46, %v604_v18 }
 0x103   :  { %v421_v60 = vrot.slane %v383_v52, 4  ;;  %v437_v61 = vsel %vm433_vm1, %v352_v50, %v408_v54  ;;  %v359_v62 = vrot.slane %v247_v19, 4  ;;  %v382_v63 = vmul.f32 %v247_v19, %v247_v19 }
 0x104   :  { %327 = vst [vmem:[%s646_s2 + $0x10] sm:$0xff] %v523_v56  ;;  %v458_v0 = vrot.slane %v450_v57, %v608_v28  ;;  %v451_v1 = vcombine.low %v436_v49, %v437_v61  ;;  %v356_v2 = vadd.f32 %v355_v55, %v354_v48  ;;  %v411_v3 = vrot.slane %v410_v58, 2 }
 0x105   :  { %v422_v4 = vadd.f32 %v421_v60, %v383_v52  ;;  %v360_v5 = vadd.f32 %v359_v62, %v247_v19  ;;  %v415_v6 = vrot.slane %v382_v63, 4  ;;  %v367_v9 = vrot.slane %v366_v59, 2 }
 0x106   :  { %v465_v7 = vrot.slane %v451_v1, %v608_v28  ;;  %v412_v8 = vadd.f32 %v411_v3, %v410_v58  ;;  %v524_v10 = vpack.c.bf16 %v606_v24, %v604_v18  ;;  %v357_v15 = vrot.slane %v356_v2, 1 }
 0x107   :  { %v423_v11 = vrot.slane %v422_v4, 2  ;;  %v361_v12 = vrot.slane %v360_v5, 2  ;;  %v416_v13 = vadd.f32 %v415_v6, %v382_v63  ;;  %v371_v17 = vrot.slane %v606_v24, 4 }
 0x108   :  { %v466_v14 = vcombine.low %v458_v0, %v465_v7  ;;  %v413_v16 = vrot.slane %v412_v8, 1  ;;  %328 = vst [vmem:[%s646_s2 + $0x18] sm:$0xff] %v524_v10  ;;  %v384_v22 = vmul.f32 %v606_v24, %v606_v24  ;;  %v368_v18 = vadd.f32 %v367_v9, %v366_v59 }
 0x109   :  { %v424_v19 = vadd.f32 %v423_v11, %v422_v4  ;;  %v362_v20 = vadd.f32 %v361_v12, %v360_v5  ;;  %v417_v21 = vrot.slane %v416_v13, 2  ;;  %v372_v23 = vadd.f32 %v371_v17, %v606_v24 }
 0x10a   :  { %486 = vst [vmem:[%s647_s3] sm:$0xff] %v466_v14  ;;  %v414_v25 = vadd.f32 %v413_v16, %v412_v8  ;;  %v427_v29 = vrot.slane %v384_v22, 4  ;;  %v358_v31 = vadd.f32 %v357_v15, %v356_v2  ;;  %v369_v35 = vrot.slane %v368_v18, 1 }
 0x10b   :  { %v363_v26 = vrot.slane %v362_v20, 1  ;;  %v418_v27 = vadd.f32 %v417_v21, %v416_v13  ;;  %v373_v30 = vrot.slane %v372_v23, 2  ;;  %v425_v32 = vrot.slane %v424_v19, 1 }
 0x10c   :  { %v428_v34 = vadd.f32 %v427_v29, %v384_v22  ;;  %v438_v37 = vsel %vm433_vm1, %v358_v31, %v414_v25  ;;  %v370_v42 = vadd.f32 %v369_v35, %v368_v18 }
 0x10d   :  { %v419_v33 = vrot.slane %v418_v27, 1  ;;  %v374_v36 = vadd.f32 %v373_v30, %v372_v23  ;;  %v364_v38 = vadd.f32 %v363_v26, %v362_v20  ;;  %v426_v41 = vadd.f32 %v425_v32, %v424_v19 }
 0x10e   :  { %v429_v40 = vrot.slane %v428_v34, 2 }
 0x10f   :  { %v420_v39 = vadd.f32 %v419_v33, %v418_v27  ;;  %v375_v24 = vrot.slane %v374_v36, 1  ;;  %v440_v47 = vsel %vm433_vm1, %v370_v42, %v426_v41 }
 0x110   :  { %v430_v45 = vadd.f32 %v429_v40, %v428_v34 }
 0x111   :  { %v439_v44 = vsel %vm433_vm1, %v364_v38, %v420_v39  ;;  %v376_v48 = vadd.f32 %v375_v24, %v374_v36 }
 0x112   :  { %v467_v46 = vcombine.low %v438_v37, %v439_v44  ;;  %v431_v43 = vrot.slane %v430_v45, 1 }
 0x114   :  { %v432_v49 = vadd.f32 %v431_v43, %v430_v45  ;;  %v475_v51 = vrot.slane %v467_v46, %v608_v28 }
 0x116   :  { %v441_v50 = vsel %vm433_vm1, %v376_v48, %v432_v49 }
 0x117   :  { %v468_v52 = vcombine.low %v440_v47, %v441_v50 }
 0x119   :  { %v482_v53 = vrot.slane %v468_v52, %v608_v28 }
 0x11b   :  { %v483_v54 = vcombine.low %v475_v51, %v482_v53 }
 0x11d   :  { %487 = vst [vmem:[%s647_s3 + $0x8] sm:$0xff] %v483_v54 }
 0x11e   :  { %496 = vsyncpa [#allocation3], 1 }

// kernel: tile.58
= control target key start
LH: loop header
LB: loop body
LE: loop exit
PB: predicated region body
PF: predicated region fallthrough
CT: control target
= control target key end

     0   :  { %s22_s0 = inlined_call_operand.vmem [shape: f32[32], index: 0, kind: input, shape index: {}]   ;;  %s23_s1 = inlined_call_operand.vmem [shape: f32[8,32], index: 1, kind: output, shape index: {}]  }
   0x1   :  { %v4_v0 = vld [vmem:[%s22_s0] ss:$0 sm:$0xff] }
   0x2   :  { %5 = vst [vmem:[%s23_s1] sm:$0xff] %v4_v0 }

// kernel: tile.59
= control target key start
LH: loop header
LB: loop body
LE: loop exit
PB: predicated region body
PF: predicated region fallthrough
CT: control target
= control target key end

     0   :  { %s7_s6 = smov 3  ;;  %s14_s9 = smov 3  ;;  %vm4_vm0 = vcmask 261120   ;;  %vm11_vm1 = vcmask 1048320   ;;  %vm18_vm2 = vcmask 785920   ;;  %vm25_vm3 = vcmask 523520   ;;  %s76_s0 = inlined_call_operand.vmem [shape: f32[8,32], index: 0, kind: input, shape index: {}]   ;;  %s77_s1 = inlined_call_operand.vmem [shape: f32[1,256], index: 1, kind: output, shape index: {}]  }
   0x1   :  { %v38_v0 = vld [vmem:[%s76_s0 + $0x3] ss:$4 sm:%s7_s6]   ;;  %s45_s10 = smov 96   ;;  %s21_s11 = smov 3  ;;  %v39_v1 = vld [vmem:[%s76_s0 + $0x2] ss:$4 sm:%s14_s9]  }
   0x2   :  { %9 = vrot.lane.b32.xlu0 %v38_v0, %s45_s10  ;;  %v40_v2 = vld [vmem:[%s76_s0 + $0x1] ss:$4 sm:%s21_s11]   ;;  %s2_s16 = smov 3  ;;  %s46_s17 = smov 32  }
   0x3   :  { %23 = vrot.lane.b32.xlu1 %v40_v2, %s46_s17  ;;  %v3_v3 = vld [vmem:[%s76_s0] ss:$4 sm:%s2_s16]   ;;  %s47_s0 = smov 64  }
   0x4   :  { %5 = vst.msk [vmem:[#allocation0] ss:$8 sm:$0x3] %vm4_vm0, %v3_v3  }
   0x6   :  { %16 = vrot.lane.b32.xlu0 %v39_v1, %s47_s0 }
  0x74   :  { %v10_v4 = vpop.permute.xlu0 %9  }
  0x75   :  { %12 = vst.msk [vmem:[#allocation0] ss:$8 sm:$0x3] %vm11_vm1, %v10_v4   ;;  %v24_v5 = vpop.permute.xlu1 %23  }
  0x78   :  { %v17_v6 = vpop.permute.xlu0 %16  }
  0x79   :  { %19 = vst.msk [vmem:[#allocation0] ss:$8 sm:$0x3] %vm18_vm2, %v17_v6  }
  0x7a   :  { %26 = vst.msk [vmem:[#allocation0] ss:$8 sm:$0x3] %vm25_vm3, %v24_v5  }
  0x81   :  { %v30_v7 = vld [vmem:[#allocation0] sm:$0x1]  ;;  %v34_v8 = vld [vmem:[#allocation0 + $0x8] sm:$0x1] }
  0x82   :  { %32 = vst [vmem:[%s77_s1] sm:$0x1] %v30_v7  ;;  %41 = vst [vmem:[%s77_s1 + $0x1] sm:$0x1] %v34_v8 }

// kernel: generator_forward.11
= control target key start
LH: loop header
LB: loop body
LE: loop exit
PB: predicated region body
PF: predicated region fallthrough
CT: control target
= control target key end

     0   :  { %s832_s12 = smov 0   ;;  %s834_s13 = smov 0   ;;  %s907_s0 = inlined_call_operand.vmem [shape: bf16[4,32,256], index: 0, kind: input, shape index: {}]   ;;  %s908_s1 = inlined_call_operand.vmem [shape: bf16[4,256,32], index: 1, kind: input, shape index: {}]   ;;  %s909_s2 = inlined_call_operand.vmem [shape: bf16[4,32,32], index: 2, kind: output, shape index: {0}]   ;;  %s910_s3 = inlined_call_operand.vmem [shape: f32[4,1,2,32], index: 3, kind: output, shape index: {1}]  }
   0x1   :  { %s836_s14 = smov 0  }
   0x2 LB: > { %s26_s15 = sadd.s32 1, %s806_s13  ;;  %p657_p0 = scmp.ge.s32.totalorder %s810_s14, 1  ;;  %s810_s14 = sphi %s836_s14, %s14_s14   ;;  %s806_s13 = sphi %s834_s13, %s912_s13   ;;  %s802_s12 = sphi %s832_s12, %s911_s12  }
   0x3   : > { %p28_p1 = scmp.ge.s32.totalorder %s26_s15, 4  ;;  %p174_p2 = scmp.lt.s32.totalorder %s810_s14, 5 }
   0x5   : > { %s914_s15 = smov (%p28_p1, %s26_s15), 0  ;;  %p175_p3 = pnand %p657_p0, %p174_p2 }
   0x6   : > { %p220_p4 = scmp.lt.s32.totalorder (!%p175_p3), %s802_s12, 3  ;;  %vm470_vm0 = vcmask (!%p175_p3), 257024   ;;  %vm475_vm1 = vcmask (!%p175_p3), 261120   ;;  %vm506_vm2 = vcmask (!%p175_p3), 1040384   ;;  %vm508_vm3 = vcmask (!%p175_p3), 254976  }
   0x7   : > { %178 = sbr.rel (%p175_p3) target bundleno = 291 (0x123), region = 28 }
   0xe   : > { %s916_s12 = smov (!%p220_p4, %s802_s12), 3 }
   0xf   : > { %s692_s16 = sshll.u32 %s916_s12, 7  ;;  %s691_s20 = sshll.u32 %s916_s12, 5 }
  0x10   : > { %s856_s19 = scalar_lea.vmem %s908_s1, %s692_s16  ;;  %s228_s23 = scalar_lea.vmem %s907_s0, %s691_s20 }
  0x11   : > { %v766_v0 = vld [vmem:[%s856_s19 + $0x40] sm:$0xff]   ;;  %v768_v2 = vld [vmem:[%s856_s19 + $0x48] sm:$0xff]   ;;  %v770_v4 = vld [vmem:[%s856_s19 + $0x50] sm:$0xff]   ;;  %s693_s24 = sshll.u32 %s916_s12, 4  ;;  %s664_s28 = sshll.u32 %s916_s12, 1 }
  0x12   : > { %v767_v1 = vld [vmem:[%s856_s19] sm:$0xff]   ;;  %698 = vmatprep.subr.bf16.mxu0 %v766_v0  ;;  %726 = vmatprep.subr.bf16.mxu1 %v766_v0  ;;  %v769_v3 = vld [vmem:[%s856_s19 + $0x8] sm:$0xff]   ;;  %v771_v5 = vld [vmem:[%s856_s19 + $0x10] sm:$0xff]   ;;  %s243_s27 = scalar_lea.vmem %s909_s2, %s693_s24  ;;  %s251_s4 = scalar_lea.vmem %s910_s3, %s664_s28 }
  0x13   : > { %699 = vmatpush3.bf16.msra.mxu0 %v767_v1  ;;  %734 = vmatpush3.bf16.msra.mxu1 %v767_v1  ;;  %v772_v6 = vld [vmem:[%s856_s19 + $0x58] sm:$0xff]   ;;  %v774_v8 = vld [vmem:[%s856_s19 + $0x60] sm:$0xff]   ;;  %v776_v10 = vld [vmem:[%s856_s19 + $0x68] sm:$0xff]  }
  0x14   : > { %700 = vmatprep.subr.bf16.mxu0 %v768_v2  ;;  %727 = vmatprep.subr.bf16.mxu1 %v768_v2  ;;  %v773_v7 = vld [vmem:[%s856_s19 + $0x18] sm:$0xff]   ;;  %v775_v9 = vld [vmem:[%s856_s19 + $0x20] sm:$0xff]   ;;  %v777_v13 = vld [vmem:[%s856_s19 + $0x28] sm:$0xff]  }
  0x15   : > { %v784_v11 = vld [vmem:[%s228_s23 + $0x4] ss:$8 sps:$4 sm:$0xff]   ;;  %v787_v12 = vld [vmem:[%s228_s23 + $0x14] ss:$8 sps:$4 sm:$0xff]   ;;  %v782_v18 = vld [vmem:[%s228_s23] ss:$8 sps:$4 sm:$0xff]  }
  0x16   : > { %v778_v14 = vld [vmem:[%s856_s19 + $0x70] sm:$0xff]   ;;  %437 = vmatprep.mubr.bf16.mxu0 %v784_v11  ;;  %445 = vmatprep.mubr.bf16.mxu1 %v787_v12  ;;  %v780_v16 = vld [vmem:[%s856_s19 + $0x78] sm:$0xff]  }
  0x17   : > { %701 = vmatpush3.bf16.msra.mxu0 %v769_v3  ;;  %735 = vmatpush3.bf16.msra.mxu1 %v769_v3  ;;  %v779_v15 = vld [vmem:[%s856_s19 + $0x30] sm:$0xff]   ;;  %v781_v17 = vld [vmem:[%s856_s19 + $0x38] sm:$0xff]  }
  0x18   : > { %702 = vmatprep.subr.bf16.mxu0 %v770_v4  ;;  %728 = vmatprep.subr.bf16.mxu1 %v770_v4  ;;  %v785_v19 = vld [vmem:[%s228_s23 + $0x10] ss:$8 sps:$4 sm:$0xff]  }
  0x1b   : > { %703 = vmatpush3.bf16.msra.mxu0 %v771_v5  ;;  %736 = vmatpush3.bf16.msra.mxu1 %v771_v5 }
  0x1c   : > { %704 = vmatprep.subr.bf16.mxu0 %v772_v6  ;;  %729 = vmatprep.subr.bf16.mxu1 %v772_v6 }
  0x1f   : > { %705 = vmatpush3.bf16.msra.mxu0 %v773_v7  ;;  %737 = vmatpush3.bf16.msra.mxu1 %v773_v7 }
  0x20   : > { %706 = vmatprep.subr.bf16.mxu0 %v774_v8  ;;  %730 = vmatprep.subr.bf16.mxu1 %v774_v8 }
  0x23   : > { %707 = vmatpush3.bf16.msra.mxu0 %v775_v9  ;;  %738 = vmatpush3.bf16.msra.mxu1 %v775_v9 }
  0x24   : > { %708 = vmatprep.subr.bf16.mxu0 %v776_v10  ;;  %731 = vmatprep.subr.bf16.mxu1 %v776_v10 }
  0x27   : > { %709 = vmatpush3.bf16.msra.mxu0 %v777_v13  ;;  %739 = vmatpush3.bf16.msra.mxu1 %v777_v13 }
  0x28   : > { %710 = vmatprep.subr.bf16.mxu0 %v778_v14  ;;  %732 = vmatprep.subr.bf16.mxu1 %v778_v14 }
  0x2b   : > { %711 = vmatpush3.bf16.msra.mxu0 %v779_v15  ;;  %740 = vmatpush3.bf16.msra.mxu1 %v779_v15 }
  0x2c   : > { %712 = vmatprep.subr.bf16.mxu0 %v780_v16  ;;  %733 = vmatprep.subr.bf16.mxu1 %v780_v16 }
  0x2f   : > { %713 = vmatpush3.bf16.msra.mxu0 %v781_v17  ;;  %741 = vmatpush3.bf16.msra.mxu1 %v781_v17 }
  0x32   : > { %438 = vmatmul.mubr.bf16.vlgmr.msra.gmra.mrb[0].mxu0 %v782_v18  ;;  %446 = vmatmul.mubr.bf16.vlgmr.msra.gmra.mrb[0].mxu1 %v785_v19 }
 0x105   : > { %v714_v20 = vpop.f32.mrb[0].mxu0  ;;  %v720_v21 = vpop.f32.mrb[0].mxu1 }
 0x106   : > { %v715_v22 = vpop.f32.mrb[1].mxu0  ;;  %v721_v23 = vpop.f32.mrb[1].mxu1 }
 0x107   : > { %v716_v24 = vadd.f32 %v715_v22, %v714_v20  ;;  %v717_v25 = vpop.f32.mrb[2].mxu0  ;;  %v722_v26 = vadd.f32 %v721_v23, %v720_v21  ;;  %v723_v27 = vpop.f32.mrb[2].mxu1 }
 0x108   : > { %v718_v28 = vpop.f32.mrb[3].mxu0  ;;  %v724_v29 = vpop.f32.mrb[3].mxu1 }
 0x109   : > { %v694_v30 = vpack.c.bf16 %v716_v24, %v716_v24  ;;  %v696_v31 = vpack.c.bf16 %v722_v26, %v722_v26  ;;  %v489_v32 = vmul.f32 %v716_v24, %v716_v24  ;;  %v491_v33 = vmul.f32 %v722_v26, %v722_v26 }
 0x10a   : > { %v719_v34 = vadd.f32 %v718_v28, %v717_v25  ;;  %v725_v35 = vadd.f32 %v724_v29, %v723_v27  ;;  %v476_v36 = vsel %vm475_vm1, %v716_v24, 0.0  ;;  %v479_v37 = vsel %vm475_vm1, %v722_v26, 0.0 }
 0x10b   : > { %471 = vst.msk [vmem:[%s243_s27] sm:$0xf] %vm470_vm0, %v694_v30  ;;  %473 = vst.msk [vmem:[%s243_s27 + $0x8] sm:$0xf] %vm470_vm0, %v696_v31  ;;  %v493_v43 = vsel %vm475_vm1, %v489_v32, 0.0  ;;  %v496_v44 = vsel %vm475_vm1, %v491_v33, 0.0 }
 0x10c   : > { %v695_v38 = vpack.c.bf16 %v719_v34, %v719_v34  ;;  %v477_v39 = vsel %vm475_vm1, %v719_v34, 0.0  ;;  %v490_v40 = vmul.f32 %v719_v34, %v719_v34  ;;  %v697_v42 = vpack.c.bf16 %v725_v35, %v725_v35 }
 0x10d   : > { %v478_v41 = vadd.f32 %v477_v39, %v476_v36  ;;  %v492_v46 = vmul.f32 %v725_v35, %v725_v35  ;;  %v481_v49 = vsel %vm475_vm1, %v725_v35, 0.0 }
 0x10e   : > { %472 = vst.msk [vmem:[%s243_s27 + $0x4] sm:$0xf] %vm470_vm0, %v695_v38  ;;  %v494_v45 = vsel %vm475_vm1, %v490_v40, 0.0  ;;  %474 = vst.msk [vmem:[%s243_s27 + $0xc] sm:$0xf] %vm470_vm0, %v697_v42 }
 0x10f   : > { %v495_v47 = vadd.f32 %v494_v45, %v493_v43  ;;  %v480_v48 = vadd.f32 %v479_v37, %v478_v41  ;;  %v498_v52 = vsel %vm475_vm1, %v492_v46, 0.0 }
 0x111   : > { %v482_v50 = vadd.f32 %v481_v49, %v480_v48  ;;  %v497_v51 = vadd.f32 %v496_v44, %v495_v47 }
 0x113   : > { %v483_v53 = vrot.slane %v482_v50, 4  ;;  %v499_v54 = vadd.f32 %v498_v52, %v497_v51 }
 0x115   : > { %v484_v55 = vadd.f32 %v483_v53, %v482_v50  ;;  %v500_v56 = vrot.slane %v499_v54, 4 }
 0x117   : > { %v485_v57 = vrot.slane %v484_v55, 2  ;;  %v501_v58 = vadd.f32 %v500_v56, %v499_v54 }
 0x119   : > { %v486_v59 = vadd.f32 %v485_v57, %v484_v55  ;;  %v502_v60 = vrot.slane %v501_v58, 2 }
 0x11b   : > { %v487_v61 = vrot.slane %v486_v59, 1  ;;  %v503_v62 = vadd.f32 %v502_v60, %v501_v58 }
 0x11d   : > { %v504_v63 = vrot.slane %v503_v62, 1  ;;  %v488_v0 = vadd.f32 %v487_v61, %v486_v59 }
 0x11f   : > { %v505_v1 = vadd.f32 %v504_v63, %v503_v62 }
 0x121   : > { %v507_v2 = vsel %vm506_vm2, %v488_v0, %v505_v1 }
 0x122   : > { %509 = vst.msk [vmem:[%s251_s4] sm:$0x3] %vm508_vm3, %v507_v2 }
 0x123 PF: > { %s14_s14 = sadd.s32 1, %s810_s14   ;;  %s911_s12 = smov %s806_s13 }
 0x124   : > { %p11_p5 = scmp.ge.s32.totalorder %s14_s14, 6   ;;  %s912_s13 = smov %s914_s15 }
 0x126   :  { %13 = sbr.rel (!%p11_p5) target bundleno = 2 (0x2), region = 73 }

// kernel: generator_forward.12
= control target key start
LH: loop header
LB: loop body
LE: loop exit
PB: predicated region body
PF: predicated region fallthrough
CT: control target
= control target key end

     0   :  { %v22_v0 = vlaneseq  ;;  %s116_s0 = inlined_call_operand.vmem [shape: bf16[16,256], index: 0, kind: input, shape index: {}]   ;;  %s117_s1 = inlined_call_operand.vmem [shape: f32[1,256], index: 1, kind: input, shape index: {}]   ;;  %s118_s2 = inlined_call_operand.vmem [shape: f32[1,256], index: 2, kind: input, shape index: {}]   ;;  %s119_s3 = inlined_call_operand.vmem [shape: bf16[16,256], index: 3, kind: output, shape index: {}]  }
   0x1   :  { %v14_v1 = vld [vmem:[%s116_s0] sm:$0xff]  ;;  %v15_v3 = vld [vmem:[%s116_s0 + $0x8] sm:$0xff] }
   0x2   :  { %v23_v2 = vshrl.u32 %v22_v0, 7  ;;  %v16_v4 = vunpack.c.l.bf16 %v14_v1  ;;  %v17_v5 = vunpack.c.h.bf16 %v14_v1  ;;  %v20_v6 = vld [vmem:[%s117_s1] sm:$0x3]  ;;  %v18_v10 = vunpack.c.l.bf16 %v15_v3 }
   0x3   :  { %v36_v7 = vld [vmem:[%s118_s2] sm:$0x3]  ;;  %v19_v11 = vunpack.c.h.bf16 %v15_v3 }
   0x4   :  { %v24_v8 = vsub.s32 0, %v23_v2  ;;  %v28_v9 = vsub.s32 1, %v23_v2 }
   0x6   :  { %v25_v12 = vrot.slane %v20_v6, %v24_v8  ;;  %v29_v13 = vrot.slane %v20_v6, %v28_v9  ;;  %v41_v14 = vrot.slane %v36_v7, %v24_v8  ;;  %v45_v15 = vrot.slane %v36_v7, %v28_v9 }
   0x8   :  { %v32_v16 = vmul.f32 %v25_v12, %v16_v4  ;;  %v33_v17 = vmul.f32 %v29_v13, %v17_v5  ;;  %v34_v18 = vmul.f32 %v25_v12, %v18_v10  ;;  %v35_v19 = vmul.f32 %v29_v13, %v19_v11 }
   0xa   :  { %v48_v20 = vadd.f32 %v41_v14, %v32_v16  ;;  %v49_v21 = vadd.f32 %v45_v15, %v33_v17  ;;  %v50_v22 = vadd.f32 %v41_v14, %v34_v18  ;;  %v51_v23 = vadd.f32 %v45_v15, %v35_v19 }
   0xc   :  { %v52_v24 = vmax.f32 %v48_v20, 0.0  ;;  %v53_v25 = vmax.f32 %v49_v21, 0.0  ;;  %v54_v26 = vmax.f32 %v50_v22, 0.0  ;;  %v55_v27 = vmax.f32 %v51_v23, 0.0 }
   0xe   :  { %v76_v28 = vpack.c.bf16 %v53_v25, %v52_v24  ;;  %v77_v29 = vpack.c.bf16 %v55_v27, %v54_v26 }
  0x10   :  { %68 = vst [vmem:[%s119_s3] sm:$0xff] %v76_v28  ;;  %69 = vst [vmem:[%s119_s3 + $0x8] sm:$0xff] %v77_v29 }

// kernel: generator_forward.13
= control target key start
LH: loop header
LB: loop body
LE: loop exit
PB: predicated region body
PF: predicated region fallthrough
CT: control target
= control target key end

     0   :  { %s1004_s12 = smov 0   ;;  %s1006_s13 = smov 0   ;;  %s1180_s0 = inlined_call_operand.vmem [shape: bf16[4,128,128], index: 0, kind: input, shape index: {}]   ;;  %s1181_s1 = inlined_call_operand.vmem [shape: bf16[4,128,16], index: 1, kind: input, shape index: {}]   ;;  %s1182_s2 = inlined_call_operand.vmem [shape: bf16[4,128,16], index: 2, kind: output, shape index: {0}]   ;;  %s1183_s3 = inlined_call_operand.vmem [shape: f32[4,1,2,16], index: 3, kind: output, shape index: {1}]  }
   0x1   :  { %s1008_s14 = smov 0  }
   0x2 LB: > { %s26_s15 = sadd.s32 1, %s978_s13  ;;  %p795_p0 = scmp.ge.s32.totalorder %s982_s14, 1  ;;  %s982_s14 = sphi %s1008_s14, %s14_s14   ;;  %s978_s13 = sphi %s1006_s13, %s1185_s13   ;;  %s974_s12 = sphi %s1004_s12, %s1184_s12  }
   0x3   : > { %p28_p1 = scmp.ge.s32.totalorder %s26_s15, 4  ;;  %p173_p2 = scmp.lt.s32.totalorder %s982_s14, 5 }
   0x5   : > { %s1187_s15 = smov (%p28_p1, %s26_s15), 0  ;;  %p174_p3 = pnand %p795_p0, %p173_p2 }
   0x6   : > { %p218_p4 = scmp.lt.s32.totalorder (!%p174_p3), %s974_s12, 3  ;;  %vm539_vm0 = vcmask (!%p174_p3), 125952   ;;  %vm556_vm1 = vcmask (!%p174_p3), 130048   ;;  %vm647_vm2 = vcmask (!%p174_p3), 1040384   ;;  %vm649_vm3 = vcmask (!%p174_p3), 123904  }
   0x7   : > { %177 = sbr.rel (%p174_p3) target bundleno = 312 (0x138), region = 28 }
   0xe   : > { %s1189_s12 = smov (!%p218_p4, %s974_s12), 3 }
   0xf   : > { %s1025_s16 = sshll.u32 %s1189_s12, 6  ;;  %s802_s26 = sshll.u32 %s1189_s12, 1 }
  0x10   : > { %s1031_s19 = scalar_lea.vmem %s1181_s1, %s1025_s16  ;;  %s1040_s22 = scalar_lea.vmem %s1180_s0, %s1025_s16 }
  0x11   : > { %v944_v0 = vld [vmem:[%s1031_s19] sm:$0xff]   ;;  %v945_v1 = vld [vmem:[%s1031_s19 + $0x8] sm:$0xff]   ;;  %v946_v2 = vld [vmem:[%s1031_s19 + $0x10] sm:$0xff]   ;;  %s1059_s25 = scalar_lea.vmem %s1182_s2, %s1025_s16  ;;  %s248_s29 = scalar_lea.vmem %s1183_s3, %s802_s26 }
  0x12   : > { %872 = vmatprep.subr.bf16.mxu0 %v944_v0  ;;  %904 = vmatprep.subr.bf16.mxu1 %v944_v0  ;;  %v947_v3 = vld [vmem:[%s1031_s19 + $0x18] sm:$0xff]   ;;  %v952_v4 = vld [vmem:[%s1040_s22] sm:$0xff]   ;;  %v949_v7 = vld [vmem:[%s1031_s19 + $0x28] sm:$0xff]  }
  0x13   : > { %873 = vmatpush3.bf16.msra.mxu0 %v944_v0  ;;  %912 = vmatpush3.bf16.msra.mxu1 %v944_v0  ;;  %v948_v5 = vld [vmem:[%s1031_s19 + $0x20] sm:$0xff]   ;;  %v950_v8 = vld [vmem:[%s1031_s19 + $0x30] sm:$0xff]   ;;  %v951_v9 = vld [vmem:[%s1031_s19 + $0x38] sm:$0xff]  }
  0x14   : > { %874 = vmatprep.subr.bf16.mxu0 %v945_v1  ;;  %905 = vmatprep.subr.bf16.mxu1 %v945_v1  ;;  %v956_v6 = vld [vmem:[%s1040_s22 + $0x20] sm:$0xff]   ;;  %v953_v10 = vld [vmem:[%s1040_s22 + $0x8] sm:$0xff]   ;;  %v954_v12 = vld [vmem:[%s1040_s22 + $0x10] sm:$0xff]  }
  0x15   : > { %888 = vmatprep.mubr.bf16.mxu0 %v952_v4  ;;  %896 = vmatprep.mubr.bf16.mxu1 %v956_v6  ;;  %v957_v11 = vld [vmem:[%s1040_s22 + $0x28] sm:$0xff]   ;;  %v958_v13 = vld [vmem:[%s1040_s22 + $0x30] sm:$0xff]   ;;  %v955_v14 = vld [vmem:[%s1040_s22 + $0x18] sm:$0xff]  }
  0x16   : > { %v959_v15 = vld [vmem:[%s1040_s22 + $0x38] sm:$0xff]  }
  0x17   : > { %875 = vmatpush3.bf16.msra.mxu0 %v945_v1  ;;  %913 = vmatpush3.bf16.msra.mxu1 %v945_v1 }
  0x18   : > { %876 = vmatprep.subr.bf16.mxu0 %v946_v2  ;;  %906 = vmatprep.subr.bf16.mxu1 %v946_v2 }
  0x1b   : > { %877 = vmatpush3.bf16.msra.mxu0 %v946_v2  ;;  %914 = vmatpush3.bf16.msra.mxu1 %v946_v2 }
  0x1c   : > { %878 = vmatprep.subr.bf16.mxu0 %v947_v3  ;;  %907 = vmatprep.subr.bf16.mxu1 %v947_v3 }
  0x1f   : > { %879 = vmatpush3.bf16.msra.mxu0 %v947_v3  ;;  %915 = vmatpush3.bf16.msra.mxu1 %v947_v3 }
  0x20   : > { %880 = vmatprep.subr.bf16.mxu0 %v948_v5  ;;  %908 = vmatprep.subr.bf16.mxu1 %v948_v5 }
  0x23   : > { %881 = vmatpush3.bf16.msra.mxu0 %v948_v5  ;;  %916 = vmatpush3.bf16.msra.mxu1 %v948_v5 }
  0x24   : > { %882 = vmatprep.subr.bf16.mxu0 %v949_v7  ;;  %909 = vmatprep.subr.bf16.mxu1 %v949_v7 }
  0x27   : > { %883 = vmatpush3.bf16.msra.mxu0 %v949_v7  ;;  %917 = vmatpush3.bf16.msra.mxu1 %v949_v7 }
  0x28   : > { %884 = vmatprep.subr.bf16.mxu0 %v950_v8  ;;  %910 = vmatprep.subr.bf16.mxu1 %v950_v8 }
  0x2b   : > { %885 = vmatpush3.bf16.msra.mxu0 %v950_v8  ;;  %918 = vmatpush3.bf16.msra.mxu1 %v950_v8 }
  0x2c   : > { %886 = vmatprep.subr.bf16.mxu0 %v951_v9  ;;  %911 = vmatprep.subr.bf16.mxu1 %v951_v9 }
  0x2f   : > { %887 = vmatpush3.bf16.msra.mxu0 %v951_v9  ;;  %919 = vmatpush3.bf16.msra.mxu1 %v951_v9 }
  0x32   : > { %889 = vmatmul.mubr.bf16.vlgmr.msra.gmra.mrb[0].mxu0 %v953_v10  ;;  %897 = vmatmul.mubr.bf16.vlgmr.msra.gmra.mrb[0].mxu1 %v957_v11 }
  0x33   : > { %892 = vmatprep.mubr.bf16.mxu0 %v954_v12  ;;  %900 = vmatprep.mubr.bf16.mxu1 %v958_v13 }
  0x3a   : > { %893 = vmatmul.mubr.bf16.gmra.mrb[4].mxu0 %v955_v14  ;;  %901 = vmatmul.mubr.bf16.gmra.mrb[4].mxu1 %v959_v15 }
 0x105   : > { %v890_v16 = vpop.f32.mrb[0].mxu0  ;;  %v1061_v17 = vpop.f32.mrb[0].mxu1 }
 0x106   : > { %v842_v18 = vpack.c.bf16 %v890_v16, %v890_v16  ;;  %v412_v19 = vpop.f32.mrb[1].mxu0  ;;  %v850_v20 = vpack.c.bf16 %v1061_v17, %v1061_v17  ;;  %v1065_v21 = vpop.f32.mrb[1].mxu1  ;;  %v596_v26 = vmul.f32 %v890_v16, %v890_v16  ;;  %v560_v37 = vsel %vm556_vm1, %v890_v16, 0.0 }
 0x107   : > { %v840_v22 = vpack.c.bf16 %v412_v19, %v412_v19  ;;  %v594_v23 = vmul.f32 %v412_v19, %v412_v19  ;;  %v891_v24 = vpop.f32.mrb[2].mxu0  ;;  %v1067_v25 = vpop.f32.mrb[2].mxu1  ;;  %v557_v30 = vsel %vm556_vm1, %v412_v19, 0.0  ;;  %v848_v36 = vpack.c.bf16 %v1065_v21, %v1065_v21 }
 0x108   : > { %542 = vst.msk [vmem:[%s1059_s25 + $0x8] sm:$0xf] %vm539_vm0, %v842_v18  ;;  %v843_v27 = vpack.c.bf16 %v891_v24, %v891_v24  ;;  %v415_v28 = vpop.f32.mrb[3].mxu0  ;;  %550 = vst.msk [vmem:[%s1059_s25 + $0x28] sm:$0xf] %vm539_vm0, %v850_v20  ;;  %v1073_v29 = vpop.f32.mrb[3].mxu1  ;;  %v597_v34 = vmul.f32 %v891_v24, %v891_v24  ;;  %v851_v40 = vpack.c.bf16 %v1067_v25, %v1067_v25 }
 0x109   : > { %540 = vst.msk [vmem:[%s1059_s25] sm:$0xf] %vm539_vm0, %v840_v22  ;;  %v841_v31 = vpack.c.bf16 %v415_v28, %v415_v28  ;;  %v558_v32 = vsel %vm556_vm1, %v415_v28, 0.0  ;;  %v595_v33 = vmul.f32 %v415_v28, %v415_v28  ;;  %v610_v38 = vsel %vm556_vm1, %v594_v23, 0.0  ;;  %548 = vst.msk [vmem:[%s1059_s25 + $0x20] sm:$0xf] %vm539_vm0, %v848_v36 }
 0x10a   : > { %543 = vst.msk [vmem:[%s1059_s25 + $0xc] sm:$0xf] %vm539_vm0, %v843_v27  ;;  %v559_v35 = vadd.f32 %v558_v32, %v557_v30  ;;  %v613_v43 = vsel %vm556_vm1, %v596_v26, 0.0  ;;  %551 = vst.msk [vmem:[%s1059_s25 + $0x2c] sm:$0xf] %vm539_vm0, %v851_v40  ;;  %v849_v45 = vpack.c.bf16 %v1073_v29, %v1073_v29  ;;  %v562_v47 = vsel %vm556_vm1, %v891_v24, 0.0 }
 0x10b   : > { %541 = vst.msk [vmem:[%s1059_s25 + $0x4] sm:$0xf] %vm539_vm0, %v841_v31  ;;  %v611_v39 = vsel %vm556_vm1, %v595_v33, 0.0  ;;  %v615_v48 = vsel %vm556_vm1, %v597_v34, 0.0  ;;  %v602_v7 = vmul.f32 %v1065_v21, %v1065_v21  ;;  %v572_v18 = vsel %vm556_vm1, %v1065_v21, 0.0 }
 0x10c   : > { %v561_v41 = vadd.f32 %v560_v37, %v559_v35  ;;  %v612_v42 = vadd.f32 %v611_v39, %v610_v38  ;;  %549 = vst.msk [vmem:[%s1059_s25 + $0x24] sm:$0xf] %vm539_vm0, %v849_v45  ;;  %v603_v27 = vmul.f32 %v1073_v29, %v1073_v29  ;;  %v604_v21 = vmul.f32 %v1061_v17, %v1061_v17 }
 0x10d   : > { %v894_v44 = vpop.f32.mrb[4].mxu0  ;;  %v1097_v46 = vpop.f32.mrb[4].mxu1  ;;  %v625_v26 = vsel %vm556_vm1, %v602_v7, 0.0  ;;  %v574_v31 = vsel %vm556_vm1, %v1073_v29, 0.0  ;;  %v576_v34 = vsel %vm556_vm1, %v1061_v17, 0.0  ;;  %v605_v35 = vmul.f32 %v1067_v25, %v1067_v25 }
 0x10e   : > { %v614_v49 = vadd.f32 %v613_v43, %v612_v42  ;;  %v846_v50 = vpack.c.bf16 %v894_v44, %v894_v44  ;;  %v428_v51 = vpop.f32.mrb[5].mxu0  ;;  %v460_v52 = vpop.f32.mrb[5].mxu1  ;;  %v563_v54 = vadd.f32 %v562_v47, %v561_v41  ;;  %v600_v2 = vmul.f32 %v894_v44, %v894_v44 }
 0x10f   : > { %v844_v53 = vpack.c.bf16 %v428_v51, %v428_v51  ;;  %v564_v55 = vsel %vm556_vm1, %v428_v51, 0.0  ;;  %v598_v56 = vmul.f32 %v428_v51, %v428_v51  ;;  %v895_v57 = vpop.f32.mrb[6].mxu0  ;;  %v1104_v58 = vpop.f32.mrb[6].mxu1  ;;  %v854_v8 = vpack.c.bf16 %v1097_v46, %v1097_v46 }
 0x110   : > { %546 = vst.msk [vmem:[%s1059_s25 + $0x18] sm:$0xf] %vm539_vm0, %v846_v50  ;;  %v616_v59 = vadd.f32 %v615_v48, %v614_v49  ;;  %v847_v60 = vpack.c.bf16 %v895_v57, %v895_v57  ;;  %v431_v61 = vpop.f32.mrb[7].mxu0  ;;  %v463_v62 = vpop.f32.mrb[7].mxu1  ;;  %v565_v63 = vadd.f32 %v564_v55, %v563_v54  ;;  %v568_v9 = vsel %vm556_vm1, %v894_v44, 0.0 }
 0x111   : > { %544 = vst.msk [vmem:[%s1059_s25 + $0x10] sm:$0xf] %vm539_vm0, %v844_v53  ;;  %v617_v0 = vsel %vm556_vm1, %v598_v56, 0.0  ;;  %v845_v1 = vpack.c.bf16 %v431_v61, %v431_v61  ;;  %v566_v4 = vsel %vm556_vm1, %v431_v61, 0.0  ;;  %v599_v5 = vmul.f32 %v431_v61, %v431_v61  ;;  %554 = vst.msk [vmem:[%s1059_s25 + $0x38] sm:$0xf] %vm539_vm0, %v854_v8 }
 0x112   : > { %v618_v3 = vadd.f32 %v617_v0, %v616_v59  ;;  %547 = vst.msk [vmem:[%s1059_s25 + $0x1c] sm:$0xf] %vm539_vm0, %v847_v60  ;;  %v567_v6 = vadd.f32 %v566_v4, %v565_v63  ;;  %v601_v10 = vmul.f32 %v895_v57, %v895_v57  ;;  %v852_v12 = vpack.c.bf16 %v460_v52, %v460_v52 }
 0x113   : > { %545 = vst.msk [vmem:[%s1059_s25 + $0x14] sm:$0xf] %vm539_vm0, %v845_v1  ;;  %v619_v11 = vsel %vm556_vm1, %v599_v5, 0.0  ;;  %v621_v15 = vsel %vm556_vm1, %v600_v2, 0.0  ;;  %v570_v16 = vsel %vm556_vm1, %v895_v57, 0.0  ;;  %v855_v19 = vpack.c.bf16 %v1104_v58, %v1104_v58 }
 0x114   : > { %v569_v13 = vadd.f32 %v568_v9, %v567_v6  ;;  %v620_v14 = vadd.f32 %v619_v11, %v618_v3  ;;  %552 = vst.msk [vmem:[%s1059_s25 + $0x30] sm:$0xf] %vm539_vm0, %v852_v12  ;;  %v853_v23 = vpack.c.bf16 %v463_v62, %v463_v62  ;;  %v623_v24 = vsel %vm556_vm1, %v601_v10, 0.0 }
 0x115   : > { %555 = vst.msk [vmem:[%s1059_s25 + $0x3c] sm:$0xf] %vm539_vm0, %v855_v19  ;;  %v627_v36 = vsel %vm556_vm1, %v603_v27, 0.0  ;;  %v606_v37 = vmul.f32 %v460_v52, %v460_v52  ;;  %v629_v40 = vsel %vm556_vm1, %v604_v21, 0.0  ;;  %v578_v41 = vsel %vm556_vm1, %v1067_v25, 0.0 }
 0x116   : > { %v622_v20 = vadd.f32 %v621_v15, %v620_v14  ;;  %v571_v22 = vadd.f32 %v570_v16, %v569_v13  ;;  %553 = vst.msk [vmem:[%s1059_s25 + $0x34] sm:$0xf] %vm539_vm0, %v853_v23  ;;  %v580_v29 = vsel %vm556_vm1, %v460_v52, 0.0  ;;  %v631_v44 = vsel %vm556_vm1, %v605_v35, 0.0 }
 0x117   : > { %v633_v17 = vsel %vm556_vm1, %v606_v37, 0.0  ;;  %v607_v45 = vmul.f32 %v463_v62, %v463_v62  ;;  %v608_v49 = vmul.f32 %v1097_v46, %v1097_v46  ;;  %v582_v50 = vsel %vm556_vm1, %v463_v62, 0.0 }
 0x118   : > { %v573_v28 = vadd.f32 %v572_v18, %v571_v22  ;;  %v624_v30 = vadd.f32 %v623_v24, %v622_v20  ;;  %v584_v25 = vsel %vm556_vm1, %v1097_v46, 0.0  ;;  %v609_v52 = vmul.f32 %v1104_v58, %v1104_v58 }
 0x119   : > { %v635_v54 = vsel %vm556_vm1, %v607_v45, 0.0  ;;  %v637_v57 = vsel %vm556_vm1, %v608_v49, 0.0  ;;  %v586_v59 = vsel %vm556_vm1, %v1104_v58, 0.0 }
 0x11a   : > { %v626_v32 = vadd.f32 %v625_v26, %v624_v30  ;;  %v575_v33 = vadd.f32 %v574_v31, %v573_v28  ;;  %v639_v62 = vsel %vm556_vm1, %v609_v52, 0.0 }
 0x11c   : > { %v577_v38 = vadd.f32 %v576_v34, %v575_v33  ;;  %v628_v39 = vadd.f32 %v627_v36, %v626_v32 }
 0x11e   : > { %v630_v42 = vadd.f32 %v629_v40, %v628_v39  ;;  %v579_v43 = vadd.f32 %v578_v41, %v577_v38 }
 0x120   : > { %v581_v47 = vadd.f32 %v580_v29, %v579_v43  ;;  %v632_v48 = vadd.f32 %v631_v44, %v630_v42 }
 0x122   : > { %v634_v51 = vadd.f32 %v633_v17, %v632_v48  ;;  %v583_v53 = vadd.f32 %v582_v50, %v581_v47 }
 0x124   : > { %v585_v55 = vadd.f32 %v584_v25, %v583_v53  ;;  %v636_v56 = vadd.f32 %v635_v54, %v634_v51 }
 0x126   : > { %v587_v60 = vadd.f32 %v586_v59, %v585_v55  ;;  %v638_v61 = vadd.f32 %v637_v57, %v636_v56 }
 0x128   : > { %v588_v63 = vrot.slane %v587_v60, 4  ;;  %v640_v0 = vadd.f32 %v639_v62, %v638_v61 }
 0x12a   : > { %v589_v46 = vadd.f32 %v588_v63, %v587_v60  ;;  %v641_v1 = vrot.slane %v640_v0, 4 }
 0x12c   : > { %v590_v2 = vrot.slane %v589_v46, 2  ;;  %v642_v3 = vadd.f32 %v641_v1, %v640_v0 }
 0x12e   : > { %v591_v4 = vadd.f32 %v590_v2, %v589_v46  ;;  %v643_v5 = vrot.slane %v642_v3, 2 }
 0x130   : > { %v592_v6 = vrot.slane %v591_v4, 1  ;;  %v644_v7 = vadd.f32 %v643_v5, %v642_v3 }
 0x132   : > { %v645_v8 = vrot.slane %v644_v7, 1  ;;  %v593_v58 = vadd.f32 %v592_v6, %v591_v4 }
 0x134   : > { %v646_v9 = vadd.f32 %v645_v8, %v644_v7 }
 0x136   : > { %v648_v10 = vsel %vm647_vm2, %v593_v58, %v646_v9 }
 0x137   : > { %650 = vst.msk [vmem:[%s248_s29] sm:$0x3] %vm649_vm3, %v648_v10 }
 0x138 PF: > { %s14_s14 = sadd.s32 1, %s982_s14   ;;  %s1184_s12 = smov %s978_s13 }
 0x139   : > { %p11_p5 = scmp.ge.s32.totalorder %s14_s14, 6   ;;  %s1185_s13 = smov %s1187_s15 }
 0x13b   :  { %13 = sbr.rel (!%p11_p5) target bundleno = 2 (0x2), region = 73 }

// kernel: tile.68
= control target key start
LH: loop header
LB: loop body
LE: loop exit
PB: predicated region body
PF: predicated region fallthrough
CT: control target
= control target key end

     0   :  { %s28_s0 = inlined_call_operand.vmem [shape: f32[16], index: 0, kind: input, shape index: {}]   ;;  %s29_s1 = inlined_call_operand.vmem [shape: f32[16,16], index: 1, kind: output, shape index: {}]  }
   0x1   :  { %v4_v0 = vld [vmem:[%s28_s0] ss:$0 sm:$0xff] }
   0x2   :  { %5 = vst [vmem:[%s29_s1] sm:$0xff] %v4_v0  ;;  %8 = vst [vmem:[%s29_s1 + $0x8] sm:$0xff] %v4_v0 }

// kernel: tile.69
= control target key start
LH: loop header
LB: loop body
LE: loop exit
PB: predicated region body
PF: predicated region fallthrough
CT: control target
= control target key end

     0   :  { %s7_s6 = smov 3  ;;  %s21_s9 = smov 3  ;;  %vm4_vm0 = vcmask 130048   ;;  %vm11_vm1 = vcmask 1048448   ;;  %vm18_vm2 = vcmask 917248   ;;  %vm25_vm3 = vcmask 786048   ;;  %s128_s0 = inlined_call_operand.vmem [shape: f32[16,16], index: 0, kind: input, shape index: {}]   ;;  %s129_s1 = inlined_call_operand.vmem [shape: f32[1,256], index: 1, kind: output, shape index: {}]  }
   0x1   :  { %v66_v0 = vld [vmem:[%s128_s0 + $0x7] ss:$8 sm:%s7_s6]   ;;  %s81_s10 = smov 112   ;;  %v68_v1 = vld [vmem:[%s128_s0 + $0x5] ss:$8 sm:%s21_s9]   ;;  %s14_s13 = smov 3 }
   0x2   :  { %9 = vrot.lane.b32.xlu0 %v66_v0, %s81_s10  ;;  %s82_s14 = smov 80   ;;  %v67_v2 = vld [vmem:[%s128_s0 + $0x6] ss:$8 sm:%s14_s13]   ;;  %s28_s17 = smov 3  ;;  %vm32_vm4 = vcmask 654848   ;;  %vm39_vm5 = vcmask 523648  }
   0x3   :  { %23 = vrot.lane.b32.xlu1 %v68_v1, %s82_s14  ;;  %v69_v3 = vld [vmem:[%s128_s0 + $0x4] ss:$8 sm:%s28_s17]   ;;  %s35_s20 = smov 3  ;;  %s42_s21 = smov 3  ;;  %vm46_vm6 = vcmask 392448   ;;  %vm53_vm7 = vcmask 261248  }
   0x4   :  { %s83_s22 = smov 96   ;;  %s84_s23 = smov 64   ;;  %v70_v4 = vld [vmem:[%s128_s0 + $0x3] ss:$8 sm:%s35_s20]   ;;  %v71_v5 = vld [vmem:[%s128_s0 + $0x2] ss:$8 sm:%s42_s21]  }
   0x5   :  { %s2_s26 = smov 3  ;;  %s49_s29 = smov 3 }
   0x6   :  { %16 = vrot.lane.b32.xlu0 %v67_v2, %s83_s22  ;;  %v3_v6 = vld [vmem:[%s128_s0] ss:$8 sm:%s2_s26]   ;;  %s85_s3 = smov 48   ;;  %s86_s4 = smov 32  }
   0x7   :  { %30 = vrot.lane.b32.xlu1 %v69_v3, %s84_s23  ;;  %5 = vst.msk [vmem:[#allocation0] ss:$8 sm:$0x3] %vm4_vm0, %v3_v6   ;;  %v72_v7 = vld [vmem:[%s128_s0 + $0x1] ss:$8 sm:%s49_s29]   ;;  %s87_s0 = smov 16  }
   0xa   :  { %37 = vrot.lane.b32.xlu0 %v70_v4, %s85_s3 }
   0xb   :  { %44 = vrot.lane.b32.xlu1 %v71_v5, %s86_s4 }
   0xe   :  { %51 = vrot.lane.b32.xlu0 %v72_v7, %s87_s0 }
  0x74   :  { %v10_v8 = vpop.permute.xlu0 %9  }
  0x75   :  { %12 = vst.msk [vmem:[#allocation0] ss:$8 sm:$0x3] %vm11_vm1, %v10_v8   ;;  %v24_v9 = vpop.permute.xlu1 %23  }
  0x78   :  { %v17_v10 = vpop.permute.xlu0 %16  }
  0x79   :  { %19 = vst.msk [vmem:[#allocation0] ss:$8 sm:$0x3] %vm18_vm2, %v17_v10   ;;  %v31_v11 = vpop.permute.xlu1 %30  }
  0x7a   :  { %26 = vst.msk [vmem:[#allocation0] ss:$8 sm:$0x3] %vm25_vm3, %v24_v9  }
  0x7b   :  { %33 = vst.msk [vmem:[#allocation0] ss:$8 sm:$0x3] %vm32_vm4, %v31_v11  }
  0x7c   :  { %v38_v12 = vpop.permute.xlu0 %37  }
  0x7d   :  { %40 = vst.msk [vmem:[#allocation0] ss:$8 sm:$0x3] %vm39_vm5, %v38_v12   ;;  %v45_v13 = vpop.permute.xlu1 %44  }
  0x7e   :  { %47 = vst.msk [vmem:[#allocation0] ss:$8 sm:$0x3] %vm46_vm6, %v45_v13  }
  0x80   :  { %v52_v14 = vpop.permute.xlu0 %51  }
  0x81   :  { %54 = vst.msk [vmem:[#allocation0] ss:$8 sm:$0x3] %vm53_vm7, %v52_v14  }
  0x88   :  { %v58_v15 = vld [vmem:[#allocation0] sm:$0x1]  ;;  %v62_v16 = vld [vmem:[#allocation0 + $0x8] sm:$0x1] }
  0x89   :  { %60 = vst [vmem:[%s129_s1] sm:$0x1] %v58_v15  ;;  %73 = vst [vmem:[%s129_s1 + $0x1] sm:$0x1] %v62_v16 }

// kernel: generator_forward.14
= control target key start
LH: loop header
LB: loop body
LE: loop exit
PB: predicated region body
PF: predicated region fallthrough
CT: control target
= control target key end

     0   :  { %v28_v0 = vlaneseq  ;;  %s164_s0 = inlined_call_operand.vmem [shape: bf16[32,256], index: 0, kind: input, shape index: {}]   ;;  %s165_s1 = inlined_call_operand.vmem [shape: f32[1,256], index: 1, kind: input, shape index: {}]   ;;  %s166_s2 = inlined_call_operand.vmem [shape: f32[1,256], index: 2, kind: input, shape index: {}]   ;;  %s167_s3 = inlined_call_operand.vmem [shape: bf16[32,256], index: 3, kind: output, shape index: {}]  }
   0x1   :  { %v14_v1 = vld [vmem:[%s164_s0] sm:$0xff]  ;;  %v15_v3 = vld [vmem:[%s164_s0 + $0x8] sm:$0xff]  ;;  %v16_v4 = vld [vmem:[%s164_s0 + $0x10] sm:$0xff] }
   0x2   :  { %v29_v2 = vshrl.u32 %v28_v0, 7  ;;  %v17_v5 = vld [vmem:[%s164_s0 + $0x18] sm:$0xff]  ;;  %v18_v6 = vunpack.c.l.bf16 %v14_v1  ;;  %v19_v7 = vunpack.c.h.bf16 %v14_v1  ;;  %v26_v8 = vld [vmem:[%s165_s1] sm:$0x3]  ;;  %v20_v12 = vunpack.c.l.bf16 %v15_v3 }
   0x3   :  { %v46_v9 = vld [vmem:[%s166_s2] sm:$0x3]  ;;  %v21_v13 = vunpack.c.h.bf16 %v15_v3  ;;  %v22_v14 = vunpack.c.l.bf16 %v16_v4  ;;  %v23_v15 = vunpack.c.h.bf16 %v16_v4  ;;  %v24_v16 = vunpack.c.l.bf16 %v17_v5 }
   0x4   :  { %v30_v10 = vsub.s32 0, %v29_v2  ;;  %v34_v11 = vsub.s32 1, %v29_v2  ;;  %v25_v17 = vunpack.c.h.bf16 %v17_v5 }
   0x6   :  { %v31_v18 = vrot.slane %v26_v8, %v30_v10  ;;  %v35_v19 = vrot.slane %v26_v8, %v34_v11  ;;  %v51_v20 = vrot.slane %v46_v9, %v30_v10  ;;  %v55_v21 = vrot.slane %v46_v9, %v34_v11 }
   0x8   :  { %v38_v22 = vmul.f32 %v31_v18, %v18_v6  ;;  %v39_v23 = vmul.f32 %v35_v19, %v19_v7  ;;  %v40_v24 = vmul.f32 %v31_v18, %v20_v12  ;;  %v41_v25 = vmul.f32 %v35_v19, %v21_v13 }
   0x9   :  { %v42_v26 = vmul.f32 %v31_v18, %v22_v14  ;;  %v43_v27 = vmul.f32 %v35_v19, %v23_v15  ;;  %v44_v28 = vmul.f32 %v31_v18, %v24_v16  ;;  %v45_v29 = vmul.f32 %v35_v19, %v25_v17 }
   0xa   :  { %v58_v30 = vadd.f32 %v51_v20, %v38_v22  ;;  %v59_v31 = vadd.f32 %v55_v21, %v39_v23  ;;  %v60_v32 = vadd.f32 %v51_v20, %v40_v24  ;;  %v61_v33 = vadd.f32 %v55_v21, %v41_v25 }
   0xb   :  { %v62_v34 = vadd.f32 %v51_v20, %v42_v26  ;;  %v63_v35 = vadd.f32 %v55_v21, %v43_v27  ;;  %v64_v36 = vadd.f32 %v51_v20, %v44_v28  ;;  %v65_v37 = vadd.f32 %v55_v21, %v45_v29 }
   0xc   :  { %v66_v38 = vmax.f32 %v58_v30, 0.0  ;;  %v67_v39 = vmax.f32 %v59_v31, 0.0  ;;  %v68_v40 = vmax.f32 %v60_v32, 0.0  ;;  %v69_v41 = vmax.f32 %v61_v33, 0.0 }
   0xd   :  { %v70_v42 = vmax.f32 %v62_v34, 0.0  ;;  %v71_v43 = vmax.f32 %v63_v35, 0.0  ;;  %v72_v44 = vmax.f32 %v64_v36, 0.0  ;;  %v73_v45 = vmax.f32 %v65_v37, 0.0 }
   0xe   :  { %v110_v46 = vpack.c.bf16 %v67_v39, %v66_v38  ;;  %v111_v47 = vpack.c.bf16 %v69_v41, %v68_v40 }
   0xf   :  { %v112_v48 = vpack.c.bf16 %v71_v43, %v70_v42  ;;  %v113_v49 = vpack.c.bf16 %v73_v45, %v72_v44 }
  0x10   :  { %98 = vst [vmem:[%s167_s3] sm:$0xff] %v110_v46  ;;  %99 = vst [vmem:[%s167_s3 + $0x8] sm:$0xff] %v111_v47 }
  0x11   :  { %100 = vst [vmem:[%s167_s3 + $0x10] sm:$0xff] %v112_v48  ;;  %101 = vst [vmem:[%s167_s3 + $0x18] sm:$0xff] %v113_v49 }

// kernel: generator_forward.15
= control target key start
LH: loop header
LB: loop body
LE: loop exit
PB: predicated region body
PF: predicated region fallthrough
CT: control target
= control target key end

     0   :  { %s2121_s12 = smov 0   ;;  %s2123_s13 = smov 0   ;;  %s2717_s0 = inlined_call_operand.vmem [shape: bf16[4,512,64], index: 0, kind: input, shape index: {}]   ;;  %s2718_s1 = inlined_call_operand.vmem [shape: bf16[4,64,8], index: 1, kind: input, shape index: {}]   ;;  %s2719_s2 = inlined_call_operand.vmem [shape: bf16[4,512,8], index: 2, kind: output, shape index: {0}]   ;;  %s2720_s3 = inlined_call_operand.vmem [shape: f32[4,1,2,8], index: 3, kind: output, shape index: {1}]  }
   0x1   :  { %s2125_s14 = smov 0  }
   0x2 LB: > { %s26_s15 = sadd.s32 1, %s2095_s13  ;;  %p1692_p0 = scmp.ge.s32.totalorder %s2099_s14, 1  ;;  %s2099_s14 = sphi %s2125_s14, %s14_s14   ;;  %s2095_s13 = sphi %s2123_s13, %s2722_s13   ;;  %s2091_s12 = sphi %s2121_s12, %s2721_s12  }
   0x3   : > { %p28_p1 = scmp.ge.s32.totalorder %s26_s15, 4  ;;  %p173_p2 = scmp.lt.s32.totalorder %s2099_s14, 5 }
   0x5   : > { %s2724_s15 = smov (%p28_p1, %s26_s15), 0  ;;  %p174_p3 = pnand %p1692_p0, %p173_p2 }
   0x6   : > { %p218_p4 = scmp.lt.s32.totalorder (!%p174_p3), %s2091_s12, 3  ;;  %vm506_vm0 = vcmask (!%p174_p3), 523264   ;;  %vm1148_vm1 = vcmask (!%p174_p3), 60416   ;;  %vm1213_vm2 = vcmask (!%p174_p3), 64512   ;;  %vm1544_vm3 = vcmask (!%p174_p3), 1040384  }
   0x7   : > { %177 = sbr.rel (%p174_p3) target bundleno = 392 (0x188), region = 28  ;;  %vm1546_vm4 = vcmask (!%p174_p3), 58368  }
   0xe   : > { %s2726_s12 = smov (!%p218_p4, %s2091_s12), 3 }
   0xf   : > { %s1834_s16 = sshll.u32 %s2726_s12, 8  ;;  %s1835_s17 = sshll.u32 %s2726_s12, 5 }
  0x10   : > { %s231_s20 = scalar_lea.vmem %s2718_s1, %s1835_s17  ;;  %s2151_s23 = scalar_lea.vmem %s2717_s0, %s1834_s16 }
  0x11   : > { %v2041_v0 = vld [vmem:[%s231_s20] sm:$0xff]   ;;  %v2042_v1 = vld [vmem:[%s231_s20 + $0x8] sm:$0xff]   ;;  %v2043_v2 = vld [vmem:[%s231_s20 + $0x10] sm:$0xff]   ;;  %s2222_s26 = scalar_lea.vmem %s2719_s2, %s1834_s16  ;;  %s1699_s27 = sshll.u32 %s2726_s12, 1 }
  0x12   : > { %1937 = vmatprep.subr.bf16.mxu0 %v2041_v0  ;;  %2009 = vmatprep.subr.bf16.mxu1 %v2041_v0  ;;  %v2045_v3 = vld [vmem:[%s2151_s23] sm:$0xff]   ;;  %v2044_v4 = vld [vmem:[%s231_s20 + $0x18] sm:$0xff]   ;;  %v2046_v5 = vld [vmem:[%s2151_s23 + $0x8] sm:$0xff]   ;;  %s248_s30 = scalar_lea.vmem %s2720_s3, %s1699_s27 }
  0x13   : > { %1938 = vmatpush3.bf16.msra.mxu0 %v2041_v0  ;;  %2013 = vmatpush3.bf16.msra.mxu1 %v2041_v0  ;;  %v2047_v6 = vld [vmem:[%s2151_s23 + $0x10] sm:$0xff]   ;;  %v2048_v7 = vld [vmem:[%s2151_s23 + $0x18] sm:$0xff]   ;;  %v2061_v8 = vld [vmem:[%s2151_s23 + $0x80] sm:$0xff]  }
  0x14   : > { %1939 = vmatprep.subr.bf16.mxu0 %v2042_v1  ;;  %2010 = vmatprep.subr.bf16.mxu1 %v2042_v1  ;;  %v2062_v9 = vld [vmem:[%s2151_s23 + $0x88] sm:$0xff]   ;;  %v2063_v10 = vld [vmem:[%s2151_s23 + $0x90] sm:$0xff]   ;;  %v2049_v11 = vld [vmem:[%s2151_s23 + $0x20] sm:$0xff]  }
  0x15   : > { %1945 = vmatprep.mubr.msk.bf16.mxu0 %vm506_vm0, %v2045_v3  ;;  %1977 = vmatprep.mubr.msk.bf16.mxu1 %vm506_vm0, %v2061_v8  ;;  %v2064_v12 = vld [vmem:[%s2151_s23 + $0x98] sm:$0xff]   ;;  %v2065_v13 = vld [vmem:[%s2151_s23 + $0xa0] sm:$0xff]   ;;  %v2050_v14 = vld [vmem:[%s2151_s23 + $0x28] sm:$0xff]  }
  0x16   : > { %v2051_v15 = vld [vmem:[%s2151_s23 + $0x30] sm:$0xff]   ;;  %v2066_v16 = vld [vmem:[%s2151_s23 + $0xa8] sm:$0xff]   ;;  %v2052_v18 = vld [vmem:[%s2151_s23 + $0x38] sm:$0xff]  }
  0x17   : > { %1940 = vmatpush3.bf16.msra.mxu0 %v2042_v1  ;;  %2014 = vmatpush3.bf16.msra.mxu1 %v2042_v1  ;;  %v2067_v17 = vld [vmem:[%s2151_s23 + $0xb0] sm:$0xff]   ;;  %v2053_v19 = vld [vmem:[%s2151_s23 + $0x40] sm:$0xff]   ;;  %v2068_v20 = vld [vmem:[%s2151_s23 + $0xb8] sm:$0xff]  }
  0x18   : > { %1941 = vmatprep.subr.bf16.mxu0 %v2043_v2  ;;  %2011 = vmatprep.subr.bf16.mxu1 %v2043_v2  ;;  %v2069_v21 = vld [vmem:[%s2151_s23 + $0xc0] sm:$0xff]   ;;  %v2054_v22 = vld [vmem:[%s2151_s23 + $0x48] sm:$0xff]   ;;  %v2055_v23 = vld [vmem:[%s2151_s23 + $0x50] sm:$0xff]  }
  0x19   : > { %v2070_v24 = vld [vmem:[%s2151_s23 + $0xc8] sm:$0xff]   ;;  %v2071_v25 = vld [vmem:[%s2151_s23 + $0xd0] sm:$0xff]   ;;  %v2056_v26 = vld [vmem:[%s2151_s23 + $0x58] sm:$0xff]  }
  0x1a   : > { %v2057_v27 = vld [vmem:[%s2151_s23 + $0x60] sm:$0xff]   ;;  %v2072_v28 = vld [vmem:[%s2151_s23 + $0xd8] sm:$0xff]   ;;  %v2058_v30 = vld [vmem:[%s2151_s23 + $0x68] sm:$0xff]  }
  0x1b   : > { %1942 = vmatpush3.bf16.msra.mxu0 %v2043_v2  ;;  %2015 = vmatpush3.bf16.msra.mxu1 %v2043_v2  ;;  %v2073_v29 = vld [vmem:[%s2151_s23 + $0xe0] sm:$0xff]   ;;  %v2059_v31 = vld [vmem:[%s2151_s23 + $0x70] sm:$0xff]   ;;  %v2074_v32 = vld [vmem:[%s2151_s23 + $0xe8] sm:$0xff]  }
  0x1c   : > { %1943 = vmatprep.subr.bf16.mxu0 %v2044_v4  ;;  %2012 = vmatprep.subr.bf16.mxu1 %v2044_v4  ;;  %v2075_v33 = vld [vmem:[%s2151_s23 + $0xf0] sm:$0xff]   ;;  %v2060_v34 = vld [vmem:[%s2151_s23 + $0x78] sm:$0xff]  }
  0x1d   : > { %v2076_v35 = vld [vmem:[%s2151_s23 + $0xf8] sm:$0xff]  }
  0x1f   : > { %1944 = vmatpush3.bf16.msra.mxu0 %v2044_v4  ;;  %2016 = vmatpush3.bf16.msra.mxu1 %v2044_v4 }
  0x22   : > { %1946 = vmatmul.mubr.msk.bf16.vlgmr.msra.gmra.mrb[0].mxu0 %vm506_vm0, %v2046_v5  ;;  %1978 = vmatmul.mubr.msk.bf16.vlgmr.msra.gmra.mrb[0].mxu1 %vm506_vm0, %v2062_v9 }
  0x23   : > { %1949 = vmatprep.mubr.msk.bf16.mxu0 %vm506_vm0, %v2047_v6  ;;  %1981 = vmatprep.mubr.msk.bf16.mxu1 %vm506_vm0, %v2063_v10 }
  0x2a   : > { %1950 = vmatmul.mubr.msk.bf16.gmra.mrb[4].mxu0 %vm506_vm0, %v2048_v7  ;;  %1982 = vmatmul.mubr.msk.bf16.gmra.mrb[4].mxu1 %vm506_vm0, %v2064_v12 }
  0x2b   : > { %1953 = vmatprep.mubr.msk.bf16.mxu0 %vm506_vm0, %v2049_v11  ;;  %1985 = vmatprep.mubr.msk.bf16.mxu1 %vm506_vm0, %v2065_v13 }
  0x32   : > { %1954 = vmatmul.mubr.msk.bf16.gmra.mrb[8].mxu0 %vm506_vm0, %v2050_v14  ;;  %1986 = vmatmul.mubr.msk.bf16.gmra.mrb[8].mxu1 %vm506_vm0, %v2066_v16 }
  0x33   : > { %1957 = vmatprep.mubr.msk.bf16.mxu0 %vm506_vm0, %v2051_v15  ;;  %1989 = vmatprep.mubr.msk.bf16.mxu1 %vm506_vm0, %v2067_v17 }
  0x3a   : > { %1958 = vmatmul.mubr.msk.bf16.gmra.mrb[12].mxu0 %vm506_vm0, %v2052_v18  ;;  %1990 = vmatmul.mubr.msk.bf16.gmra.mrb[12].mxu1 %vm506_vm0, %v2068_v20 }
  0x3b   : > { %1961 = vmatprep.mubr.msk.bf16.mxu0 %vm506_vm0, %v2053_v19  ;;  %1993 = vmatprep.mubr.msk.bf16.mxu1 %vm506_vm0, %v2069_v21 }
  0x42   : > { %1962 = vmatmul.mubr.msk.bf16.gmra.mrb[16].mxu0 %vm506_vm0, %v2054_v22  ;;  %1994 = vmatmul.mubr.msk.bf16.gmra.mrb[16].mxu1 %vm506_vm0, %v2070_v24 }
  0x43   : > { %1965 = vmatprep.mubr.msk.bf16.mxu0 %vm506_vm0, %v2055_v23  ;;  %1997 = vmatprep.mubr.msk.bf16.mxu1 %vm506_vm0, %v2071_v25 }
  0x4a   : > { %1966 = vmatmul.mubr.msk.bf16.gmra.mrb[20].mxu0 %vm506_vm0, %v2056_v26  ;;  %1998 = vmatmul.mubr.msk.bf16.gmra.mrb[20].mxu1 %vm506_vm0, %v2072_v28 }
  0x4b   : > { %1969 = vmatprep.mubr.msk.bf16.mxu0 %vm506_vm0, %v2057_v27  ;;  %2001 = vmatprep.mubr.msk.bf16.mxu1 %vm506_vm0, %v2073_v29 }
  0x52   : > { %1970 = vmatmul.mubr.msk.bf16.gmra.mrb[24].mxu0 %vm506_vm0, %v2058_v30  ;;  %2002 = vmatmul.mubr.msk.bf16.gmra.mrb[24].mxu1 %vm506_vm0, %v2074_v32 }
  0x53   : > { %1973 = vmatprep.mubr.msk.bf16.mxu0 %vm506_vm0, %v2059_v31  ;;  %2005 = vmatprep.mubr.msk.bf16.mxu1 %vm506_vm0, %v2075_v33 }
  0x5a   : > { %1974 = vmatmul.mubr.msk.bf16.gmra.mrb[28].mxu0 %vm506_vm0, %v2060_v34  ;;  %2006 = vmatmul.mubr.msk.bf16.gmra.mrb[28].mxu1 %vm506_vm0, %v2076_v35 }
  0xf5   : > { %v1947_v36 = vpop.f32.mrb[0].mxu0  ;;  %v2232_v51 = vpop.f32.mrb[0].mxu1 }
  0xf6   : > { %v1839_v37 = vpack.c.bf16 %v1947_v36, %v1947_v36  ;;  %v637_v38 = vpop.f32.mrb[1].mxu0  ;;  %v1349_v42 = vmul.f32 %v1947_v36, %v1947_v36  ;;  %v1217_v52 = vsel %vm1213_vm2, %v1947_v36, 0.0  ;;  %v1871_v55 = vpack.c.bf16 %v2232_v51, %v2232_v51  ;;  %v2241_v56 = vpop.f32.mrb[1].mxu1 }
  0xf7   : > { %v1837_v39 = vpack.c.bf16 %v637_v38, %v637_v38  ;;  %v1347_v40 = vmul.f32 %v637_v38, %v637_v38  ;;  %v1948_v41 = vpop.f32.mrb[2].mxu0  ;;  %v1214_v45 = vsel %vm1213_vm2, %v637_v38, 0.0  ;;  %v1869_v59 = vpack.c.bf16 %v2241_v56, %v2241_v56  ;;  %v2245_v60 = vpop.f32.mrb[2].mxu1 }
  0xf8   : > { %1151 = vst.msk [vmem:[%s2222_s26 + $0x8] sm:$0xf] %vm1148_vm1, %v1839_v37  ;;  %v1840_v43 = vpack.c.bf16 %v1948_v41, %v1948_v41  ;;  %v640_v44 = vpop.f32.mrb[3].mxu0  ;;  %v1350_v49 = vmul.f32 %v1948_v41, %v1948_v41  ;;  %v1414_v61 = vsel %vm1213_vm2, %v1349_v42, 0.0  ;;  %1183 = vst.msk [vmem:[%s2222_s26 + $0x88] sm:$0xf] %vm1148_vm1, %v1871_v55  ;;  %v1872_v63 = vpack.c.bf16 %v2245_v60, %v2245_v60 }
  0xf9   : > { %1149 = vst.msk [vmem:[%s2222_s26] sm:$0xf] %vm1148_vm1, %v1837_v39  ;;  %v1838_v46 = vpack.c.bf16 %v640_v44, %v640_v44  ;;  %v1215_v47 = vsel %vm1213_vm2, %v640_v44, 0.0  ;;  %v1348_v48 = vmul.f32 %v640_v44, %v640_v44  ;;  %v1411_v53 = vsel %vm1213_vm2, %v1347_v40, 0.0  ;;  %v2252_v0 = vpop.f32.mrb[3].mxu1 }
  0xfa   : > { %1152 = vst.msk [vmem:[%s2222_s26 + $0xc] sm:$0xf] %vm1148_vm1, %v1840_v43  ;;  %v1216_v50 = vadd.f32 %v1215_v47, %v1214_v45  ;;  %v1219_v1 = vsel %vm1213_vm2, %v1948_v41, 0.0  ;;  %v1416_v2 = vsel %vm1213_vm2, %v1350_v49, 0.0  ;;  %1181 = vst.msk [vmem:[%s2222_s26 + $0x80] sm:$0xf] %vm1148_vm1, %v1869_v59  ;;  %v1870_v23 = vpack.c.bf16 %v2252_v0, %v2252_v0 }
  0xfb   : > { %1150 = vst.msk [vmem:[%s2222_s26 + $0x4] sm:$0xf] %vm1148_vm1, %v1838_v46  ;;  %v1412_v54 = vsel %vm1213_vm2, %v1348_v48, 0.0  ;;  %1184 = vst.msk [vmem:[%s2222_s26 + $0x8c] sm:$0xf] %vm1148_vm1, %v1872_v63 }
  0xfc   : > { %v1218_v57 = vadd.f32 %v1217_v52, %v1216_v50  ;;  %v1413_v58 = vadd.f32 %v1412_v54, %v1411_v53  ;;  %1182 = vst.msk [vmem:[%s2222_s26 + $0x84] sm:$0xf] %vm1148_vm1, %v1870_v23 }
  0xfd   : > { %v1951_v62 = vpop.f32.mrb[4].mxu0  ;;  %v2269_v21 = vpop.f32.mrb[4].mxu1 }
  0xfe   : > { %v1415_v3 = vadd.f32 %v1414_v61, %v1413_v58  ;;  %v1843_v4 = vpack.c.bf16 %v1951_v62, %v1951_v62  ;;  %v653_v5 = vpop.f32.mrb[5].mxu0  ;;  %v1220_v7 = vadd.f32 %v1219_v1, %v1218_v57  ;;  %v1353_v17 = vmul.f32 %v1951_v62, %v1951_v62  ;;  %v2275_v24 = vpop.f32.mrb[5].mxu1 }
  0xff   : > { %v1841_v6 = vpack.c.bf16 %v653_v5, %v653_v5  ;;  %v1221_v8 = vsel %vm1213_vm2, %v653_v5, 0.0  ;;  %v1351_v9 = vmul.f32 %v653_v5, %v653_v5  ;;  %v1952_v10 = vpop.f32.mrb[6].mxu0  ;;  %v1225_v25 = vsel %vm1213_vm2, %v1951_v62, 0.0  ;;  %v2281_v29 = vpop.f32.mrb[6].mxu1 }
 0x100   : > { %1155 = vst.msk [vmem:[%s2222_s26 + $0x18] sm:$0xf] %vm1148_vm1, %v1843_v4  ;;  %v1417_v11 = vadd.f32 %v1416_v2, %v1415_v3  ;;  %v1844_v12 = vpack.c.bf16 %v1952_v10, %v1952_v10  ;;  %v656_v13 = vpop.f32.mrb[7].mxu0  ;;  %v1222_v14 = vadd.f32 %v1221_v8, %v1220_v7  ;;  %v1354_v26 = vmul.f32 %v1952_v10, %v1952_v10  ;;  %v2285_v33 = vpop.f32.mrb[7].mxu1 }
 0x101   : > { %1153 = vst.msk [vmem:[%s2222_s26 + $0x10] sm:$0xf] %vm1148_vm1, %v1841_v6  ;;  %v1418_v15 = vsel %vm1213_vm2, %v1351_v9, 0.0  ;;  %v1842_v16 = vpack.c.bf16 %v656_v13, %v656_v13  ;;  %v1223_v19 = vsel %vm1213_vm2, %v656_v13, 0.0  ;;  %v1352_v20 = vmul.f32 %v656_v13, %v656_v13 }
 0x102   : > { %v1419_v18 = vadd.f32 %v1418_v15, %v1417_v11  ;;  %1156 = vst.msk [vmem:[%s2222_s26 + $0x1c] sm:$0xf] %vm1148_vm1, %v1844_v12  ;;  %v1224_v22 = vadd.f32 %v1223_v19, %v1222_v14  ;;  %v1875_v28 = vpack.c.bf16 %v2269_v21, %v2269_v21  ;;  %v1422_v34 = vsel %vm1213_vm2, %v1353_v17, 0.0 }
 0x103   : > { %1154 = vst.msk [vmem:[%s2222_s26 + $0x14] sm:$0xf] %vm1148_vm1, %v1842_v16  ;;  %v1420_v27 = vsel %vm1213_vm2, %v1352_v20, 0.0  ;;  %v1227_v35 = vsel %vm1213_vm2, %v1952_v10, 0.0  ;;  %v1424_v43 = vsel %vm1213_vm2, %v1354_v26, 0.0  ;;  %v1873_v59 = vpack.c.bf16 %v2275_v24, %v2275_v24 }
 0x104   : > { %v1226_v30 = vadd.f32 %v1225_v25, %v1224_v22  ;;  %v1421_v31 = vadd.f32 %v1420_v27, %v1419_v18  ;;  %1187 = vst.msk [vmem:[%s2222_s26 + $0x98] sm:$0xf] %vm1148_vm1, %v1875_v28  ;;  %v1876_v6 = vpack.c.bf16 %v2281_v29, %v2281_v29 }
 0x105   : > { %v1955_v32 = vpop.f32.mrb[8].mxu0  ;;  %v2301_v55 = vpop.f32.mrb[8].mxu1  ;;  %1185 = vst.msk [vmem:[%s2222_s26 + $0x90] sm:$0xf] %vm1148_vm1, %v1873_v59 }
 0x106   : > { %v1847_v36 = vpack.c.bf16 %v1955_v32, %v1955_v32  ;;  %v669_v37 = vpop.f32.mrb[9].mxu0  ;;  %v1423_v38 = vadd.f32 %v1422_v34, %v1421_v31  ;;  %v1228_v40 = vadd.f32 %v1227_v35, %v1226_v30  ;;  %v1357_v50 = vmul.f32 %v1955_v32, %v1955_v32  ;;  %v2307_v61 = vpop.f32.mrb[9].mxu1  ;;  %1188 = vst.msk [vmem:[%s2222_s26 + $0x9c] sm:$0xf] %vm1148_vm1, %v1876_v6 }
 0x107   : > { %v1845_v39 = vpack.c.bf16 %v669_v37, %v669_v37  ;;  %v1229_v41 = vsel %vm1213_vm2, %v669_v37, 0.0  ;;  %v1956_v42 = vpop.f32.mrb[10].mxu0  ;;  %v1355_v44 = vmul.f32 %v669_v37, %v669_v37  ;;  %v1233_v62 = vsel %vm1213_vm2, %v1955_v32, 0.0  ;;  %v2311_v2 = vpop.f32.mrb[10].mxu1 }
 0x108   : > { %1159 = vst.msk [vmem:[%s2222_s26 + $0x28] sm:$0xf] %vm1148_vm1, %v1847_v36  ;;  %v1848_v45 = vpack.c.bf16 %v1956_v42, %v1956_v42  ;;  %v672_v46 = vpop.f32.mrb[11].mxu0  ;;  %v1230_v47 = vadd.f32 %v1229_v41, %v1228_v40  ;;  %v1425_v48 = vadd.f32 %v1424_v43, %v1423_v38  ;;  %v1358_v63 = vmul.f32 %v1956_v42, %v1956_v42  ;;  %v2317_v7 = vpop.f32.mrb[11].mxu1 }
 0x109   : > { %1157 = vst.msk [vmem:[%s2222_s26 + $0x20] sm:$0xf] %vm1148_vm1, %v1845_v39  ;;  %v1846_v49 = vpack.c.bf16 %v672_v46, %v672_v46  ;;  %v1426_v52 = vsel %vm1213_vm2, %v1355_v44, 0.0  ;;  %v1231_v53 = vsel %vm1213_vm2, %v672_v46, 0.0  ;;  %v1356_v54 = vmul.f32 %v672_v46, %v672_v46 }
 0x10a   : > { %1160 = vst.msk [vmem:[%s2222_s26 + $0x2c] sm:$0xf] %vm1148_vm1, %v1848_v45  ;;  %v1427_v57 = vadd.f32 %v1426_v52, %v1425_v48  ;;  %v1232_v58 = vadd.f32 %v1231_v53, %v1230_v47  ;;  %v1430_v8 = vsel %vm1213_vm2, %v1357_v50, 0.0  ;;  %v1235_v9 = vsel %vm1213_vm2, %v1956_v42, 0.0 }
 0x10b   : > { %1158 = vst.msk [vmem:[%s2222_s26 + $0x24] sm:$0xf] %vm1148_vm1, %v1846_v49  ;;  %v1428_v1 = vsel %vm1213_vm2, %v1356_v54, 0.0  ;;  %v1432_v17 = vsel %vm1213_vm2, %v1358_v63, 0.0  ;;  %v1874_v35 = vpack.c.bf16 %v2285_v33, %v2285_v33  ;;  %v1879_v44 = vpack.c.bf16 %v2301_v55, %v2301_v55 }
 0x10c   : > { %v1234_v3 = vadd.f32 %v1233_v62, %v1232_v58  ;;  %v1429_v4 = vadd.f32 %v1428_v1, %v1427_v57 }
 0x10d   : > { %v1959_v5 = vpop.f32.mrb[12].mxu0  ;;  %v2333_v31 = vpop.f32.mrb[12].mxu1  ;;  %1186 = vst.msk [vmem:[%s2222_s26 + $0x94] sm:$0xf] %vm1148_vm1, %v1874_v35  ;;  %1191 = vst.msk [vmem:[%s2222_s26 + $0xa8] sm:$0xf] %vm1148_vm1, %v1879_v44 }
 0x10e   : > { %v1851_v10 = vpack.c.bf16 %v1959_v5, %v1959_v5  ;;  %v685_v11 = vpop.f32.mrb[13].mxu0  ;;  %v1431_v12 = vadd.f32 %v1430_v8, %v1429_v4  ;;  %v1236_v14 = vadd.f32 %v1235_v9, %v1234_v3  ;;  %v1361_v26 = vmul.f32 %v1959_v5, %v1959_v5  ;;  %v2339_v36 = vpop.f32.mrb[13].mxu1 }
 0x10f   : > { %v1849_v13 = vpack.c.bf16 %v685_v11, %v685_v11  ;;  %v1237_v15 = vsel %vm1213_vm2, %v685_v11, 0.0  ;;  %v1960_v16 = vpop.f32.mrb[14].mxu0  ;;  %v1359_v18 = vmul.f32 %v685_v11, %v685_v11  ;;  %v1241_v37 = vsel %vm1213_vm2, %v1959_v5, 0.0  ;;  %v2343_v40 = vpop.f32.mrb[14].mxu1 }
 0x110   : > { %1163 = vst.msk [vmem:[%s2222_s26 + $0x38] sm:$0xf] %vm1148_vm1, %v1851_v10  ;;  %v1852_v19 = vpack.c.bf16 %v1960_v16, %v1960_v16  ;;  %v688_v20 = vpop.f32.mrb[15].mxu0  ;;  %v1238_v22 = vadd.f32 %v1237_v15, %v1236_v14  ;;  %v1433_v23 = vadd.f32 %v1432_v17, %v1431_v12  ;;  %v1362_v38 = vmul.f32 %v1960_v16, %v1960_v16  ;;  %v2349_v45 = vpop.f32.mrb[15].mxu1 }
 0x111   : > { %1161 = vst.msk [vmem:[%s2222_s26 + $0x30] sm:$0xf] %vm1148_vm1, %v1849_v13  ;;  %v1850_v25 = vpack.c.bf16 %v688_v20, %v688_v20  ;;  %v1434_v27 = vsel %vm1213_vm2, %v1359_v18, 0.0  ;;  %v1239_v28 = vsel %vm1213_vm2, %v688_v20, 0.0  ;;  %v1360_v30 = vmul.f32 %v688_v20, %v688_v20 }
 0x112   : > { %1164 = vst.msk [vmem:[%s2222_s26 + $0x3c] sm:$0xf] %vm1148_vm1, %v1852_v19  ;;  %v1435_v32 = vadd.f32 %v1434_v27, %v1433_v23  ;;  %v1240_v34 = vadd.f32 %v1239_v28, %v1238_v22  ;;  %v1438_v46 = vsel %vm1213_vm2, %v1361_v26, 0.0  ;;  %v1243_v47 = vsel %vm1213_vm2, %v1960_v16, 0.0 }
 0x113   : > { %1162 = vst.msk [vmem:[%s2222_s26 + $0x34] sm:$0xf] %vm1148_vm1, %v1850_v25  ;;  %v1436_v39 = vsel %vm1213_vm2, %v1360_v30, 0.0  ;;  %v1440_v58 = vsel %vm1213_vm2, %v1362_v38, 0.0  ;;  %v1877_v13 = vpack.c.bf16 %v2307_v61, %v2307_v61  ;;  %v1880_v23 = vpack.c.bf16 %v2311_v2, %v2311_v2 }
 0x114   : > { %v1242_v41 = vadd.f32 %v1241_v37, %v1240_v34  ;;  %v1437_v42 = vadd.f32 %v1436_v39, %v1435_v32 }
 0x115   : > { %v1963_v43 = vpop.f32.mrb[16].mxu0  ;;  %v2365_v10 = vpop.f32.mrb[16].mxu1  ;;  %1189 = vst.msk [vmem:[%s2222_s26 + $0xa0] sm:$0xf] %vm1148_vm1, %v1877_v13  ;;  %1192 = vst.msk [vmem:[%s2222_s26 + $0xac] sm:$0xf] %vm1148_vm1, %v1880_v23 }
 0x116   : > { %v1855_v48 = vpack.c.bf16 %v1963_v43, %v1963_v43  ;;  %v701_v49 = vpop.f32.mrb[17].mxu0  ;;  %v1439_v50 = vadd.f32 %v1438_v46, %v1437_v42  ;;  %v1244_v53 = vadd.f32 %v1243_v47, %v1242_v41  ;;  %v1365_v5 = vmul.f32 %v1963_v43, %v1963_v43  ;;  %v2371_v14 = vpop.f32.mrb[17].mxu1 }
 0x117   : > { %v1853_v52 = vpack.c.bf16 %v701_v49, %v701_v49  ;;  %v1245_v54 = vsel %vm1213_vm2, %v701_v49, 0.0  ;;  %v1964_v57 = vpop.f32.mrb[18].mxu0  ;;  %v1363_v59 = vmul.f32 %v701_v49, %v701_v49  ;;  %v1249_v15 = vsel %vm1213_vm2, %v1963_v43, 0.0  ;;  %v2375_v18 = vpop.f32.mrb[18].mxu1 }
 0x118   : > { %1167 = vst.msk [vmem:[%s2222_s26 + $0x48] sm:$0xf] %vm1148_vm1, %v1855_v48  ;;  %v1856_v62 = vpack.c.bf16 %v1964_v57, %v1964_v57  ;;  %v704_v63 = vpop.f32.mrb[19].mxu0  ;;  %v1246_v1 = vadd.f32 %v1245_v54, %v1244_v53  ;;  %v1441_v3 = vadd.f32 %v1440_v58, %v1439_v50  ;;  %v1366_v16 = vmul.f32 %v1964_v57, %v1964_v57  ;;  %v2381_v25 = vpop.f32.mrb[19].mxu1 }
 0x119   : > { %1165 = vst.msk [vmem:[%s2222_s26 + $0x40] sm:$0xf] %vm1148_vm1, %v1853_v52  ;;  %v1854_v4 = vpack.c.bf16 %v704_v63, %v704_v63  ;;  %v1442_v6 = vsel %vm1213_vm2, %v1363_v59, 0.0  ;;  %v1247_v8 = vsel %vm1213_vm2, %v704_v63, 0.0  ;;  %v1364_v9 = vmul.f32 %v704_v63, %v704_v63 }
 0x11a   : > { %1168 = vst.msk [vmem:[%s2222_s26 + $0x4c] sm:$0xf] %vm1148_vm1, %v1856_v62  ;;  %v1443_v11 = vadd.f32 %v1442_v6, %v1441_v3  ;;  %v1248_v12 = vadd.f32 %v1247_v8, %v1246_v1  ;;  %v1446_v26 = vsel %vm1213_vm2, %v1365_v5, 0.0  ;;  %v1251_v27 = vsel %vm1213_vm2, %v1964_v57, 0.0 }
 0x11b   : > { %1166 = vst.msk [vmem:[%s2222_s26 + $0x44] sm:$0xf] %vm1148_vm1, %v1854_v4  ;;  %v1444_v17 = vsel %vm1213_vm2, %v1364_v9, 0.0  ;;  %v1448_v39 = vsel %vm1213_vm2, %v1366_v16, 0.0  ;;  %v1878_v58 = vpack.c.bf16 %v2317_v7, %v2317_v7  ;;  %v1883_v8 = vpack.c.bf16 %v2333_v31, %v2333_v31 }
 0x11c   : > { %v1250_v19 = vadd.f32 %v1249_v15, %v1248_v12  ;;  %v1445_v20 = vadd.f32 %v1444_v17, %v1443_v11 }
 0x11d   : > { %v1967_v22 = vpop.f32.mrb[20].mxu0  ;;  %v2397_v53 = vpop.f32.mrb[20].mxu1  ;;  %1190 = vst.msk [vmem:[%s2222_s26 + $0xa4] sm:$0xf] %vm1148_vm1, %v1878_v58  ;;  %1195 = vst.msk [vmem:[%s2222_s26 + $0xb8] sm:$0xf] %vm1148_vm1, %v1883_v8  ;;  %v1884_v58 = vpack.c.bf16 %v2343_v40, %v2343_v40 }
 0x11e   : > { %v1859_v28 = vpack.c.bf16 %v1967_v22, %v1967_v22  ;;  %v717_v30 = vpop.f32.mrb[21].mxu0  ;;  %v1447_v32 = vadd.f32 %v1446_v26, %v1445_v20  ;;  %v1252_v35 = vadd.f32 %v1251_v27, %v1250_v19  ;;  %v1369_v48 = vmul.f32 %v1967_v22, %v1967_v22  ;;  %v2403_v59 = vpop.f32.mrb[21].mxu1 }
 0x11f   : > { %v1857_v34 = vpack.c.bf16 %v717_v30, %v717_v30  ;;  %v1253_v37 = vsel %vm1213_vm2, %v717_v30, 0.0  ;;  %v1968_v38 = vpop.f32.mrb[22].mxu0  ;;  %v1367_v41 = vmul.f32 %v717_v30, %v717_v30  ;;  %v1257_v62 = vsel %vm1213_vm2, %v1967_v22, 0.0  ;;  %v2407_v3 = vpop.f32.mrb[22].mxu1  ;;  %1196 = vst.msk [vmem:[%s2222_s26 + $0xbc] sm:$0xf] %vm1148_vm1, %v1884_v58 }
 0x120   : > { %1171 = vst.msk [vmem:[%s2222_s26 + $0x58] sm:$0xf] %vm1148_vm1, %v1859_v28  ;;  %v1860_v42 = vpack.c.bf16 %v1968_v38, %v1968_v38  ;;  %v720_v43 = vpop.f32.mrb[23].mxu0  ;;  %v1254_v44 = vadd.f32 %v1253_v37, %v1252_v35  ;;  %v1449_v46 = vadd.f32 %v1448_v39, %v1447_v32  ;;  %v1370_v63 = vmul.f32 %v1968_v38, %v1968_v38  ;;  %v2413_v9 = vpop.f32.mrb[23].mxu1 }
 0x121   : > { %1169 = vst.msk [vmem:[%s2222_s26 + $0x50] sm:$0xf] %vm1148_vm1, %v1857_v34  ;;  %v1858_v47 = vpack.c.bf16 %v720_v43, %v720_v43  ;;  %v1450_v49 = vsel %vm1213_vm2, %v1367_v41, 0.0  ;;  %v1255_v50 = vsel %vm1213_vm2, %v720_v43, 0.0  ;;  %v1368_v52 = vmul.f32 %v720_v43, %v720_v43 }
 0x122   : > { %1172 = vst.msk [vmem:[%s2222_s26 + $0x5c] sm:$0xf] %vm1148_vm1, %v1860_v42  ;;  %v1451_v54 = vadd.f32 %v1450_v49, %v1449_v46  ;;  %v1256_v57 = vadd.f32 %v1255_v50, %v1254_v44  ;;  %v1454_v11 = vsel %vm1213_vm2, %v1369_v48, 0.0  ;;  %v1259_v12 = vsel %vm1213_vm2, %v1968_v38, 0.0 }
 0x123   : > { %1170 = vst.msk [vmem:[%s2222_s26 + $0x54] sm:$0xf] %vm1148_vm1, %v1858_v47  ;;  %v1452_v1 = vsel %vm1213_vm2, %v1368_v52, 0.0  ;;  %v1456_v23 = vsel %vm1213_vm2, %v1370_v63, 0.0  ;;  %v1881_v44 = vpack.c.bf16 %v2339_v36, %v2339_v36 }
 0x124   : > { %v1258_v4 = vadd.f32 %v1257_v62, %v1256_v57  ;;  %v1453_v5 = vadd.f32 %v1452_v1, %v1451_v54 }
 0x125   : > { %v1971_v6 = vpop.f32.mrb[24].mxu0  ;;  %v2429_v41 = vpop.f32.mrb[24].mxu1  ;;  %1193 = vst.msk [vmem:[%s2222_s26 + $0xb0] sm:$0xf] %vm1148_vm1, %v1881_v44  ;;  %v1379_v44 = vmul.f32 %v2241_v56, %v2241_v56 }
 0x126   : > { %v1863_v13 = vpack.c.bf16 %v1971_v6, %v1971_v6  ;;  %v733_v15 = vpop.f32.mrb[25].mxu0  ;;  %v1455_v16 = vadd.f32 %v1454_v11, %v1453_v5  ;;  %v1260_v19 = vadd.f32 %v1259_v12, %v1258_v4  ;;  %v1373_v35 = vmul.f32 %v1971_v6, %v1971_v6  ;;  %v2435_v46 = vpop.f32.mrb[25].mxu1 }
 0x127   : > { %v1861_v17 = vpack.c.bf16 %v733_v15, %v733_v15  ;;  %v1261_v20 = vsel %vm1213_vm2, %v733_v15, 0.0  ;;  %v1972_v22 = vpop.f32.mrb[26].mxu0  ;;  %v1371_v26 = vmul.f32 %v733_v15, %v733_v15  ;;  %v1265_v47 = vsel %vm1213_vm2, %v1971_v6, 0.0  ;;  %v2439_v50 = vpop.f32.mrb[26].mxu1 }
 0x128   : > { %1175 = vst.msk [vmem:[%s2222_s26 + $0x68] sm:$0xf] %vm1148_vm1, %v1863_v13  ;;  %v1864_v27 = vpack.c.bf16 %v1972_v22, %v1972_v22  ;;  %v736_v28 = vpop.f32.mrb[27].mxu0  ;;  %v1262_v30 = vadd.f32 %v1261_v20, %v1260_v19  ;;  %v1457_v32 = vadd.f32 %v1456_v23, %v1455_v16  ;;  %v1374_v48 = vmul.f32 %v1972_v22, %v1972_v22  ;;  %v2445_v62 = vpop.f32.mrb[27].mxu1 }
 0x129   : > { %1173 = vst.msk [vmem:[%s2222_s26 + $0x60] sm:$0xf] %vm1148_vm1, %v1861_v17  ;;  %v1862_v34 = vpack.c.bf16 %v736_v28, %v736_v28  ;;  %v1458_v37 = vsel %vm1213_vm2, %v1371_v26, 0.0  ;;  %v1263_v38 = vsel %vm1213_vm2, %v736_v28, 0.0  ;;  %v1372_v39 = vmul.f32 %v736_v28, %v736_v28 }
 0x12a   : > { %1176 = vst.msk [vmem:[%s2222_s26 + $0x6c] sm:$0xf] %vm1148_vm1, %v1864_v27  ;;  %v1459_v42 = vadd.f32 %v1458_v37, %v1457_v32  ;;  %v1264_v43 = vadd.f32 %v1263_v38, %v1262_v30  ;;  %v1462_v63 = vsel %vm1213_vm2, %v1373_v35, 0.0  ;;  %v1267_v1 = vsel %vm1213_vm2, %v1972_v22, 0.0 }
 0x12b   : > { %1174 = vst.msk [vmem:[%s2222_s26 + $0x64] sm:$0xf] %vm1148_vm1, %v1862_v34  ;;  %v1460_v49 = vsel %vm1213_vm2, %v1372_v39, 0.0  ;;  %v1464_v15 = vsel %vm1213_vm2, %v1374_v48, 0.0  ;;  %v1882_v37 = vpack.c.bf16 %v2349_v45, %v2349_v45 }
 0x12c   : > { %v1266_v52 = vadd.f32 %v1265_v47, %v1264_v43  ;;  %v1461_v54 = vadd.f32 %v1460_v49, %v1459_v42 }
 0x12d   : > { %v1975_v57 = vpop.f32.mrb[28].mxu0  ;;  %v2461_v32 = vpop.f32.mrb[28].mxu1  ;;  %1194 = vst.msk [vmem:[%s2222_s26 + $0xb4] sm:$0xf] %vm1148_vm1, %v1882_v37  ;;  %v1283_v37 = vsel %vm1213_vm2, %v2245_v60, 0.0 }
 0x12e   : > { %v1867_v4 = vpack.c.bf16 %v1975_v57, %v1975_v57  ;;  %v749_v5 = vpop.f32.mrb[29].mxu0  ;;  %v1463_v6 = vadd.f32 %v1462_v63, %v1461_v54  ;;  %v1268_v11 = vadd.f32 %v1267_v1, %v1266_v52  ;;  %v1377_v26 = vmul.f32 %v1975_v57, %v1975_v57  ;;  %v2467_v38 = vpop.f32.mrb[29].mxu1 }
 0x12f   : > { %v1865_v8 = vpack.c.bf16 %v749_v5, %v749_v5  ;;  %v1269_v12 = vsel %vm1213_vm2, %v749_v5, 0.0  ;;  %v1976_v13 = vpop.f32.mrb[30].mxu0  ;;  %v1375_v16 = vmul.f32 %v749_v5, %v749_v5  ;;  %v1273_v39 = vsel %vm1213_vm2, %v1975_v57, 0.0  ;;  %v2473_v47 = vpop.f32.mrb[30].mxu1 }
 0x130   : > { %1179 = vst.msk [vmem:[%s2222_s26 + $0x78] sm:$0xf] %vm1148_vm1, %v1867_v4  ;;  %v1868_v17 = vpack.c.bf16 %v1976_v13, %v1976_v13  ;;  %v752_v19 = vpop.f32.mrb[31].mxu0  ;;  %v1270_v20 = vadd.f32 %v1269_v12, %v1268_v11  ;;  %v1465_v22 = vadd.f32 %v1464_v15, %v1463_v6  ;;  %v1378_v42 = vmul.f32 %v1976_v13, %v1976_v13  ;;  %v2479_v54 = vpop.f32.mrb[31].mxu1 }
 0x131   : > { %1177 = vst.msk [vmem:[%s2222_s26 + $0x70] sm:$0xf] %vm1148_vm1, %v1865_v8  ;;  %v1866_v23 = vpack.c.bf16 %v752_v19, %v752_v19  ;;  %v1466_v27 = vsel %vm1213_vm2, %v1375_v16, 0.0  ;;  %v1271_v28 = vsel %vm1213_vm2, %v752_v19, 0.0  ;;  %v1376_v30 = vmul.f32 %v752_v19, %v752_v19 }
 0x132   : > { %1180 = vst.msk [vmem:[%s2222_s26 + $0x7c] sm:$0xf] %vm1148_vm1, %v1868_v17  ;;  %v1467_v34 = vadd.f32 %v1466_v27, %v1465_v22  ;;  %v1272_v35 = vadd.f32 %v1271_v28, %v1270_v20  ;;  %v1887_v52 = vpack.c.bf16 %v2365_v10, %v2365_v10  ;;  %v1470_v57 = vsel %vm1213_vm2, %v1377_v26, 0.0 }
 0x133   : > { %1178 = vst.msk [vmem:[%s2222_s26 + $0x74] sm:$0xf] %vm1148_vm1, %v1866_v23  ;;  %v1468_v43 = vsel %vm1213_vm2, %v1376_v30, 0.0  ;;  %v1275_v58 = vsel %vm1213_vm2, %v1976_v13, 0.0  ;;  %v1277_v63 = vsel %vm1213_vm2, %v2241_v56, 0.0  ;;  %v1885_v1 = vpack.c.bf16 %v2371_v14, %v2371_v14 }
 0x134   : > { %v1274_v48 = vadd.f32 %v1273_v39, %v1272_v35  ;;  %v1469_v49 = vadd.f32 %v1468_v43, %v1467_v34  ;;  %1199 = vst.msk [vmem:[%s2222_s26 + $0xc8] sm:$0xf] %vm1148_vm1, %v1887_v52  ;;  %v1888_v6 = vpack.c.bf16 %v2375_v18, %v2375_v18  ;;  %v1472_v8 = vsel %vm1213_vm2, %v1378_v42, 0.0 }
 0x135   : > { %v1474_v11 = vsel %vm1213_vm2, %v1379_v44, 0.0  ;;  %v1380_v12 = vmul.f32 %v2252_v0, %v2252_v0  ;;  %1197 = vst.msk [vmem:[%s2222_s26 + $0xc0] sm:$0xf] %vm1148_vm1, %v1885_v1  ;;  %v1886_v56 = vpack.c.bf16 %v2381_v25, %v2381_v25  ;;  %v1381_v16 = vmul.f32 %v2232_v51, %v2232_v51 }
 0x136   : > { %v1471_v4 = vadd.f32 %v1470_v57, %v1469_v49  ;;  %v1276_v5 = vadd.f32 %v1275_v58, %v1274_v48  ;;  %1200 = vst.msk [vmem:[%s2222_s26 + $0xcc] sm:$0xf] %vm1148_vm1, %v1888_v6  ;;  %v1279_v17 = vsel %vm1213_vm2, %v2252_v0, 0.0  ;;  %v1891_v19 = vpack.c.bf16 %v2397_v53, %v2397_v53 }
 0x137   : > { %1198 = vst.msk [vmem:[%s2222_s26 + $0xc4] sm:$0xf] %vm1148_vm1, %v1886_v56  ;;  %v1281_v20 = vsel %vm1213_vm2, %v2232_v51, 0.0  ;;  %v1889_v26 = vpack.c.bf16 %v2403_v59, %v2403_v59  ;;  %v1382_v27 = vmul.f32 %v2245_v60, %v2245_v60  ;;  %v1476_v28 = vsel %vm1213_vm2, %v1380_v12, 0.0 }
 0x138   : > { %v1278_v13 = vadd.f32 %v1277_v63, %v1276_v5  ;;  %v1473_v15 = vadd.f32 %v1472_v8, %v1471_v4  ;;  %v1383_v0 = vmul.f32 %v2275_v24, %v2275_v24  ;;  %1203 = vst.msk [vmem:[%s2222_s26 + $0xd8] sm:$0xf] %vm1148_vm1, %v1891_v19  ;;  %v1892_v30 = vpack.c.bf16 %v2407_v3, %v2407_v3 }
 0x139   : > { %1201 = vst.msk [vmem:[%s2222_s26 + $0xd0] sm:$0xf] %vm1148_vm1, %v1889_v26  ;;  %v1478_v35 = vsel %vm1213_vm2, %v1381_v16, 0.0  ;;  %v1285_v39 = vsel %vm1213_vm2, %v2275_v24, 0.0  ;;  %v1890_v42 = vpack.c.bf16 %v2413_v9, %v2413_v9  ;;  %v1895_v48 = vpack.c.bf16 %v2429_v41, %v2429_v41 }
 0x13a   : > { %v1475_v22 = vadd.f32 %v1474_v11, %v1473_v15  ;;  %v1280_v23 = vadd.f32 %v1279_v17, %v1278_v13  ;;  %1204 = vst.msk [vmem:[%s2222_s26 + $0xdc] sm:$0xf] %vm1148_vm1, %v1892_v30  ;;  %v1480_v49 = vsel %vm1213_vm2, %v1382_v27, 0.0  ;;  %v1482_v52 = vsel %vm1213_vm2, %v1383_v0, 0.0 }
 0x13b   : > { %v1384_v60 = vmul.f32 %v2285_v33, %v2285_v33  ;;  %1202 = vst.msk [vmem:[%s2222_s26 + $0xd4] sm:$0xf] %vm1148_vm1, %v1890_v42  ;;  %v1893_v24 = vpack.c.bf16 %v2435_v46, %v2435_v46  ;;  %1207 = vst.msk [vmem:[%s2222_s26 + $0xe8] sm:$0xf] %vm1148_vm1, %v1895_v48  ;;  %v1385_v63 = vmul.f32 %v2269_v21, %v2269_v21  ;;  %v1287_v1 = vsel %vm1213_vm2, %v2285_v33, 0.0 }
 0x13c   : > { %v1282_v51 = vadd.f32 %v1281_v20, %v1280_v23  ;;  %v1477_v34 = vadd.f32 %v1476_v28, %v1475_v22  ;;  %v1896_v4 = vpack.c.bf16 %v2439_v50, %v2439_v50  ;;  %v1289_v5 = vsel %vm1213_vm2, %v2269_v21, 0.0 }
 0x13d   : > { %1205 = vst.msk [vmem:[%s2222_s26 + $0xe0] sm:$0xf] %vm1148_vm1, %v1893_v24  ;;  %v1894_v11 = vpack.c.bf16 %v2445_v62, %v2445_v62  ;;  %v1386_v12 = vmul.f32 %v2281_v29, %v2281_v29  ;;  %v1484_v56 = vsel %vm1213_vm2, %v1384_v60, 0.0  ;;  %v1387_v33 = vmul.f32 %v2307_v61, %v2307_v61 }
 0x13e   : > { %v1479_v43 = vadd.f32 %v1478_v35, %v1477_v34  ;;  %v1284_v44 = vadd.f32 %v1283_v37, %v1282_v51  ;;  %1208 = vst.msk [vmem:[%s2222_s26 + $0xec] sm:$0xf] %vm1148_vm1, %v1896_v4  ;;  %v1899_v13 = vpack.c.bf16 %v2461_v32, %v2461_v32  ;;  %v1486_v16 = vsel %vm1213_vm2, %v1385_v63, 0.0 }
 0x13f   : > { %1206 = vst.msk [vmem:[%s2222_s26 + $0xe4] sm:$0xf] %vm1148_vm1, %v1894_v11  ;;  %v1291_v17 = vsel %vm1213_vm2, %v2281_v29, 0.0  ;;  %v1293_v19 = vsel %vm1213_vm2, %v2307_v61, 0.0  ;;  %v1897_v20 = vpack.c.bf16 %v2467_v38, %v2467_v38  ;;  %v1900_v26 = vpack.c.bf16 %v2473_v47, %v2473_v47 }
 0x140   : > { %v1286_v57 = vadd.f32 %v1285_v39, %v1284_v44  ;;  %v1481_v58 = vadd.f32 %v1480_v49, %v1479_v43  ;;  %1211 = vst.msk [vmem:[%s2222_s26 + $0xf8] sm:$0xf] %vm1148_vm1, %v1899_v13  ;;  %v1488_v27 = vsel %vm1213_vm2, %v1386_v12, 0.0  ;;  %v1490_v28 = vsel %vm1213_vm2, %v1387_v33, 0.0 }
 0x141   : > { %v1388_v29 = vmul.f32 %v2317_v7, %v2317_v7  ;;  %1209 = vst.msk [vmem:[%s2222_s26 + $0xf0] sm:$0xf] %vm1148_vm1, %v1897_v20  ;;  %v1898_v61 = vpack.c.bf16 %v2479_v54, %v2479_v54  ;;  %1212 = vst.msk [vmem:[%s2222_s26 + $0xfc] sm:$0xf] %vm1148_vm1, %v1900_v26  ;;  %v1389_v51 = vmul.f32 %v2301_v55, %v2301_v55  ;;  %v1295_v34 = vsel %vm1213_vm2, %v2317_v7, 0.0 }
 0x142   : > { %v1483_v6 = vadd.f32 %v1482_v52, %v1481_v58  ;;  %v1288_v8 = vadd.f32 %v1287_v1, %v1286_v57  ;;  %v1297_v39 = vsel %vm1213_vm2, %v2301_v55, 0.0  ;;  %v1390_v42 = vmul.f32 %v2311_v2, %v2311_v2 }
 0x143   : > { %1210 = vst.msk [vmem:[%s2222_s26 + $0xf4] sm:$0xf] %vm1148_vm1, %v1898_v61  ;;  %v1492_v43 = vsel %vm1213_vm2, %v1388_v29, 0.0  ;;  %v1391_v44 = vmul.f32 %v2339_v36, %v2339_v36  ;;  %v1494_v52 = vsel %vm1213_vm2, %v1389_v51, 0.0  ;;  %v1299_v7 = vsel %vm1213_vm2, %v2311_v2, 0.0 }
 0x144   : > { %v1290_v21 = vadd.f32 %v1289_v5, %v1288_v8  ;;  %v1485_v15 = vadd.f32 %v1484_v56, %v1483_v6  ;;  %v1301_v60 = vsel %vm1213_vm2, %v2339_v36, 0.0  ;;  %v1496_v57 = vsel %vm1213_vm2, %v1390_v42, 0.0 }
 0x145   : > { %v1498_v58 = vsel %vm1213_vm2, %v1391_v44, 0.0  ;;  %v1392_v63 = vmul.f32 %v2349_v45, %v2349_v45  ;;  %v1393_v5 = vmul.f32 %v2333_v31, %v2333_v31  ;;  %v1303_v2 = vsel %vm1213_vm2, %v2349_v45, 0.0 }
 0x146   : > { %v1487_v22 = vadd.f32 %v1486_v16, %v1485_v15  ;;  %v1292_v23 = vadd.f32 %v1291_v17, %v1290_v21  ;;  %v1305_v36 = vsel %vm1213_vm2, %v2333_v31, 0.0  ;;  %v1394_v11 = vmul.f32 %v2343_v40, %v2343_v40 }
 0x147   : > { %v1500_v12 = vsel %vm1213_vm2, %v1392_v63, 0.0  ;;  %v1395_v56 = vmul.f32 %v2371_v14, %v2371_v14  ;;  %v1502_v21 = vsel %vm1213_vm2, %v1393_v5, 0.0  ;;  %v1307_v45 = vsel %vm1213_vm2, %v2343_v40, 0.0 }
 0x148   : > { %v1294_v0 = vadd.f32 %v1293_v19, %v1292_v23  ;;  %v1489_v30 = vadd.f32 %v1488_v27, %v1487_v22  ;;  %v1309_v15 = vsel %vm1213_vm2, %v2371_v14, 0.0  ;;  %v1504_v17 = vsel %vm1213_vm2, %v1394_v11, 0.0 }
 0x149   : > { %v1506_v19 = vsel %vm1213_vm2, %v1395_v56, 0.0  ;;  %v1396_v20 = vmul.f32 %v2381_v25, %v2381_v25  ;;  %v1397_v26 = vmul.f32 %v2365_v10, %v2365_v10  ;;  %v1311_v40 = vsel %vm1213_vm2, %v2381_v25, 0.0 }
 0x14a   : > { %v1491_v35 = vadd.f32 %v1490_v28, %v1489_v30  ;;  %v1296_v37 = vadd.f32 %v1295_v34, %v1294_v0  ;;  %v1313_v14 = vsel %vm1213_vm2, %v2365_v10, 0.0  ;;  %v1398_v29 = vmul.f32 %v2375_v18, %v2375_v18 }
 0x14b   : > { %v1508_v61 = vsel %vm1213_vm2, %v1396_v20, 0.0  ;;  %v1399_v0 = vmul.f32 %v2403_v59, %v2403_v59  ;;  %v1510_v34 = vsel %vm1213_vm2, %v1397_v26, 0.0  ;;  %v1315_v25 = vsel %vm1213_vm2, %v2375_v18, 0.0 }
 0x14c   : > { %v1298_v48 = vadd.f32 %v1297_v39, %v1296_v37  ;;  %v1493_v49 = vadd.f32 %v1492_v43, %v1491_v35  ;;  %v1317_v35 = vsel %vm1213_vm2, %v2403_v59, 0.0  ;;  %v1512_v39 = vsel %vm1213_vm2, %v1398_v29, 0.0 }
 0x14d   : > { %v1514_v42 = vsel %vm1213_vm2, %v1399_v0, 0.0  ;;  %v1400_v43 = vmul.f32 %v2413_v9, %v2413_v9  ;;  %v1319_v18 = vsel %vm1213_vm2, %v2413_v9, 0.0  ;;  %v1321_v59 = vsel %vm1213_vm2, %v2397_v53, 0.0 }
 0x14e   : > { %v1495_v24 = vadd.f32 %v1494_v52, %v1493_v49  ;;  %v1300_v55 = vadd.f32 %v1299_v7, %v1298_v48  ;;  %v1401_v49 = vmul.f32 %v2397_v53, %v2397_v53  ;;  %v1323_v9 = vsel %vm1213_vm2, %v2407_v3, 0.0 }
 0x14f   : > { %v1405_v11 = vmul.f32 %v2429_v41, %v2429_v41 }
 0x150   : > { %v1302_v1 = vadd.f32 %v1301_v60, %v1300_v55  ;;  %v1497_v4 = vadd.f32 %v1496_v57, %v1495_v24  ;;  %v1402_v60 = vmul.f32 %v2407_v3, %v2407_v3  ;;  %v1516_v24 = vsel %vm1213_vm2, %v1400_v43, 0.0 }
 0x151   : > { %v1403_v55 = vmul.f32 %v2435_v46, %v2435_v46  ;;  %v1518_v63 = vsel %vm1213_vm2, %v1401_v49, 0.0  ;;  %v1327_v3 = vsel %vm1213_vm2, %v2445_v62, 0.0 }
 0x152   : > { %v1499_v6 = vadd.f32 %v1498_v58, %v1497_v4  ;;  %v1304_v8 = vadd.f32 %v1303_v2, %v1302_v1  ;;  %v1325_v1 = vsel %vm1213_vm2, %v2435_v46, 0.0  ;;  %v1520_v5 = vsel %vm1213_vm2, %v1402_v60, 0.0 }
 0x153   : > { %v1522_v2 = vsel %vm1213_vm2, %v1403_v55, 0.0  ;;  %v1329_v46 = vsel %vm1213_vm2, %v2429_v41, 0.0 }
 0x154   : > { %v1306_v33 = vadd.f32 %v1305_v36, %v1304_v8  ;;  %v1501_v13 = vadd.f32 %v1500_v12, %v1499_v6  ;;  %v1404_v6 = vmul.f32 %v2445_v62, %v2445_v62  ;;  %v1331_v62 = vsel %vm1213_vm2, %v2439_v50, 0.0 }
 0x156   : > { %v1503_v16 = vadd.f32 %v1502_v21, %v1501_v13  ;;  %v1308_v31 = vadd.f32 %v1307_v45, %v1306_v33  ;;  %v1406_v33 = vmul.f32 %v2439_v50, %v2439_v50  ;;  %v1524_v13 = vsel %vm1213_vm2, %v1404_v6, 0.0 }
 0x157   : > { %v1407_v21 = vmul.f32 %v2467_v38, %v2467_v38  ;;  %v1335_v50 = vsel %vm1213_vm2, %v2479_v54, 0.0 }
 0x158   : > { %v1310_v22 = vadd.f32 %v1309_v15, %v1308_v31  ;;  %v1505_v23 = vadd.f32 %v1504_v17, %v1503_v16  ;;  %v1526_v16 = vsel %vm1213_vm2, %v1405_v11, 0.0  ;;  %v1333_v31 = vsel %vm1213_vm2, %v2467_v38, 0.0 }
 0x159   : > { %v1530_v20 = vsel %vm1213_vm2, %v1407_v21, 0.0  ;;  %v1337_v38 = vsel %vm1213_vm2, %v2461_v32, 0.0 }
 0x15a   : > { %v1507_v27 = vadd.f32 %v1506_v19, %v1505_v23  ;;  %v1312_v28 = vadd.f32 %v1311_v40, %v1310_v22  ;;  %v1528_v19 = vsel %vm1213_vm2, %v1406_v33, 0.0  ;;  %v1408_v22 = vmul.f32 %v2479_v54, %v2479_v54 }
 0x15b   : > { %v1409_v40 = vmul.f32 %v2461_v32, %v2461_v32 }
 0x15c   : > { %v1314_v30 = vadd.f32 %v1313_v14, %v1312_v28  ;;  %v1509_v51 = vadd.f32 %v1508_v61, %v1507_v27  ;;  %v1410_v14 = vmul.f32 %v2473_v47, %v2473_v47  ;;  %v1532_v29 = vsel %vm1213_vm2, %v1408_v22, 0.0 }
 0x15e   : > { %v1511_v37 = vadd.f32 %v1510_v34, %v1509_v51  ;;  %v1316_v10 = vadd.f32 %v1315_v25, %v1314_v30  ;;  %v1534_v30 = vsel %vm1213_vm2, %v1409_v40, 0.0  ;;  %v1339_v51 = vsel %vm1213_vm2, %v2473_v47, 0.0 }
 0x15f   : > { %v1536_v25 = vsel %vm1213_vm2, %v1410_v14, 0.0 }
 0x160   : > { %v1318_v44 = vadd.f32 %v1317_v35, %v1316_v10  ;;  %v1513_v48 = vadd.f32 %v1512_v39, %v1511_v37 }
 0x162   : > { %v1515_v52 = vadd.f32 %v1514_v42, %v1513_v48  ;;  %v1320_v7 = vadd.f32 %v1319_v18, %v1318_v44 }
 0x164   : > { %v1322_v57 = vadd.f32 %v1321_v59, %v1320_v7  ;;  %v1517_v58 = vadd.f32 %v1516_v24, %v1515_v52 }
 0x166   : > { %v1519_v4 = vadd.f32 %v1518_v63, %v1517_v58  ;;  %v1324_v53 = vadd.f32 %v1323_v9, %v1322_v57 }
 0x168   : > { %v1326_v8 = vadd.f32 %v1325_v1, %v1324_v53  ;;  %v1521_v36 = vadd.f32 %v1520_v5, %v1519_v4 }
 0x16a   : > { %v1523_v12 = vadd.f32 %v1522_v2, %v1521_v36  ;;  %v1328_v56 = vadd.f32 %v1327_v3, %v1326_v8 }
 0x16c   : > { %v1330_v45 = vadd.f32 %v1329_v46, %v1328_v56  ;;  %v1525_v15 = vadd.f32 %v1524_v13, %v1523_v12 }
 0x16e   : > { %v1527_v17 = vadd.f32 %v1526_v16, %v1525_v15  ;;  %v1332_v41 = vadd.f32 %v1331_v62, %v1330_v45 }
 0x170   : > { %v1334_v23 = vadd.f32 %v1333_v31, %v1332_v41  ;;  %v1529_v26 = vadd.f32 %v1528_v19, %v1527_v17 }
 0x172   : > { %v1531_v27 = vadd.f32 %v1530_v20, %v1529_v26  ;;  %v1336_v28 = vadd.f32 %v1335_v50, %v1334_v23 }
 0x174   : > { %v1338_v61 = vadd.f32 %v1337_v38, %v1336_v28  ;;  %v1533_v0 = vadd.f32 %v1532_v29, %v1531_v27 }
 0x176   : > { %v1340_v34 = vadd.f32 %v1339_v51, %v1338_v61  ;;  %v1535_v54 = vadd.f32 %v1534_v30, %v1533_v0 }
 0x178   : > { %v1341_v35 = vrot.slane %v1340_v34, 4  ;;  %v1537_v37 = vadd.f32 %v1536_v25, %v1535_v54 }
 0x17a   : > { %v1342_v32 = vadd.f32 %v1341_v35, %v1340_v34  ;;  %v1538_v10 = vrot.slane %v1537_v37, 4 }
 0x17c   : > { %v1343_v39 = vrot.slane %v1342_v32, 2  ;;  %v1539_v42 = vadd.f32 %v1538_v10, %v1537_v37 }
 0x17e   : > { %v1344_v43 = vadd.f32 %v1343_v39, %v1342_v32  ;;  %v1540_v44 = vrot.slane %v1539_v42, 2 }
 0x180   : > { %v1345_v48 = vrot.slane %v1344_v43, 1  ;;  %v1541_v49 = vadd.f32 %v1540_v44, %v1539_v42 }
 0x182   : > { %v1542_v18 = vrot.slane %v1541_v49, 1  ;;  %v1346_v47 = vadd.f32 %v1345_v48, %v1344_v43 }
 0x184   : > { %v1543_v52 = vadd.f32 %v1542_v18, %v1541_v49 }
 0x186   : > { %v1545_v7 = vsel %vm1544_vm3, %v1346_v47, %v1543_v52 }
 0x187   : > { %1547 = vst.msk [vmem:[%s248_s30] sm:$0x3] %vm1546_vm4, %v1545_v7 }
 0x188 PF: > { %s14_s14 = sadd.s32 1, %s2099_s14   ;;  %s2721_s12 = smov %s2095_s13 }
 0x189   : > { %p11_p5 = scmp.ge.s32.totalorder %s14_s14, 6   ;;  %s2722_s13 = smov %s2724_s15 }
 0x18b   :  { %13 = sbr.rel (!%p11_p5) target bundleno = 2 (0x2), region = 73 }

// kernel: tile.78
= control target key start
LH: loop header
LB: loop body
LE: loop exit
PB: predicated region body
PF: predicated region fallthrough
CT: control target
= control target key end

     0   :  { %s40_s0 = inlined_call_operand.vmem [shape: f32[8], index: 0, kind: input, shape index: {}]   ;;  %s41_s1 = inlined_call_operand.vmem [shape: f32[32,8], index: 1, kind: output, shape index: {}]  }
   0x1   :  { %v4_v0 = vld [vmem:[%s40_s0] ss:$0 sm:$0xff] }
   0x2   :  { %5 = vst [vmem:[%s41_s1] sm:$0xff] %v4_v0  ;;  %12 = vst [vmem:[%s41_s1 + $0x8] sm:$0xff] %v4_v0 }
   0x3   :  { %13 = vst [vmem:[%s41_s1 + $0x10] sm:$0xff] %v4_v0  ;;  %14 = vst [vmem:[%s41_s1 + $0x18] sm:$0xff] %v4_v0 }

// kernel: tile.79
= control target key start
LH: loop header
LB: loop body
LE: loop exit
PB: predicated region body
PF: predicated region fallthrough
CT: control target
= control target key end

     0   :  { %s7_s6 = smov 3  ;;  %s21_s9 = smov 3  ;;  %vm4_vm0 = vcmask 64512   ;;  %vm11_vm1 = vcmask 1048512   ;;  %vm18_vm2 = vcmask 982912   ;;  %vm25_vm3 = vcmask 917312   ;;  %s232_s0 = inlined_call_operand.vmem [shape: f32[32,8], index: 0, kind: input, shape index: {}]   ;;  %s233_s1 = inlined_call_operand.vmem [shape: f32[1,256], index: 1, kind: output, shape index: {}]  }
   0x1   :  { %v122_v0 = vld [vmem:[%s232_s0 + $0xf] ss:$16 sm:%s7_s6]   ;;  %s153_s10 = smov 120   ;;  %v124_v1 = vld [vmem:[%s232_s0 + $0xd] ss:$16 sm:%s21_s9]   ;;  %s14_s13 = smov 3 }
   0x2   :  { %9 = vrot.lane.b32.xlu0 %v122_v0, %s153_s10  ;;  %s154_s14 = smov 104   ;;  %v123_v2 = vld [vmem:[%s232_s0 + $0xe] ss:$16 sm:%s14_s13]   ;;  %s28_s17 = smov 3  ;;  %vm32_vm4 = vcmask 851712   ;;  %vm39_vm5 = vcmask 786112  }
   0x3   :  { %23 = vrot.lane.b32.xlu1 %v124_v1, %s154_s14  ;;  %v125_v3 = vld [vmem:[%s232_s0 + $0xc] ss:$16 sm:%s28_s17]   ;;  %s35_s20 = smov 3  ;;  %s42_s21 = smov 3  ;;  %vm46_vm6 = vcmask 720512   ;;  %vm53_vm7 = vcmask 654912  }
   0x4   :  { %s155_s22 = smov 112   ;;  %s156_s23 = smov 96   ;;  %v126_v4 = vld [vmem:[%s232_s0 + $0xb] ss:$16 sm:%s35_s20]   ;;  %v127_v5 = vld [vmem:[%s232_s0 + $0xa] ss:$16 sm:%s42_s21]  }
   0x5   :  { %s49_s28 = smov 3  ;;  %s56_s29 = smov 3  ;;  %vm60_vm8 = vcmask 589312   ;;  %vm67_vm9 = vcmask 523712   ;;  %vm74_vm10 = vcmask 458112   ;;  %vm81_vm11 = vcmask 392512  }
   0x6   :  { %16 = vrot.lane.b32.xlu0 %v123_v2, %s155_s22  ;;  %s157_s30 = smov 88   ;;  %s158_s2 = smov 80   ;;  %v128_v6 = vld [vmem:[%s232_s0 + $0x9] ss:$16 sm:%s49_s28]   ;;  %vm88_vm12 = vcmask 326912   ;;  %vm95_vm13 = vcmask 261312  }
   0x7   :  { %30 = vrot.lane.b32.xlu1 %v125_v3, %s156_s23  ;;  %v129_v7 = vld [vmem:[%s232_s0 + $0x8] ss:$16 sm:%s56_s29]   ;;  %s63_s7 = smov 3  ;;  %s70_s8 = smov 3  ;;  %vm102_vm14 = vcmask 195712   ;;  %vm109_vm15 = vcmask 130112  }
   0x8   :  { %s159_s9 = smov 72   ;;  %s160_s10 = smov 64   ;;  %v130_v8 = vld [vmem:[%s232_s0 + $0x7] ss:$16 sm:%s63_s7]   ;;  %v131_v9 = vld [vmem:[%s232_s0 + $0x6] ss:$16 sm:%s70_s8]  }
   0x9   :  { %s2_s13 = smov 3  ;;  %s77_s16 = smov 3 }
   0xa   :  { %37 = vrot.lane.b32.xlu0 %v126_v4, %s157_s30  ;;  %v3_v10 = vld [vmem:[%s232_s0] ss:$16 sm:%s2_s13]   ;;  %s84_s19 = smov 3  ;;  %s161_s20 = smov 56  }
   0xb   :  { %44 = vrot.lane.b32.xlu1 %v127_v5, %s158_s2  ;;  %5 = vst.msk [vmem:[#allocation0] ss:$8 sm:$0x3] %vm4_vm0, %v3_v10   ;;  %s162_s21 = smov 48   ;;  %v132_v11 = vld [vmem:[%s232_s0 + $0x5] ss:$16 sm:%s77_s16]  }
   0xc   :  { %v133_v12 = vld [vmem:[%s232_s0 + $0x4] ss:$16 sm:%s84_s19]   ;;  %s91_s26 = smov 3  ;;  %s98_s27 = smov 3 }
   0xd   :  { %s163_s28 = smov 40   ;;  %s164_s29 = smov 32   ;;  %v134_v13 = vld [vmem:[%s232_s0 + $0x3] ss:$16 sm:%s91_s26]   ;;  %v135_v14 = vld [vmem:[%s232_s0 + $0x2] ss:$16 sm:%s98_s27]  }
   0xe   :  { %51 = vrot.lane.b32.xlu0 %v128_v6, %s159_s9  ;;  %s105_s5 = smov 3  ;;  %s165_s6 = smov 24  }
   0xf   :  { %58 = vrot.lane.b32.xlu1 %v129_v7, %s160_s10  ;;  %s166_s7 = smov 16   ;;  %v136_v15 = vld [vmem:[%s232_s0 + $0x1] ss:$16 sm:%s105_s5]   ;;  %s167_s0 = smov 8  }
  0x12   :  { %65 = vrot.lane.b32.xlu0 %v130_v8, %s161_s20 }
  0x13   :  { %72 = vrot.lane.b32.xlu1 %v131_v9, %s162_s21 }
  0x16   :  { %79 = vrot.lane.b32.xlu0 %v132_v11, %s163_s28 }
  0x17   :  { %86 = vrot.lane.b32.xlu1 %v133_v12, %s164_s29 }
  0x1a   :  { %93 = vrot.lane.b32.xlu0 %v134_v13, %s165_s6 }
  0x1b   :  { %100 = vrot.lane.b32.xlu1 %v135_v14, %s166_s7 }
  0x1e   :  { %107 = vrot.lane.b32.xlu0 %v136_v15, %s167_s0 }
  0x74   :  { %v10_v16 = vpop.permute.xlu0 %9  }
  0x75   :  { %12 = vst.msk [vmem:[#allocation0] ss:$8 sm:$0x3] %vm11_vm1, %v10_v16   ;;  %v24_v17 = vpop.permute.xlu1 %23  }
  0x78   :  { %v17_v18 = vpop.permute.xlu0 %16  }
  0x79   :  { %19 = vst.msk [vmem:[#allocation0] ss:$8 sm:$0x3] %vm18_vm2, %v17_v18   ;;  %v31_v19 = vpop.permute.xlu1 %30  }
  0x7a   :  { %26 = vst.msk [vmem:[#allocation0] ss:$8 sm:$0x3] %vm25_vm3, %v24_v17  }
  0x7b   :  { %33 = vst.msk [vmem:[#allocation0] ss:$8 sm:$0x3] %vm32_vm4, %v31_v19  }
  0x7c   :  { %v38_v20 = vpop.permute.xlu0 %37  }
  0x7d   :  { %40 = vst.msk [vmem:[#allocation0] ss:$8 sm:$0x3] %vm39_vm5, %v38_v20   ;;  %v45_v21 = vpop.permute.xlu1 %44  }
  0x7e   :  { %47 = vst.msk [vmem:[#allocation0] ss:$8 sm:$0x3] %vm46_vm6, %v45_v21  }
  0x80   :  { %v52_v22 = vpop.permute.xlu0 %51  }
  0x81   :  { %54 = vst.msk [vmem:[#allocation0] ss:$8 sm:$0x3] %vm53_vm7, %v52_v22   ;;  %v59_v23 = vpop.permute.xlu1 %58  }
  0x82   :  { %61 = vst.msk [vmem:[#allocation0] ss:$8 sm:$0x3] %vm60_vm8, %v59_v23  }
  0x84   :  { %v66_v24 = vpop.permute.xlu0 %65  }
  0x85   :  { %68 = vst.msk [vmem:[#allocation0] ss:$8 sm:$0x3] %vm67_vm9, %v66_v24   ;;  %v73_v25 = vpop.permute.xlu1 %72  }
  0x86   :  { %75 = vst.msk [vmem:[#allocation0] ss:$8 sm:$0x3] %vm74_vm10, %v73_v25  }
  0x88   :  { %v80_v26 = vpop.permute.xlu0 %79  }
  0x89   :  { %82 = vst.msk [vmem:[#allocation0] ss:$8 sm:$0x3] %vm81_vm11, %v80_v26   ;;  %v87_v27 = vpop.permute.xlu1 %86  }
  0x8a   :  { %89 = vst.msk [vmem:[#allocation0] ss:$8 sm:$0x3] %vm88_vm12, %v87_v27  }
  0x8c   :  { %v94_v28 = vpop.permute.xlu0 %93  }
  0x8d   :  { %96 = vst.msk [vmem:[#allocation0] ss:$8 sm:$0x3] %vm95_vm13, %v94_v28   ;;  %v101_v29 = vpop.permute.xlu1 %100  }
  0x8e   :  { %103 = vst.msk [vmem:[#allocation0] ss:$8 sm:$0x3] %vm102_vm14, %v101_v29  }
  0x90   :  { %v108_v30 = vpop.permute.xlu0 %107  }
  0x91   :  { %110 = vst.msk [vmem:[#allocation0] ss:$8 sm:$0x3] %vm109_vm15, %v108_v30  }
  0x98   :  { %v114_v31 = vld [vmem:[#allocation0] sm:$0x1]  ;;  %v118_v32 = vld [vmem:[#allocation0 + $0x8] sm:$0x1] }
  0x99   :  { %116 = vst [vmem:[%s233_s1] sm:$0x1] %v114_v31  ;;  %137 = vst [vmem:[%s233_s1 + $0x1] sm:$0x1] %v118_v32 }

// kernel: generator_forward.16
= control target key start
LH: loop header
LB: loop body
LE: loop exit
PB: predicated region body
PF: predicated region fallthrough
CT: control target
= control target key end

     0   :  { %v40_v0 = vlaneseq  ;;  %s260_s0 = inlined_call_operand.vmem [shape: bf16[64,256], index: 0, kind: input, shape index: {}]   ;;  %s261_s1 = inlined_call_operand.vmem [shape: f32[1,256], index: 1, kind: input, shape index: {}]   ;;  %s262_s2 = inlined_call_operand.vmem [shape: f32[1,256], index: 2, kind: input, shape index: {}]   ;;  %s263_s3 = inlined_call_operand.vmem [shape: bf16[64,256], index: 3, kind: output, shape index: {}]  }
   0x1   :  { %v14_v1 = vld [vmem:[%s260_s0] sm:$0xff]  ;;  %v15_v6 = vld [vmem:[%s260_s0 + $0x8] sm:$0xff]  ;;  %v16_v7 = vld [vmem:[%s260_s0 + $0x10] sm:$0xff] }
   0x2   :  { %v38_v2 = vld [vmem:[%s261_s1] sm:$0x3]  ;;  %v22_v3 = vunpack.c.l.bf16 %v14_v1  ;;  %v23_v4 = vunpack.c.h.bf16 %v14_v1  ;;  %v41_v5 = vshrl.u32 %v40_v0, 7  ;;  %v17_v8 = vld [vmem:[%s260_s0 + $0x18] sm:$0xff]  ;;  %v24_v10 = vunpack.c.l.bf16 %v15_v6  ;;  %v19_v15 = vld [vmem:[%s260_s0 + $0x28] sm:$0xff] }
   0x3   :  { %v66_v9 = vld [vmem:[%s262_s2] sm:$0x3]  ;;  %v25_v11 = vunpack.c.h.bf16 %v15_v6  ;;  %v26_v12 = vunpack.c.l.bf16 %v16_v7  ;;  %v27_v13 = vunpack.c.h.bf16 %v16_v7  ;;  %v28_v18 = vunpack.c.l.bf16 %v17_v8  ;;  %v20_v20 = vld [vmem:[%s260_s0 + $0x30] sm:$0xff]  ;;  %v21_v21 = vld [vmem:[%s260_s0 + $0x38] sm:$0xff] }
   0x4   :  { %v18_v14 = vld [vmem:[%s260_s0 + $0x20] sm:$0xff]  ;;  %v42_v16 = vsub.s32 0, %v41_v5  ;;  %v46_v17 = vsub.s32 1, %v41_v5  ;;  %v29_v19 = vunpack.c.h.bf16 %v17_v8  ;;  %v32_v24 = vunpack.c.l.bf16 %v19_v15 }
   0x5   :  { %v30_v22 = vunpack.c.l.bf16 %v18_v14  ;;  %v31_v23 = vunpack.c.h.bf16 %v18_v14  ;;  %v33_v25 = vunpack.c.h.bf16 %v19_v15  ;;  %v34_v30 = vunpack.c.l.bf16 %v20_v20 }
   0x6   :  { %v43_v26 = vrot.slane %v38_v2, %v42_v16  ;;  %v47_v27 = vrot.slane %v38_v2, %v46_v17  ;;  %v71_v28 = vrot.slane %v66_v9, %v42_v16  ;;  %v75_v29 = vrot.slane %v66_v9, %v46_v17 }
   0x7   :  { %v35_v31 = vunpack.c.h.bf16 %v20_v20  ;;  %v36_v32 = vunpack.c.l.bf16 %v21_v21  ;;  %v37_v33 = vunpack.c.h.bf16 %v21_v21 }
   0x8   :  { %v50_v34 = vmul.f32 %v43_v26, %v22_v3  ;;  %v51_v35 = vmul.f32 %v47_v27, %v23_v4  ;;  %v52_v36 = vmul.f32 %v43_v26, %v24_v10  ;;  %v53_v37 = vmul.f32 %v47_v27, %v25_v11 }
   0x9   :  { %v54_v38 = vmul.f32 %v43_v26, %v26_v12  ;;  %v55_v39 = vmul.f32 %v47_v27, %v27_v13  ;;  %v56_v40 = vmul.f32 %v43_v26, %v28_v18  ;;  %v57_v41 = vmul.f32 %v47_v27, %v29_v19 }
   0xa   :  { %v78_v42 = vadd.f32 %v71_v28, %v50_v34  ;;  %v79_v43 = vadd.f32 %v75_v29, %v51_v35  ;;  %v80_v44 = vadd.f32 %v71_v28, %v52_v36  ;;  %v81_v45 = vadd.f32 %v75_v29, %v53_v37 }
   0xb   :  { %v82_v46 = vadd.f32 %v71_v28, %v54_v38  ;;  %v83_v47 = vadd.f32 %v75_v29, %v55_v39  ;;  %v84_v48 = vadd.f32 %v71_v28, %v56_v40  ;;  %v85_v49 = vadd.f32 %v75_v29, %v57_v41 }
   0xc   :  { %v94_v50 = vmax.f32 %v78_v42, 0.0  ;;  %v95_v51 = vmax.f32 %v79_v43, 0.0  ;;  %v96_v52 = vmax.f32 %v80_v44, 0.0  ;;  %v97_v53 = vmax.f32 %v81_v45, 0.0 }
   0xd   :  { %v98_v54 = vmax.f32 %v82_v46, 0.0  ;;  %v99_v55 = vmax.f32 %v83_v47, 0.0  ;;  %v100_v56 = vmax.f32 %v84_v48, 0.0  ;;  %v101_v57 = vmax.f32 %v85_v49, 0.0 }
   0xe   :  { %v178_v58 = vpack.c.bf16 %v95_v51, %v94_v50  ;;  %v179_v59 = vpack.c.bf16 %v97_v53, %v96_v52  ;;  %v58_v60 = vmul.f32 %v43_v26, %v30_v22  ;;  %v59_v61 = vmul.f32 %v47_v27, %v31_v23 }
   0xf   :  { %v180_v62 = vpack.c.bf16 %v99_v55, %v98_v54  ;;  %v181_v63 = vpack.c.bf16 %v101_v57, %v100_v56  ;;  %v60_v0 = vmul.f32 %v43_v26, %v32_v24  ;;  %v61_v1 = vmul.f32 %v47_v27, %v33_v25 }
  0x10   :  { %158 = vst [vmem:[%s263_s3] sm:$0xff] %v178_v58  ;;  %159 = vst [vmem:[%s263_s3 + $0x8] sm:$0xff] %v179_v59  ;;  %v86_v2 = vadd.f32 %v71_v28, %v58_v60  ;;  %v87_v3 = vadd.f32 %v75_v29, %v59_v61  ;;  %v62_v4 = vmul.f32 %v43_v26, %v34_v30 }
  0x11   :  { %v63_v5 = vmul.f32 %v47_v27, %v35_v31  ;;  %160 = vst [vmem:[%s263_s3 + $0x10] sm:$0xff] %v180_v62  ;;  %161 = vst [vmem:[%s263_s3 + $0x18] sm:$0xff] %v181_v63  ;;  %v88_v6 = vadd.f32 %v71_v28, %v60_v0  ;;  %v89_v7 = vadd.f32 %v75_v29, %v61_v1 }
  0x12   :  { %v64_v8 = vmul.f32 %v43_v26, %v36_v32  ;;  %v65_v9 = vmul.f32 %v47_v27, %v37_v33  ;;  %v102_v10 = vmax.f32 %v86_v2, 0.0  ;;  %v103_v11 = vmax.f32 %v87_v3, 0.0 }
  0x13   :  { %v90_v12 = vadd.f32 %v71_v28, %v62_v4  ;;  %v91_v13 = vadd.f32 %v75_v29, %v63_v5  ;;  %v104_v14 = vmax.f32 %v88_v6, 0.0  ;;  %v105_v15 = vmax.f32 %v89_v7, 0.0 }
  0x14   :  { %v92_v16 = vadd.f32 %v71_v28, %v64_v8  ;;  %v93_v17 = vadd.f32 %v75_v29, %v65_v9  ;;  %v182_v18 = vpack.c.bf16 %v103_v11, %v102_v10 }
  0x15   :  { %v106_v19 = vmax.f32 %v90_v12, 0.0  ;;  %v107_v20 = vmax.f32 %v91_v13, 0.0  ;;  %v183_v21 = vpack.c.bf16 %v105_v15, %v104_v14 }
  0x16   :  { %v108_v22 = vmax.f32 %v92_v16, 0.0  ;;  %v109_v23 = vmax.f32 %v93_v17, 0.0  ;;  %162 = vst [vmem:[%s263_s3 + $0x20] sm:$0xff] %v182_v18 }
  0x17   :  { %v184_v24 = vpack.c.bf16 %v107_v20, %v106_v19  ;;  %163 = vst [vmem:[%s263_s3 + $0x28] sm:$0xff] %v183_v21 }
  0x18   :  { %v185_v25 = vpack.c.bf16 %v109_v23, %v108_v22 }
  0x19   :  { %164 = vst [vmem:[%s263_s3 + $0x30] sm:$0xff] %v184_v24 }
  0x1a   :  { %165 = vst [vmem:[%s263_s3 + $0x38] sm:$0xff] %v185_v25 }

// kernel: generator_forward.17
= control target key start
LH: loop header
LB: loop body
LE: loop exit
PB: predicated region body
PF: predicated region fallthrough
CT: control target
= control target key end

     0   :  { %s1546_s12 = smov 0   ;;  %s1548_s13 = smov 0   ;;  %s1869_s0 = inlined_call_operand.vmem [shape: bf16[4,2048,32], index: 0, kind: input, shape index: {}]   ;;  %s1870_s1 = inlined_call_operand.vmem [shape: bf16[4,32,3], index: 1, kind: input, shape index: {}]   ;;  %s1871_s2 = inlined_call_operand.vmem [shape: f32[1,1,3], index: 2, kind: input, shape index: {}]   ;;  %s1872_s3 = inlined_call_operand.vmem [shape: f32[4,2048,3], index: 3, kind: output, shape index: {}]  }
   0x1   :  { %s1550_s14 = smov 0   ;;  %s1552_s15 = smov 0  }
   0x2   :  { %s1554_s16 = smov 0  }
   0x3 LB: > { %s22_s17 = sadd.s32 1, %s1516_s14  ;;  %s25_s18 = sadd.s32 1, %s1520_s15  ;;  %s1524_s16 = sphi %s1554_s16, %s13_s16   ;;  %s1520_s15 = sphi %s1552_s15, %s1876_s15   ;;  %s1516_s14 = sphi %s1550_s14, %s1875_s14   ;;  %s1512_s13 = sphi %s1548_s13, %s1874_s13   ;;  %s1508_s12 = sphi %s1546_s12, %s1873_s12  }
   0x4   : > { %p23_p0 = scmp.ge.s32.totalorder %s22_s17, 4  ;;  %p1099_p1 = scmp.ge.s32.totalorder %s1524_s16, 1 }
   0x5   : > { %p168_p2 = scmp.lt.s32.totalorder %s1524_s16, 17 }
   0x6   : > { %s1878_s17 = smov (%p23_p0, %s22_s17), 0  ;;  %s1880_s18 = smov (!%p23_p0, %s25_s18), %s1520_s15 }
   0x7   : > { %p169_p3 = pnand %p1099_p1, %p168_p2  ;;  %p27_p4 = scmp.ge.s32.totalorder %s1880_s18, 4 }
   0x8   : > { %s1100_s19 = sshll.u32 (!%p169_p3), %s1508_s12, 6  ;;  %p206_p5 = scmp.lt.s32.totalorder (!%p169_p3), %s1512_s13, 3  ;;  %vm478_vm0 = vcmask (!%p169_p3), 261120   ;;  %v1654_v34 = vld [vmem:[%s1871_s2] ss:$0 sm:$0xff] (!%p169_p3)  ;;  %vm928_vm1 = vcmask (!%p169_p3), 23552  }
   0x9   : > { %s1882_s18 = smov (%p27_p4, %s1880_s18), 0  ;;  %172 = sbr.rel (%p169_p3) target bundleno = 320 (0x140), region = 32 }
   0xa   : > { %p208_p6 = scmp.lt.s32.totalorder (!%p169_p3), %s1100_s19, 255 }
  0x10   : > { %s1884_s13 = smov (!%p206_p5, %s1512_s13), 3  ;;  %s1886_s19 = smov (!%p208_p6, %s1100_s19), 255 }
  0x11   : > { %s1101_s20 = sshll.u32 %s1884_s13, 8  ;;  %s1177_s21 = sshll.u32 %s1884_s13, 4 }
  0x12   : > { %s1576_s22 = sadd.s32 %s1101_s20, %s1886_s19  ;;  %s219_s25 = scalar_lea.vmem %s1870_s1, %s1177_s21 }
  0x13   : > { %s1102_s26 = sshll.u32 %s1576_s22, 2  ;;  %v1324_v0 = vld [vmem:[%s219_s25] sm:$0xff]   ;;  %v1325_v1 = vld [vmem:[%s219_s25 + $0x8] sm:$0xff]   ;;  %s1107_s5 = sshll.u32 %s1576_s22, 3 }
  0x14   : > { %s1585_s29 = scalar_lea.vmem %s1869_s0, %s1102_s26  ;;  %1212 = vmatprep.subr.bf16.mxu0 %v1324_v0  ;;  %1280 = vmatprep.subr.bf16.mxu1 %v1324_v0  ;;  %s1672_s8 = scalar_lea.vmem %s1872_s3, %s1107_s5 }
  0x15   : > { %v1326_v2 = vld [vmem:[%s1585_s29] sm:$0xff]   ;;  %1213 = vmatpush3.bf16.msra.mxu0 %v1324_v0  ;;  %1282 = vmatpush3.bf16.msra.mxu1 %v1324_v0  ;;  %v1328_v4 = vld [vmem:[%s1585_s29 + $0x8] sm:$0xff]   ;;  %v1330_v6 = vld [vmem:[%s1585_s29 + $0x10] sm:$0xff]  }
  0x16   : > { %v1327_v3 = vld [vmem:[%s1585_s29 + $0x80] sm:$0xff]   ;;  %1214 = vmatprep.subr.bf16.mxu0 %v1325_v1  ;;  %1281 = vmatprep.subr.bf16.mxu1 %v1325_v1  ;;  %v1329_v5 = vld [vmem:[%s1585_s29 + $0x88] sm:$0xff]   ;;  %v1331_v7 = vld [vmem:[%s1585_s29 + $0x90] sm:$0xff]  }
  0x17   : > { %1216 = vmatprep.mubr.msk.bf16.mxu0 %vm478_vm0, %v1326_v2  ;;  %1248 = vmatprep.mubr.msk.bf16.mxu1 %vm478_vm0, %v1327_v3  ;;  %v1332_v8 = vld [vmem:[%s1585_s29 + $0x18] sm:$0xff]   ;;  %v1334_v10 = vld [vmem:[%s1585_s29 + $0x20] sm:$0xff]   ;;  %v1336_v12 = vld [vmem:[%s1585_s29 + $0x28] sm:$0xff]  }
  0x18   : > { %v1333_v9 = vld [vmem:[%s1585_s29 + $0x98] sm:$0xff]   ;;  %v1335_v11 = vld [vmem:[%s1585_s29 + $0xa0] sm:$0xff]   ;;  %v1337_v13 = vld [vmem:[%s1585_s29 + $0xa8] sm:$0xff]  }
  0x19   : > { %1215 = vmatpush3.bf16.msra.mxu0 %v1325_v1  ;;  %1283 = vmatpush3.bf16.msra.mxu1 %v1325_v1  ;;  %v1338_v14 = vld [vmem:[%s1585_s29 + $0x30] sm:$0xff]   ;;  %v1340_v16 = vld [vmem:[%s1585_s29 + $0x38] sm:$0xff]   ;;  %v1342_v18 = vld [vmem:[%s1585_s29 + $0x40] sm:$0xff]  }
  0x1a   : > { %v1339_v15 = vld [vmem:[%s1585_s29 + $0xb0] sm:$0xff]   ;;  %v1341_v17 = vld [vmem:[%s1585_s29 + $0xb8] sm:$0xff]   ;;  %v1343_v19 = vld [vmem:[%s1585_s29 + $0xc0] sm:$0xff]  }
  0x1b   : > { %v1344_v20 = vld [vmem:[%s1585_s29 + $0x48] sm:$0xff]   ;;  %v1346_v22 = vld [vmem:[%s1585_s29 + $0x50] sm:$0xff]   ;;  %v1348_v24 = vld [vmem:[%s1585_s29 + $0x58] sm:$0xff]  }
  0x1c   : > { %1217 = vmatmul.mubr.msk.bf16.vlgmr.msra.gmra.mrb[0].mxu0 %vm478_vm0, %v1328_v4  ;;  %1249 = vmatmul.mubr.msk.bf16.vlgmr.msra.gmra.mrb[0].mxu1 %vm478_vm0, %v1329_v5  ;;  %v1345_v21 = vld [vmem:[%s1585_s29 + $0xc8] sm:$0xff]   ;;  %v1347_v23 = vld [vmem:[%s1585_s29 + $0xd0] sm:$0xff]   ;;  %v1349_v25 = vld [vmem:[%s1585_s29 + $0xd8] sm:$0xff]  }
  0x1d   : > { %1220 = vmatprep.mubr.msk.bf16.mxu0 %vm478_vm0, %v1330_v6  ;;  %1252 = vmatprep.mubr.msk.bf16.mxu1 %vm478_vm0, %v1331_v7  ;;  %v1350_v26 = vld [vmem:[%s1585_s29 + $0x60] sm:$0xff]   ;;  %v1352_v28 = vld [vmem:[%s1585_s29 + $0x68] sm:$0xff]   ;;  %v1354_v30 = vld [vmem:[%s1585_s29 + $0x70] sm:$0xff]  }
  0x1e   : > { %v1351_v27 = vld [vmem:[%s1585_s29 + $0xe0] sm:$0xff]   ;;  %v1353_v29 = vld [vmem:[%s1585_s29 + $0xe8] sm:$0xff]   ;;  %v1355_v31 = vld [vmem:[%s1585_s29 + $0xf0] sm:$0xff]  }
  0x1f   : > { %v1356_v32 = vld [vmem:[%s1585_s29 + $0x78] sm:$0xff]  }
  0x20   : > { %v1357_v33 = vld [vmem:[%s1585_s29 + $0xf8] sm:$0xff]  }
  0x24   : > { %1221 = vmatmul.mubr.msk.bf16.gmra.mrb[4].mxu0 %vm478_vm0, %v1332_v8  ;;  %1253 = vmatmul.mubr.msk.bf16.gmra.mrb[4].mxu1 %vm478_vm0, %v1333_v9 }
  0x25   : > { %1224 = vmatprep.mubr.msk.bf16.mxu0 %vm478_vm0, %v1334_v10  ;;  %1256 = vmatprep.mubr.msk.bf16.mxu1 %vm478_vm0, %v1335_v11 }
  0x2c   : > { %1225 = vmatmul.mubr.msk.bf16.gmra.mrb[8].mxu0 %vm478_vm0, %v1336_v12  ;;  %1257 = vmatmul.mubr.msk.bf16.gmra.mrb[8].mxu1 %vm478_vm0, %v1337_v13 }
  0x2d   : > { %1228 = vmatprep.mubr.msk.bf16.mxu0 %vm478_vm0, %v1338_v14  ;;  %1260 = vmatprep.mubr.msk.bf16.mxu1 %vm478_vm0, %v1339_v15 }
  0x34   : > { %1229 = vmatmul.mubr.msk.bf16.gmra.mrb[12].mxu0 %vm478_vm0, %v1340_v16  ;;  %1261 = vmatmul.mubr.msk.bf16.gmra.mrb[12].mxu1 %vm478_vm0, %v1341_v17 }
  0x35   : > { %1232 = vmatprep.mubr.msk.bf16.mxu0 %vm478_vm0, %v1342_v18  ;;  %1264 = vmatprep.mubr.msk.bf16.mxu1 %vm478_vm0, %v1343_v19 }
  0x3c   : > { %1233 = vmatmul.mubr.msk.bf16.gmra.mrb[16].mxu0 %vm478_vm0, %v1344_v20  ;;  %1265 = vmatmul.mubr.msk.bf16.gmra.mrb[16].mxu1 %vm478_vm0, %v1345_v21 }
  0x3d   : > { %1236 = vmatprep.mubr.msk.bf16.mxu0 %vm478_vm0, %v1346_v22  ;;  %1268 = vmatprep.mubr.msk.bf16.mxu1 %vm478_vm0, %v1347_v23 }
  0x44   : > { %1237 = vmatmul.mubr.msk.bf16.gmra.mrb[20].mxu0 %vm478_vm0, %v1348_v24  ;;  %1269 = vmatmul.mubr.msk.bf16.gmra.mrb[20].mxu1 %vm478_vm0, %v1349_v25 }
  0x45   : > { %1240 = vmatprep.mubr.msk.bf16.mxu0 %vm478_vm0, %v1350_v26  ;;  %1272 = vmatprep.mubr.msk.bf16.mxu1 %vm478_vm0, %v1351_v27 }
  0x4c   : > { %1241 = vmatmul.mubr.msk.bf16.gmra.mrb[24].mxu0 %vm478_vm0, %v1352_v28  ;;  %1273 = vmatmul.mubr.msk.bf16.gmra.mrb[24].mxu1 %vm478_vm0, %v1353_v29 }
  0x4d   : > { %1244 = vmatprep.mubr.msk.bf16.mxu0 %vm478_vm0, %v1354_v30  ;;  %1276 = vmatprep.mubr.msk.bf16.mxu1 %vm478_vm0, %v1355_v31 }
  0x54   : > { %1245 = vmatmul.mubr.msk.bf16.gmra.mrb[28].mxu0 %vm478_vm0, %v1356_v32  ;;  %1277 = vmatmul.mubr.msk.bf16.gmra.mrb[28].mxu1 %vm478_vm0, %v1357_v33 }
  0xef   : > { %v1218_v35 = vpop.f32.mrb[0].mxu0  ;;  %v1250_v36 = vpop.f32.mrb[0].mxu1 }
  0xf0   : > { %v618_v37 = vadd.f32 %v1218_v35, %v1654_v34  ;;  %v746_v38 = vadd.f32 %v1250_v36, %v1654_v34  ;;  %v609_v39 = vpop.f32.mrb[1].mxu0  ;;  %v737_v40 = vpop.f32.mrb[1].mxu1 }
  0xf1   : > { %v610_v41 = vadd.f32 %v1654_v34, %v609_v39  ;;  %v738_v42 = vadd.f32 %v1654_v34, %v737_v40  ;;  %v1219_v43 = vpop.f32.mrb[2].mxu0  ;;  %v1251_v44 = vpop.f32.mrb[2].mxu1 }
  0xf2   : > { %1358 = vtanh.f32 %v618_v37  ;;  %v621_v45 = vadd.f32 %v1219_v43, %v1654_v34  ;;  %v612_v46 = vpop.f32.mrb[3].mxu0  ;;  %v740_v47 = vpop.f32.mrb[3].mxu1  ;;  %v749_v48 = vadd.f32 %v1251_v44, %v1654_v34 }
  0xf3   : > { %1360 = vtanh.f32 %v746_v38  ;;  %v613_v49 = vadd.f32 %v1654_v34, %v612_v46  ;;  %v741_v50 = vadd.f32 %v1654_v34, %v740_v47 }
  0xf4   : > { %1362 = vtanh.f32 %v610_v41 }
  0xf5   : > { %1364 = vtanh.f32 %v738_v42 }
  0xf6   : > { %1366 = vtanh.f32 %v621_v45 }
  0xf7   : > { %1368 = vtanh.f32 %v749_v48  ;;  %v1222_v51 = vpop.f32.mrb[4].mxu0  ;;  %v1254_v52 = vpop.f32.mrb[4].mxu1 }
  0xf8   : > { %1370 = vtanh.f32 %v613_v49  ;;  %v634_v53 = vadd.f32 %v1222_v51, %v1654_v34  ;;  %v762_v54 = vadd.f32 %v1254_v52, %v1654_v34  ;;  %v625_v55 = vpop.f32.mrb[5].mxu0  ;;  %v753_v56 = vpop.f32.mrb[5].mxu1 }
  0xf9   : > { %1372 = vtanh.f32 %v741_v50  ;;  %v626_v57 = vadd.f32 %v1654_v34, %v625_v55  ;;  %v754_v58 = vadd.f32 %v1654_v34, %v753_v56  ;;  %v1223_v59 = vpop.f32.mrb[6].mxu0  ;;  %v1255_v60 = vpop.f32.mrb[6].mxu1 }
  0xfa   : > { %1374 = vtanh.f32 %v634_v53  ;;  %v637_v61 = vadd.f32 %v1223_v59, %v1654_v34  ;;  %v628_v62 = vpop.f32.mrb[7].mxu0  ;;  %v756_v63 = vpop.f32.mrb[7].mxu1  ;;  %v765_v0 = vadd.f32 %v1255_v60, %v1654_v34 }
  0xfb   : > { %1376 = vtanh.f32 %v762_v54  ;;  %v629_v2 = vadd.f32 %v1654_v34, %v628_v62  ;;  %v757_v4 = vadd.f32 %v1654_v34, %v756_v63 }
  0xfc   : > { %v1359_v1 = vpop.eup %1358  ;;  %1378 = vtanh.f32 %v626_v57 }
  0xfd   : > { %v1361_v3 = vpop.eup %1360  ;;  %931 = vst.msk [vmem:[%s1672_s8 + $0x10] sm:$0xff] %vm928_vm1, %v1359_v1  ;;  %1380 = vtanh.f32 %v754_v58 }
  0xfe   : > { %v1363_v5 = vpop.eup %1362  ;;  %963 = vst.msk [vmem:[%s1672_s8 + $0x110] sm:$0xff] %vm928_vm1, %v1361_v3  ;;  %1382 = vtanh.f32 %v637_v61 }
  0xff   : > { %v1365_v6 = vpop.eup %1364  ;;  %929 = vst.msk [vmem:[%s1672_s8] sm:$0xff] %vm928_vm1, %v1363_v5  ;;  %1384 = vtanh.f32 %v765_v0  ;;  %v1226_v7 = vpop.f32.mrb[8].mxu0 }
 0x100   : > { %v1258_v8 = vpop.f32.mrb[8].mxu1  ;;  %v1367_v9 = vpop.eup %1366  ;;  %961 = vst.msk [vmem:[%s1672_s8 + $0x100] sm:$0xff] %vm928_vm1, %v1365_v6  ;;  %1386 = vtanh.f32 %v629_v2  ;;  %v650_v10 = vadd.f32 %v1226_v7, %v1654_v34 }
 0x101   : > { %v778_v11 = vadd.f32 %v1258_v8, %v1654_v34  ;;  %v641_v12 = vpop.f32.mrb[9].mxu0  ;;  %v769_v13 = vpop.f32.mrb[9].mxu1  ;;  %932 = vst.msk [vmem:[%s1672_s8 + $0x18] sm:$0xff] %vm928_vm1, %v1367_v9  ;;  %1388 = vtanh.f32 %v757_v4 }
 0x102   : > { %v1369_v14 = vpop.eup %1368  ;;  %v642_v15 = vadd.f32 %v1654_v34, %v641_v12  ;;  %v770_v16 = vadd.f32 %v1654_v34, %v769_v13  ;;  %v1227_v17 = vpop.f32.mrb[10].mxu0  ;;  %1390 = vtanh.f32 %v650_v10 }
 0x103   : > { %v1259_v18 = vpop.f32.mrb[10].mxu1  ;;  %v1371_v19 = vpop.eup %1370  ;;  %964 = vst.msk [vmem:[%s1672_s8 + $0x118] sm:$0xff] %vm928_vm1, %v1369_v14  ;;  %v653_v20 = vadd.f32 %v1227_v17, %v1654_v34  ;;  %1392 = vtanh.f32 %v778_v11 }
 0x104   : > { %v644_v21 = vpop.f32.mrb[11].mxu0  ;;  %v772_v22 = vpop.f32.mrb[11].mxu1  ;;  %930 = vst.msk [vmem:[%s1672_s8 + $0x8] sm:$0xff] %vm928_vm1, %v1371_v19  ;;  %v781_v24 = vadd.f32 %v1259_v18, %v1654_v34  ;;  %1394 = vtanh.f32 %v642_v15 }
 0x105   : > { %v1373_v23 = vpop.eup %1372  ;;  %v645_v26 = vadd.f32 %v1654_v34, %v644_v21  ;;  %1396 = vtanh.f32 %v770_v16  ;;  %v773_v28 = vadd.f32 %v1654_v34, %v772_v22 }
 0x106   : > { %v1375_v25 = vpop.eup %1374  ;;  %962 = vst.msk [vmem:[%s1672_s8 + $0x108] sm:$0xff] %vm928_vm1, %v1373_v23  ;;  %1398 = vtanh.f32 %v653_v20 }
 0x107   : > { %v1377_v27 = vpop.eup %1376  ;;  %935 = vst.msk [vmem:[%s1672_s8 + $0x30] sm:$0xff] %vm928_vm1, %v1375_v25  ;;  %1400 = vtanh.f32 %v781_v24  ;;  %v1230_v31 = vpop.f32.mrb[12].mxu0 }
 0x108   : > { %v1379_v29 = vpop.eup %1378  ;;  %967 = vst.msk [vmem:[%s1672_s8 + $0x130] sm:$0xff] %vm928_vm1, %v1377_v27  ;;  %v1262_v32 = vpop.f32.mrb[12].mxu1  ;;  %1402 = vtanh.f32 %v645_v26  ;;  %v666_v35 = vadd.f32 %v1230_v31, %v1654_v34 }
 0x109   : > { %v1381_v30 = vpop.eup %1380  ;;  %933 = vst.msk [vmem:[%s1672_s8 + $0x20] sm:$0xff] %vm928_vm1, %v1379_v29  ;;  %v794_v36 = vadd.f32 %v1262_v32, %v1654_v34  ;;  %v657_v37 = vpop.f32.mrb[13].mxu0  ;;  %1404 = vtanh.f32 %v773_v28 }
 0x10a   : > { %v1383_v33 = vpop.eup %1382  ;;  %965 = vst.msk [vmem:[%s1672_s8 + $0x120] sm:$0xff] %vm928_vm1, %v1381_v30  ;;  %v785_v38 = vpop.f32.mrb[13].mxu1  ;;  %v658_v40 = vadd.f32 %v1654_v34, %v657_v37  ;;  %1406 = vtanh.f32 %v666_v35 }
 0x10b   : > { %v1385_v39 = vpop.eup %1384  ;;  %936 = vst.msk [vmem:[%s1672_s8 + $0x38] sm:$0xff] %vm928_vm1, %v1383_v33  ;;  %v786_v41 = vadd.f32 %v1654_v34, %v785_v38  ;;  %v1231_v42 = vpop.f32.mrb[14].mxu0  ;;  %1408 = vtanh.f32 %v794_v36 }
 0x10c   : > { %v1263_v43 = vpop.f32.mrb[14].mxu1  ;;  %v1387_v44 = vpop.eup %1386  ;;  %968 = vst.msk [vmem:[%s1672_s8 + $0x138] sm:$0xff] %vm928_vm1, %v1385_v39  ;;  %v669_v45 = vadd.f32 %v1231_v42, %v1654_v34  ;;  %1410 = vtanh.f32 %v658_v40 }
 0x10d   : > { %v660_v46 = vpop.f32.mrb[15].mxu0  ;;  %v788_v47 = vpop.f32.mrb[15].mxu1  ;;  %934 = vst.msk [vmem:[%s1672_s8 + $0x28] sm:$0xff] %vm928_vm1, %v1387_v44  ;;  %v797_v49 = vadd.f32 %v1263_v43, %v1654_v34  ;;  %1412 = vtanh.f32 %v786_v41 }
 0x10e   : > { %v1389_v48 = vpop.eup %1388  ;;  %v661_v51 = vadd.f32 %v1654_v34, %v660_v46  ;;  %v789_v53 = vadd.f32 %v1654_v34, %v788_v47  ;;  %1414 = vtanh.f32 %v669_v45 }
 0x10f   : > { %v1391_v50 = vpop.eup %1390  ;;  %966 = vst.msk [vmem:[%s1672_s8 + $0x128] sm:$0xff] %vm928_vm1, %v1389_v48  ;;  %1416 = vtanh.f32 %v797_v49  ;;  %v1234_v56 = vpop.f32.mrb[16].mxu0 }
 0x110   : > { %v1393_v52 = vpop.eup %1392  ;;  %939 = vst.msk [vmem:[%s1672_s8 + $0x50] sm:$0xff] %vm928_vm1, %v1391_v50  ;;  %v1266_v57 = vpop.f32.mrb[16].mxu1  ;;  %1418 = vtanh.f32 %v661_v51  ;;  %v682_v59 = vadd.f32 %v1234_v56, %v1654_v34 }
 0x111   : > { %v1395_v54 = vpop.eup %1394  ;;  %971 = vst.msk [vmem:[%s1672_s8 + $0x150] sm:$0xff] %vm928_vm1, %v1393_v52  ;;  %v810_v60 = vadd.f32 %v1266_v57, %v1654_v34  ;;  %v673_v61 = vpop.f32.mrb[17].mxu0  ;;  %1420 = vtanh.f32 %v789_v53 }
 0x112   : > { %v1397_v55 = vpop.eup %1396  ;;  %937 = vst.msk [vmem:[%s1672_s8 + $0x40] sm:$0xff] %vm928_vm1, %v1395_v54  ;;  %v801_v62 = vpop.f32.mrb[17].mxu1  ;;  %v674_v0 = vadd.f32 %v1654_v34, %v673_v61  ;;  %1422 = vtanh.f32 %v682_v59 }
 0x113   : > { %v1399_v58 = vpop.eup %1398  ;;  %969 = vst.msk [vmem:[%s1672_s8 + $0x140] sm:$0xff] %vm928_vm1, %v1397_v55  ;;  %v802_v1 = vadd.f32 %v1654_v34, %v801_v62  ;;  %v1235_v2 = vpop.f32.mrb[18].mxu0  ;;  %1424 = vtanh.f32 %v810_v60 }
 0x114   : > { %v1401_v63 = vpop.eup %1400  ;;  %940 = vst.msk [vmem:[%s1672_s8 + $0x58] sm:$0xff] %vm928_vm1, %v1399_v58  ;;  %v1267_v3 = vpop.f32.mrb[18].mxu1  ;;  %v685_v5 = vadd.f32 %v1235_v2, %v1654_v34  ;;  %1426 = vtanh.f32 %v674_v0 }
 0x115   : > { %v1403_v4 = vpop.eup %1402  ;;  %972 = vst.msk [vmem:[%s1672_s8 + $0x158] sm:$0xff] %vm928_vm1, %v1401_v63  ;;  %v676_v6 = vpop.f32.mrb[19].mxu0  ;;  %v813_v9 = vadd.f32 %v1267_v3, %v1654_v34  ;;  %1428 = vtanh.f32 %v802_v1 }
 0x116   : > { %v804_v7 = vpop.f32.mrb[19].mxu1  ;;  %v1405_v8 = vpop.eup %1404  ;;  %938 = vst.msk [vmem:[%s1672_s8 + $0x48] sm:$0xff] %vm928_vm1, %v1403_v4  ;;  %v677_v11 = vadd.f32 %v1654_v34, %v676_v6  ;;  %1430 = vtanh.f32 %v685_v5 }
 0x117   : > { %v1407_v10 = vpop.eup %1406  ;;  %970 = vst.msk [vmem:[%s1672_s8 + $0x148] sm:$0xff] %vm928_vm1, %v1405_v8  ;;  %v805_v13 = vadd.f32 %v1654_v34, %v804_v7  ;;  %1432 = vtanh.f32 %v813_v9  ;;  %v1238_v16 = vpop.f32.mrb[20].mxu0 }
 0x118   : > { %v1409_v12 = vpop.eup %1408  ;;  %943 = vst.msk [vmem:[%s1672_s8 + $0x70] sm:$0xff] %vm928_vm1, %v1407_v10  ;;  %v1270_v17 = vpop.f32.mrb[20].mxu1  ;;  %1434 = vtanh.f32 %v677_v11  ;;  %v698_v19 = vadd.f32 %v1238_v16, %v1654_v34 }
 0x119   : > { %v1411_v14 = vpop.eup %1410  ;;  %975 = vst.msk [vmem:[%s1672_s8 + $0x170] sm:$0xff] %vm928_vm1, %v1409_v12  ;;  %v826_v20 = vadd.f32 %v1270_v17, %v1654_v34  ;;  %v689_v21 = vpop.f32.mrb[21].mxu0  ;;  %1436 = vtanh.f32 %v805_v13 }
 0x11a   : > { %v1413_v15 = vpop.eup %1412  ;;  %941 = vst.msk [vmem:[%s1672_s8 + $0x60] sm:$0xff] %vm928_vm1, %v1411_v14  ;;  %v817_v22 = vpop.f32.mrb[21].mxu1  ;;  %v690_v24 = vadd.f32 %v1654_v34, %v689_v21  ;;  %1438 = vtanh.f32 %v698_v19 }
 0x11b   : > { %v1415_v18 = vpop.eup %1414  ;;  %973 = vst.msk [vmem:[%s1672_s8 + $0x160] sm:$0xff] %vm928_vm1, %v1413_v15  ;;  %v818_v25 = vadd.f32 %v1654_v34, %v817_v22  ;;  %v1239_v26 = vpop.f32.mrb[22].mxu0  ;;  %1440 = vtanh.f32 %v826_v20 }
 0x11c   : > { %v1417_v23 = vpop.eup %1416  ;;  %944 = vst.msk [vmem:[%s1672_s8 + $0x78] sm:$0xff] %vm928_vm1, %v1415_v18  ;;  %v1271_v27 = vpop.f32.mrb[22].mxu1  ;;  %v701_v29 = vadd.f32 %v1239_v26, %v1654_v34  ;;  %1442 = vtanh.f32 %v690_v24 }
 0x11d   : > { %v1419_v28 = vpop.eup %1418  ;;  %976 = vst.msk [vmem:[%s1672_s8 + $0x178] sm:$0xff] %vm928_vm1, %v1417_v23  ;;  %v692_v30 = vpop.f32.mrb[23].mxu0  ;;  %v829_v33 = vadd.f32 %v1271_v27, %v1654_v34  ;;  %1444 = vtanh.f32 %v818_v25 }
 0x11e   : > { %v820_v31 = vpop.f32.mrb[23].mxu1  ;;  %v1421_v32 = vpop.eup %1420  ;;  %942 = vst.msk [vmem:[%s1672_s8 + $0x68] sm:$0xff] %vm928_vm1, %v1419_v28  ;;  %v693_v36 = vadd.f32 %v1654_v34, %v692_v30  ;;  %1446 = vtanh.f32 %v701_v29 }
 0x11f   : > { %v1423_v35 = vpop.eup %1422  ;;  %974 = vst.msk [vmem:[%s1672_s8 + $0x168] sm:$0xff] %vm928_vm1, %v1421_v32  ;;  %v821_v38 = vadd.f32 %v1654_v34, %v820_v31  ;;  %1448 = vtanh.f32 %v829_v33  ;;  %v1242_v41 = vpop.f32.mrb[24].mxu0 }
 0x120   : > { %v1425_v37 = vpop.eup %1424  ;;  %947 = vst.msk [vmem:[%s1672_s8 + $0x90] sm:$0xff] %vm928_vm1, %v1423_v35  ;;  %v1274_v42 = vpop.f32.mrb[24].mxu1  ;;  %1450 = vtanh.f32 %v693_v36  ;;  %v714_v44 = vadd.f32 %v1242_v41, %v1654_v34 }
 0x121   : > { %v1427_v39 = vpop.eup %1426  ;;  %979 = vst.msk [vmem:[%s1672_s8 + $0x190] sm:$0xff] %vm928_vm1, %v1425_v37  ;;  %v842_v45 = vadd.f32 %v1274_v42, %v1654_v34  ;;  %v705_v46 = vpop.f32.mrb[25].mxu0  ;;  %1452 = vtanh.f32 %v821_v38 }
 0x122   : > { %v1429_v40 = vpop.eup %1428  ;;  %945 = vst.msk [vmem:[%s1672_s8 + $0x80] sm:$0xff] %vm928_vm1, %v1427_v39  ;;  %v833_v47 = vpop.f32.mrb[25].mxu1  ;;  %v706_v49 = vadd.f32 %v1654_v34, %v705_v46  ;;  %1454 = vtanh.f32 %v714_v44 }
 0x123   : > { %v1431_v43 = vpop.eup %1430  ;;  %977 = vst.msk [vmem:[%s1672_s8 + $0x180] sm:$0xff] %vm928_vm1, %v1429_v40  ;;  %v834_v50 = vadd.f32 %v1654_v34, %v833_v47  ;;  %v1243_v51 = vpop.f32.mrb[26].mxu0  ;;  %1456 = vtanh.f32 %v842_v45 }
 0x124   : > { %v1433_v48 = vpop.eup %1432  ;;  %948 = vst.msk [vmem:[%s1672_s8 + $0x98] sm:$0xff] %vm928_vm1, %v1431_v43  ;;  %v1275_v52 = vpop.f32.mrb[26].mxu1  ;;  %v717_v54 = vadd.f32 %v1243_v51, %v1654_v34  ;;  %1458 = vtanh.f32 %v706_v49 }
 0x125   : > { %v1435_v53 = vpop.eup %1434  ;;  %980 = vst.msk [vmem:[%s1672_s8 + $0x198] sm:$0xff] %vm928_vm1, %v1433_v48  ;;  %v708_v55 = vpop.f32.mrb[27].mxu0  ;;  %v845_v58 = vadd.f32 %v1275_v52, %v1654_v34  ;;  %1460 = vtanh.f32 %v834_v50 }
 0x126   : > { %v836_v56 = vpop.f32.mrb[27].mxu1  ;;  %v1437_v57 = vpop.eup %1436  ;;  %946 = vst.msk [vmem:[%s1672_s8 + $0x88] sm:$0xff] %vm928_vm1, %v1435_v53  ;;  %v709_v60 = vadd.f32 %v1654_v34, %v708_v55  ;;  %1462 = vtanh.f32 %v717_v54 }
 0x127   : > { %v1439_v59 = vpop.eup %1438  ;;  %978 = vst.msk [vmem:[%s1672_s8 + $0x188] sm:$0xff] %vm928_vm1, %v1437_v57  ;;  %v837_v62 = vadd.f32 %v1654_v34, %v836_v56  ;;  %1464 = vtanh.f32 %v845_v58  ;;  %v1246_v1 = vpop.f32.mrb[28].mxu0 }
 0x128   : > { %v1441_v61 = vpop.eup %1440  ;;  %951 = vst.msk [vmem:[%s1672_s8 + $0xb0] sm:$0xff] %vm928_vm1, %v1439_v59  ;;  %v1278_v2 = vpop.f32.mrb[28].mxu1  ;;  %1466 = vtanh.f32 %v709_v60  ;;  %v730_v4 = vadd.f32 %v1246_v1, %v1654_v34 }
 0x129   : > { %v1443_v63 = vpop.eup %1442  ;;  %983 = vst.msk [vmem:[%s1672_s8 + $0x1b0] sm:$0xff] %vm928_vm1, %v1441_v61  ;;  %v858_v5 = vadd.f32 %v1278_v2, %v1654_v34  ;;  %v721_v6 = vpop.f32.mrb[29].mxu0  ;;  %1468 = vtanh.f32 %v837_v62 }
 0x12a   : > { %v1445_v0 = vpop.eup %1444  ;;  %949 = vst.msk [vmem:[%s1672_s8 + $0xa0] sm:$0xff] %vm928_vm1, %v1443_v63  ;;  %v849_v7 = vpop.f32.mrb[29].mxu1  ;;  %v722_v9 = vadd.f32 %v1654_v34, %v721_v6  ;;  %1470 = vtanh.f32 %v730_v4 }
 0x12b   : > { %v1447_v3 = vpop.eup %1446  ;;  %981 = vst.msk [vmem:[%s1672_s8 + $0x1a0] sm:$0xff] %vm928_vm1, %v1445_v0  ;;  %v850_v10 = vadd.f32 %v1654_v34, %v849_v7  ;;  %v1247_v11 = vpop.f32.mrb[30].mxu0  ;;  %1472 = vtanh.f32 %v858_v5 }
 0x12c   : > { %v1449_v8 = vpop.eup %1448  ;;  %952 = vst.msk [vmem:[%s1672_s8 + $0xb8] sm:$0xff] %vm928_vm1, %v1447_v3  ;;  %v1279_v12 = vpop.f32.mrb[30].mxu1  ;;  %v733_v14 = vadd.f32 %v1247_v11, %v1654_v34  ;;  %1474 = vtanh.f32 %v722_v9 }
 0x12d   : > { %v1451_v13 = vpop.eup %1450  ;;  %984 = vst.msk [vmem:[%s1672_s8 + $0x1b8] sm:$0xff] %vm928_vm1, %v1449_v8  ;;  %v724_v15 = vpop.f32.mrb[31].mxu0  ;;  %v861_v18 = vadd.f32 %v1279_v12, %v1654_v34  ;;  %1476 = vtanh.f32 %v850_v10 }
 0x12e   : > { %v852_v16 = vpop.f32.mrb[31].mxu1  ;;  %v1453_v17 = vpop.eup %1452  ;;  %950 = vst.msk [vmem:[%s1672_s8 + $0xa8] sm:$0xff] %vm928_vm1, %v1451_v13  ;;  %v725_v20 = vadd.f32 %v1654_v34, %v724_v15  ;;  %1478 = vtanh.f32 %v733_v14 }
 0x12f   : > { %v1455_v19 = vpop.eup %1454  ;;  %982 = vst.msk [vmem:[%s1672_s8 + $0x1a8] sm:$0xff] %vm928_vm1, %v1453_v17  ;;  %v853_v22 = vadd.f32 %v1654_v34, %v852_v16  ;;  %1480 = vtanh.f32 %v861_v18 }
 0x130   : > { %v1457_v21 = vpop.eup %1456  ;;  %955 = vst.msk [vmem:[%s1672_s8 + $0xd0] sm:$0xff] %vm928_vm1, %v1455_v19  ;;  %1482 = vtanh.f32 %v725_v20 }
 0x131   : > { %v1459_v23 = vpop.eup %1458  ;;  %987 = vst.msk [vmem:[%s1672_s8 + $0x1d0] sm:$0xff] %vm928_vm1, %v1457_v21  ;;  %1484 = vtanh.f32 %v853_v22 }
 0x132   : > { %v1461_v24 = vpop.eup %1460  ;;  %953 = vst.msk [vmem:[%s1672_s8 + $0xc0] sm:$0xff] %vm928_vm1, %v1459_v23 }
 0x133   : > { %v1463_v25 = vpop.eup %1462  ;;  %985 = vst.msk [vmem:[%s1672_s8 + $0x1c0] sm:$0xff] %vm928_vm1, %v1461_v24 }
 0x134   : > { %v1465_v26 = vpop.eup %1464  ;;  %956 = vst.msk [vmem:[%s1672_s8 + $0xd8] sm:$0xff] %vm928_vm1, %v1463_v25 }
 0x135   : > { %v1467_v34 = vpop.eup %1466  ;;  %988 = vst.msk [vmem:[%s1672_s8 + $0x1d8] sm:$0xff] %vm928_vm1, %v1465_v26 }
 0x136   : > { %v1469_v27 = vpop.eup %1468  ;;  %954 = vst.msk [vmem:[%s1672_s8 + $0xc8] sm:$0xff] %vm928_vm1, %v1467_v34 }
 0x137   : > { %v1471_v28 = vpop.eup %1470  ;;  %986 = vst.msk [vmem:[%s1672_s8 + $0x1c8] sm:$0xff] %vm928_vm1, %v1469_v27 }
 0x138   : > { %v1473_v29 = vpop.eup %1472  ;;  %959 = vst.msk [vmem:[%s1672_s8 + $0xf0] sm:$0xff] %vm928_vm1, %v1471_v28 }
 0x139   : > { %v1475_v30 = vpop.eup %1474  ;;  %991 = vst.msk [vmem:[%s1672_s8 + $0x1f0] sm:$0xff] %vm928_vm1, %v1473_v29 }
 0x13a   : > { %v1477_v31 = vpop.eup %1476  ;;  %957 = vst.msk [vmem:[%s1672_s8 + $0xe0] sm:$0xff] %vm928_vm1, %v1475_v30 }
 0x13b   : > { %v1479_v32 = vpop.eup %1478  ;;  %989 = vst.msk [vmem:[%s1672_s8 + $0x1e0] sm:$0xff] %vm928_vm1, %v1477_v31 }
 0x13c   : > { %v1481_v33 = vpop.eup %1480  ;;  %960 = vst.msk [vmem:[%s1672_s8 + $0xf8] sm:$0xff] %vm928_vm1, %v1479_v32 }
 0x13d   : > { %v1483_v35 = vpop.eup %1482  ;;  %992 = vst.msk [vmem:[%s1672_s8 + $0x1f8] sm:$0xff] %vm928_vm1, %v1481_v33 }
 0x13e   : > { %v1485_v36 = vpop.eup %1484  ;;  %958 = vst.msk [vmem:[%s1672_s8 + $0xe8] sm:$0xff] %vm928_vm1, %v1483_v35 }
 0x13f   : > { %990 = vst.msk [vmem:[%s1672_s8 + $0x1e8] sm:$0xff] %vm928_vm1, %v1485_v36 }
 0x140 PF: > { %s13_s16 = sadd.s32 1, %s1524_s16   ;;  %s1873_s12 = smov %s1516_s14 }
 0x141   : > { %p10_p7 = scmp.ge.s32.totalorder %s13_s16, 18   ;;  %s1874_s13 = smov %s1520_s15 }
 0x142   : > { %s1875_s14 = smov %s1878_s17  ;;  %s1876_s15 = smov %s1882_s18 }
 0x143   :  { %12 = sbr.rel (!%p10_p7) target bundleno = 3 (0x3), region = 65 }

</bundles_post_ra>
